<compile_context>
chip_gen: v7x
topology: tpu7x:2x2x1
jax: 0.10.0
libtpu: 0.0.40
codegen_flags: <defaults>
</compile_context>

<pallas_src>
import jax
import jax.numpy as jnp
from jax.experimental import pallas as pl
from jax.experimental.pallas import tpu as pltpu


def _round_up(v, m):
    return ((v + m - 1) // m) * m


def _default_num_blocks(batch):
    """Grid blocks for the batch: 2 on dual-TensorCore chips (v7x), else 1."""
    try:
        kind = jax.devices()[0].device_kind.lower()
    except Exception:
        kind = ""
    n = 2 if ("v7" in kind and batch >= 2) else 1
    return n if batch % n == 0 else 1


# ----------------------------------------------------------------------------
# Fused decoder kernel (imgs_per_block images per grid step, batch in lanes).
#   x_ref     : (1, Cmax, lanes)          lanes = imgs_per_block * H * W
#   w_ref     : (n_conv, 9, Cmax, Cmax)   bf16, [layer, tap, cout, cin]
#   scale_ref : (n_conv, Cmax, 1)         folded BN scale
#   shift_ref : (n_conv, Cmax, 1)         folded BN shift (incl. conv bias)
#   masks_ref : (8, lanes)                border masks, non-centre taps only
#   lw_ref    : (L, Cmax)                 linear weight (PyTorch (out, in))
#   lb_ref    : (L, 1)                    linear bias
#   o_ref     : (1, L, imgs_per_block)
# ----------------------------------------------------------------------------
def _make_decoder_kernel(H, W, imgs_per_block, n_conv, cmax):
    HW = H * W
    lanes = imgs_per_block * HW

    # 3x3 taps: (lane shift, mask index).  Centre tap needs no roll / no mask.
    taps = []
    midx = 0
    for ky in range(3):
        for kx in range(3):
            dy, dx = ky - 1, kx - 1
            if dy == 0 and dx == 0:
                taps.append((0, None))
            else:
                taps.append((dy * W + dx, midx))
                midx += 1

    def kernel(x_ref, w_ref, scale_ref, shift_ref, masks_ref, lw_ref, lb_ref,
               o_ref):
        a = x_ref[0].astype(jnp.float32)            # (Cmax, lanes) lane-dense
        m_all = masks_ref[...]                      # (8, lanes), loaded once

        for l in range(n_conv):
            acc = None
            for t, (s, mi) in enumerate(taps):
                # out[:, q] needs a[:, q + dy*W + dx]  ==  roll(a, -s).
                rolled = a if s == 0 else pltpu.roll(a, shift=(-s) % lanes,
                                                     axis=1)
                if mi is not None:                  # zero "SAME" padding
                    rolled = rolled * m_all[mi:mi + 1, :]
                part = jnp.dot(w_ref[l, t], rolled.astype(jnp.bfloat16),
                               preferred_element_type=jnp.float32)
                acc = part if acc is None else acc + part
            acc = acc * scale_ref[l] + shift_ref[l]  # folded BN (eval mode)
            a = jnp.maximum(acc, 0.0)                # ReLU

        # Linear commutes with the spatial mean: apply it lane-dense first,
        # then AdaptiveAvgPool2d((1,1)) per image, then add the bias.
        y = jnp.dot(lw_ref[...], a, preferred_element_type=jnp.float32)
        cols = [jnp.mean(y[:, i * HW:(i + 1) * HW], axis=1, keepdims=True)
                for i in range(imgs_per_block)]
        out_t = jnp.concatenate(cols, axis=1) + lb_ref[...]      # (L, ipb)
        o_ref[...] = out_t.reshape(o_ref.shape).astype(o_ref.dtype)

    return kernel


@jax.jit
def decoder_forward(x_nchw, params):
    B, C0, H, W = x_nchw.shape
    HW = H * W
    n_conv = len(params["convs"])
    msg_len = params["lin_w"].shape[0]
    cmax = _round_up(max([C0] + [w.shape[3] for (w, _, _) in params["convs"]]),
                     8)

    num_blocks = _default_num_blocks(B)
    ipb = B // num_blocks
    lanes = ipb * HW

    # Input: NCHW -> (num_blocks, Cmax, ipb*HW); batch+spatial in lanes.
    x = x_nchw.astype(jnp.float32).reshape(num_blocks, ipb, C0, HW)
    x = jnp.transpose(x, (0, 2, 1, 3)).reshape(num_blocks, C0, lanes)
    if cmax != C0:
        x = jnp.pad(x, ((0, 0), (0, cmax - C0), (0, 0)))

    # Conv weights (bf16, tap-major) and folded BN scale/shift, stacked.
    w_all, s_all, t_all = [], [], []
    for (w, scale, shift) in params["convs"]:
        kh, kw, cin, cout = w.shape
        w_p = jnp.pad(w, ((0, 0), (0, 0), (0, cmax - cin), (0, cmax - cout)))
        # HWIO -> (tap, cout, cin)
        w_all.append(jnp.transpose(w_p, (0, 1, 3, 2)).reshape(kh * kw, cmax,
                                                              cmax))
        s_all.append(jnp.pad(scale, (0, cmax - cout)).reshape(cmax, 1))
        t_all.append(jnp.pad(shift, (0, cmax - cout)).reshape(cmax, 1))
    w_all = jnp.stack(w_all).astype(jnp.bfloat16)   # (n_conv, 9, Cmax, Cmax)
    s_all = jnp.stack(s_all)                        # (n_conv, Cmax, 1)
    t_all = jnp.stack(t_all)                        # (n_conv, Cmax, 1)

    # Border masks for the 8 non-centre taps (implements "SAME" zero padding;
    # also kills cross-image wrap when several images share the lane axis).
    q = jnp.arange(lanes, dtype=jnp.int32) % HW
    row, col = q // W, q % W
    masks = []
    for ky in range(3):
        for kx in range(3):
            dy, dx = ky - 1, kx - 1
            if dy == 0 and dx == 0:
                continue
            valid = ((row + dy >= 0) & (row + dy < H) &
                     (col + dx >= 0) & (col + dx < W))
            masks.append(valid.astype(jnp.float32))
    masks = jnp.stack(masks)                        # (8, lanes)

    # Linear: PyTorch (out, in) layout, in-dim padded up to Cmax.
    lw = jnp.pad(params["lin_w"], ((0, 0), (0, cmax - msg_len)))
    lb = params["lin_b"].reshape(msg_len, 1)

    out = pl.pallas_call(
        _make_decoder_kernel(H, W, ipb, n_conv, cmax),
        out_shape=jax.ShapeDtypeStruct((num_blocks, msg_len, ipb),
                                       jnp.float32),
        grid=(num_blocks,),
        in_specs=[
            pl.BlockSpec((1, cmax, lanes), lambda b: (b, 0, 0)),
            pl.BlockSpec((n_conv, 9, cmax, cmax), lambda b: (0, 0, 0, 0)),
            pl.BlockSpec((n_conv, cmax, 1), lambda b: (0, 0, 0)),
            pl.BlockSpec((n_conv, cmax, 1), lambda b: (0, 0, 0)),
            pl.BlockSpec((8, lanes), lambda b: (0, 0)),
            pl.BlockSpec((msg_len, cmax), lambda b: (0, 0)),
            pl.BlockSpec((msg_len, 1), lambda b: (0, 0)),
        ],
        out_specs=pl.BlockSpec((1, msg_len, ipb), lambda b: (b, 0, 0)),
        compiler_params=pltpu.CompilerParams(
            dimension_semantics=("parallel",)),
    )(x, w_all, s_all, t_all, masks, lw, lb)

    # (num_blocks, L, ipb) -> (B, L)
    return jnp.transpose(out, (0, 2, 1)).reshape(B, msg_len)


# ----------------------------------------------------------------------------
# Parameter construction (deterministic, synthetic) — BN folded (eval mode).
# ----------------------------------------------------------------------------
def make_decoder_params(key, decoder_channels, decoder_blocks, message_length,
                        eps=1e-5):
    chans = [3] + [decoder_channels] * decoder_blocks + [message_length]
    convs = []
    for i in range(len(chans) - 1):
        cin, cout = chans[i], chans[i + 1]
        key, kw, kb, kg, kbeta, km, kv = jax.random.split(key, 7)
        w = 0.1 * jax.random.normal(kw, (3, 3, cin, cout), jnp.float32)  # HWIO
        b_conv = 0.1 * jax.random.normal(kb, (cout,), jnp.float32)
        gamma = 1.0 + 0.1 * jax.random.normal(kg, (cout,), jnp.float32)
        beta = 0.1 * jax.random.normal(kbeta, (cout,), jnp.float32)
        mean = 0.1 * jax.random.normal(km, (cout,), jnp.float32)
        var = jax.random.uniform(kv, (cout,), jnp.float32, 0.5, 1.5)
        scale = gamma / jnp.sqrt(var + eps)
        shift = scale * (b_conv - mean) + beta
        convs.append((w, scale, shift))

    key, kw, kb = jax.random.split(key, 3)
    lin_w = 0.1 * jax.random.normal(kw, (message_length, message_length),
                                    jnp.float32)   # PyTorch (out, in)
    lin_b = 0.1 * jax.random.normal(kb, (message_length,), jnp.float32)
    return {"convs": convs, "lin_w": lin_w, "lin_b": lin_b}


# Pure-JAX reference (same math) for a correctness check.
def decoder_reference(x_nchw, params):
    x = jnp.transpose(x_nchw, (0, 2, 3, 1))
    dn = ("NHWC", "HWIO", "NHWC")
    for (w, scale, shift) in params["convs"]:
        x = jax.lax.conv_general_dilated(x, w, (1, 1), "SAME",
                                         dimension_numbers=dn)
        x = jnp.maximum(x * scale + shift, 0.0)
    pooled = jnp.mean(x, axis=(1, 2))                      # (B, L)
    return pooled @ params["lin_w"].T + params["lin_b"]


if __name__ == "__main__":
    key = jax.random.PRNGKey(0)
    B, H, W = 2, 16, 16
    decoder_channels, decoder_blocks, message_length = 8, 3, 8

    kx, kp = jax.random.split(key)
    x = jax.random.normal(kx, (B, 3, H, W), jnp.float32)   # PyTorch NCHW input
    params = make_decoder_params(kp, decoder_channels, decoder_blocks,
                                 message_length)

    out = decoder_forward(x, params)
    out = jax.block_until_ready(out)

    ref = decoder_reference(x, params)
    assert out.shape == (B, message_length)
    # bf16 MXU inputs for the conv matmuls -> slightly looser tolerance.
    assert jnp.allclose(out, ref, rtol=5e-3, atol=5e-3), "mismatch vs reference"

    print("KERNEL_OK")
</pallas_src>

<mosaic_0001>
module attributes {stable_mosaic.version = 11 : i64} {
  func.func @kernel(%arg0: i32, %arg1: memref<1x8x512xf32, #tpu.memory_space<vmem>>, %arg2: memref<4x9x8x8xbf16, #tpu.memory_space<vmem>>, %arg3: memref<4x8x1xf32, #tpu.memory_space<vmem>>, %arg4: memref<4x8x1xf32, #tpu.memory_space<vmem>>, %arg5: memref<8x512xf32, #tpu.memory_space<vmem>>, %arg6: memref<8x8xf32, #tpu.memory_space<vmem>>, %arg7: memref<8x1xf32, #tpu.memory_space<vmem>>, %arg8: memref<1x8x2xf32, #tpu.memory_space<vmem>>) attributes {dimension_semantics = [#tpu.dimension_semantics<parallel>], iteration_bounds = array<i64: 1>, scalar_prefetch = 0 : i64, scratch_operands = 0 : i64, tpu.core_type = #tpu.core_type<tc>, window_params = [{transform_indices = @transform_0, window_bounds = array<i64: 1, 8, 512>}, {pipeline_mode = #tpu.pipeline_mode<synchronous>, transform_indices = @transform_1, window_bounds = array<i64: 4, 9, 8, 8>}, {pipeline_mode = #tpu.pipeline_mode<synchronous>, transform_indices = @transform_2, window_bounds = array<i64: 4, 8, 1>}, {pipeline_mode = #tpu.pipeline_mode<synchronous>, transform_indices = @transform_3, window_bounds = array<i64: 4, 8, 1>}, {pipeline_mode = #tpu.pipeline_mode<synchronous>, transform_indices = @transform_4, window_bounds = array<i64: 8, 512>}, {pipeline_mode = #tpu.pipeline_mode<synchronous>, transform_indices = @transform_5, window_bounds = array<i64: 8, 8>}, {pipeline_mode = #tpu.pipeline_mode<synchronous>, transform_indices = @transform_6, window_bounds = array<i64: 8, 1>}, {transform_indices = @transform_7, window_bounds = array<i64: 1, 8, 2>}]} {
    %c0 = arith.constant 0 : index
    %c0_0 = arith.constant 0 : index
    %c0_1 = arith.constant 0 : index
    %0 = vector.load %arg1[%c0, %c0_0, %c0_1] : memref<1x8x512xf32, #tpu.memory_space<vmem>>, vector<1x8x512xf32>
    %1 = vector.shape_cast %0 : vector<1x8x512xf32> to vector<8x512xf32>
    %c0_2 = arith.constant 0 : index
    %c0_3 = arith.constant 0 : index
    %2 = vector.load %arg5[%c0_2, %c0_3] : memref<8x512xf32, #tpu.memory_space<vmem>>, vector<8x512xf32>
    %c17_i32 = arith.constant 17 : i32
    %3 = tpu.dynamic_rotate %1 by %c17_i32 dim 1 : vector<8x512xf32>, i32 -> vector<8x512xf32>
    %4 = vector.extract_strided_slice %2 {offsets = [0, 0], sizes = [1, 512], strides = [1, 1]} : vector<8x512xf32> to vector<1x512xf32>
    %5 = vector.broadcast %4 : vector<1x512xf32> to vector<8x512xf32>
    %6 = arith.mulf %3, %5 : vector<8x512xf32>
    %c0_4 = arith.constant 0 : index
    %c0_5 = arith.constant 0 : index
    %c0_6 = arith.constant 0 : index
    %c0_7 = arith.constant 0 : index
    %7 = vector.load %arg2[%c0_4, %c0_5, %c0_6, %c0_7] : memref<4x9x8x8xbf16, #tpu.memory_space<vmem>>, vector<1x1x8x8xbf16>
    %8 = vector.shape_cast %7 : vector<1x1x8x8xbf16> to vector<8x8xbf16>
    %9 = arith.truncf %6 : vector<8x512xf32> to vector<8x512xbf16>
    %cst = arith.constant dense<0.000000e+00> : vector<8x512xf32>
    %10 = tpu.matmul %8, %9, %cst {dimension_numbers = #tpu.dot_dimension_numbers<[1], [0], [0], [1], [0, 0, 1, 1], [], []>} : vector<8x8xbf16>, vector<8x512xbf16>, vector<8x512xf32> -> vector<8x512xf32>
    %c16_i32 = arith.constant 16 : i32
    %11 = tpu.dynamic_rotate %1 by %c16_i32 dim 1 : vector<8x512xf32>, i32 -> vector<8x512xf32>
    %12 = vector.extract_strided_slice %2 {offsets = [1, 0], sizes = [1, 512], strides = [1, 1]} : vector<8x512xf32> to vector<1x512xf32>
    %13 = vector.broadcast %12 : vector<1x512xf32> to vector<8x512xf32>
    %14 = arith.mulf %11, %13 : vector<8x512xf32>
    %c0_8 = arith.constant 0 : index
    %c1 = arith.constant 1 : index
    %c0_9 = arith.constant 0 : index
    %c0_10 = arith.constant 0 : index
    %15 = vector.load %arg2[%c0_8, %c1, %c0_9, %c0_10] : memref<4x9x8x8xbf16, #tpu.memory_space<vmem>>, vector<1x1x8x8xbf16>
    %16 = vector.shape_cast %15 : vector<1x1x8x8xbf16> to vector<8x8xbf16>
    %17 = arith.truncf %14 : vector<8x512xf32> to vector<8x512xbf16>
    %cst_11 = arith.constant dense<0.000000e+00> : vector<8x512xf32>
    %18 = tpu.matmul %16, %17, %cst_11 {dimension_numbers = #tpu.dot_dimension_numbers<[1], [0], [0], [1], [0, 0, 1, 1], [], []>} : vector<8x8xbf16>, vector<8x512xbf16>, vector<8x512xf32> -> vector<8x512xf32>
    %19 = arith.addf %10, %18 : vector<8x512xf32>
    %c15_i32 = arith.constant 15 : i32
    %20 = tpu.dynamic_rotate %1 by %c15_i32 dim 1 : vector<8x512xf32>, i32 -> vector<8x512xf32>
    %21 = vector.extract_strided_slice %2 {offsets = [2, 0], sizes = [1, 512], strides = [1, 1]} : vector<8x512xf32> to vector<1x512xf32>
    %22 = vector.broadcast %21 : vector<1x512xf32> to vector<8x512xf32>
    %23 = arith.mulf %20, %22 : vector<8x512xf32>
    %c0_12 = arith.constant 0 : index
    %c2 = arith.constant 2 : index
    %c0_13 = arith.constant 0 : index
    %c0_14 = arith.constant 0 : index
    %24 = vector.load %arg2[%c0_12, %c2, %c0_13, %c0_14] : memref<4x9x8x8xbf16, #tpu.memory_space<vmem>>, vector<1x1x8x8xbf16>
    %25 = vector.shape_cast %24 : vector<1x1x8x8xbf16> to vector<8x8xbf16>
    %26 = arith.truncf %23 : vector<8x512xf32> to vector<8x512xbf16>
    %cst_15 = arith.constant dense<0.000000e+00> : vector<8x512xf32>
    %27 = tpu.matmul %25, %26, %cst_15 {dimension_numbers = #tpu.dot_dimension_numbers<[1], [0], [0], [1], [0, 0, 1, 1], [], []>} : vector<8x8xbf16>, vector<8x512xbf16>, vector<8x512xf32> -> vector<8x512xf32>
    %28 = arith.addf %19, %27 : vector<8x512xf32>
    %c1_i32 = arith.constant 1 : i32
    %29 = tpu.dynamic_rotate %1 by %c1_i32 dim 1 : vector<8x512xf32>, i32 -> vector<8x512xf32>
    %30 = vector.extract_strided_slice %2 {offsets = [3, 0], sizes = [1, 512], strides = [1, 1]} : vector<8x512xf32> to vector<1x512xf32>
    %31 = vector.broadcast %30 : vector<1x512xf32> to vector<8x512xf32>
    %32 = arith.mulf %29, %31 : vector<8x512xf32>
    %c0_16 = arith.constant 0 : index
    %c3 = arith.constant 3 : index
    %c0_17 = arith.constant 0 : index
    %c0_18 = arith.constant 0 : index
    %33 = vector.load %arg2[%c0_16, %c3, %c0_17, %c0_18] : memref<4x9x8x8xbf16, #tpu.memory_space<vmem>>, vector<1x1x8x8xbf16>
    %34 = vector.shape_cast %33 : vector<1x1x8x8xbf16> to vector<8x8xbf16>
    %35 = arith.truncf %32 : vector<8x512xf32> to vector<8x512xbf16>
    %cst_19 = arith.constant dense<0.000000e+00> : vector<8x512xf32>
    %36 = tpu.matmul %34, %35, %cst_19 {dimension_numbers = #tpu.dot_dimension_numbers<[1], [0], [0], [1], [0, 0, 1, 1], [], []>} : vector<8x8xbf16>, vector<8x512xbf16>, vector<8x512xf32> -> vector<8x512xf32>
    %37 = arith.addf %28, %36 : vector<8x512xf32>
    %c0_20 = arith.constant 0 : index
    %c4 = arith.constant 4 : index
    %c0_21 = arith.constant 0 : index
    %c0_22 = arith.constant 0 : index
    %38 = vector.load %arg2[%c0_20, %c4, %c0_21, %c0_22] : memref<4x9x8x8xbf16, #tpu.memory_space<vmem>>, vector<1x1x8x8xbf16>
    %39 = vector.shape_cast %38 : vector<1x1x8x8xbf16> to vector<8x8xbf16>
    %40 = arith.truncf %1 : vector<8x512xf32> to vector<8x512xbf16>
    %cst_23 = arith.constant dense<0.000000e+00> : vector<8x512xf32>
    %41 = tpu.matmul %39, %40, %cst_23 {dimension_numbers = #tpu.dot_dimension_numbers<[1], [0], [0], [1], [0, 0, 1, 1], [], []>} : vector<8x8xbf16>, vector<8x512xbf16>, vector<8x512xf32> -> vector<8x512xf32>
    %42 = arith.addf %37, %41 : vector<8x512xf32>
    %c511_i32 = arith.constant 511 : i32
    %43 = tpu.dynamic_rotate %1 by %c511_i32 dim 1 : vector<8x512xf32>, i32 -> vector<8x512xf32>
    %44 = vector.extract_strided_slice %2 {offsets = [4, 0], sizes = [1, 512], strides = [1, 1]} : vector<8x512xf32> to vector<1x512xf32>
    %45 = vector.broadcast %44 : vector<1x512xf32> to vector<8x512xf32>
    %46 = arith.mulf %43, %45 : vector<8x512xf32>
    %c0_24 = arith.constant 0 : index
    %c5 = arith.constant 5 : index
    %c0_25 = arith.constant 0 : index
    %c0_26 = arith.constant 0 : index
    %47 = vector.load %arg2[%c0_24, %c5, %c0_25, %c0_26] : memref<4x9x8x8xbf16, #tpu.memory_space<vmem>>, vector<1x1x8x8xbf16>
    %48 = vector.shape_cast %47 : vector<1x1x8x8xbf16> to vector<8x8xbf16>
    %49 = arith.truncf %46 : vector<8x512xf32> to vector<8x512xbf16>
    %cst_27 = arith.constant dense<0.000000e+00> : vector<8x512xf32>
    %50 = tpu.matmul %48, %49, %cst_27 {dimension_numbers = #tpu.dot_dimension_numbers<[1], [0], [0], [1], [0, 0, 1, 1], [], []>} : vector<8x8xbf16>, vector<8x512xbf16>, vector<8x512xf32> -> vector<8x512xf32>
    %51 = arith.addf %42, %50 : vector<8x512xf32>
    %c497_i32 = arith.constant 497 : i32
    %52 = tpu.dynamic_rotate %1 by %c497_i32 dim 1 : vector<8x512xf32>, i32 -> vector<8x512xf32>
    %53 = vector.extract_strided_slice %2 {offsets = [5, 0], sizes = [1, 512], strides = [1, 1]} : vector<8x512xf32> to vector<1x512xf32>
    %54 = vector.broadcast %53 : vector<1x512xf32> to vector<8x512xf32>
    %55 = arith.mulf %52, %54 : vector<8x512xf32>
    %c0_28 = arith.constant 0 : index
    %c6 = arith.constant 6 : index
    %c0_29 = arith.constant 0 : index
    %c0_30 = arith.constant 0 : index
    %56 = vector.load %arg2[%c0_28, %c6, %c0_29, %c0_30] : memref<4x9x8x8xbf16, #tpu.memory_space<vmem>>, vector<1x1x8x8xbf16>
    %57 = vector.shape_cast %56 : vector<1x1x8x8xbf16> to vector<8x8xbf16>
    %58 = arith.truncf %55 : vector<8x512xf32> to vector<8x512xbf16>
    %cst_31 = arith.constant dense<0.000000e+00> : vector<8x512xf32>
    %59 = tpu.matmul %57, %58, %cst_31 {dimension_numbers = #tpu.dot_dimension_numbers<[1], [0], [0], [1], [0, 0, 1, 1], [], []>} : vector<8x8xbf16>, vector<8x512xbf16>, vector<8x512xf32> -> vector<8x512xf32>
    %60 = arith.addf %51, %59 : vector<8x512xf32>
    %c496_i32 = arith.constant 496 : i32
    %61 = tpu.dynamic_rotate %1 by %c496_i32 dim 1 : vector<8x512xf32>, i32 -> vector<8x512xf32>
    %62 = vector.extract_strided_slice %2 {offsets = [6, 0], sizes = [1, 512], strides = [1, 1]} : vector<8x512xf32> to vector<1x512xf32>
    %63 = vector.broadcast %62 : vector<1x512xf32> to vector<8x512xf32>
    %64 = arith.mulf %61, %63 : vector<8x512xf32>
    %c0_32 = arith.constant 0 : index
    %c7 = arith.constant 7 : index
    %c0_33 = arith.constant 0 : index
    %c0_34 = arith.constant 0 : index
    %65 = vector.load %arg2[%c0_32, %c7, %c0_33, %c0_34] : memref<4x9x8x8xbf16, #tpu.memory_space<vmem>>, vector<1x1x8x8xbf16>
    %66 = vector.shape_cast %65 : vector<1x1x8x8xbf16> to vector<8x8xbf16>
    %67 = arith.truncf %64 : vector<8x512xf32> to vector<8x512xbf16>
    %cst_35 = arith.constant dense<0.000000e+00> : vector<8x512xf32>
    %68 = tpu.matmul %66, %67, %cst_35 {dimension_numbers = #tpu.dot_dimension_numbers<[1], [0], [0], [1], [0, 0, 1, 1], [], []>} : vector<8x8xbf16>, vector<8x512xbf16>, vector<8x512xf32> -> vector<8x512xf32>
    %69 = arith.addf %60, %68 : vector<8x512xf32>
    %c495_i32 = arith.constant 495 : i32
    %70 = tpu.dynamic_rotate %1 by %c495_i32 dim 1 : vector<8x512xf32>, i32 -> vector<8x512xf32>
    %71 = vector.extract_strided_slice %2 {offsets = [7, 0], sizes = [1, 512], strides = [1, 1]} : vector<8x512xf32> to vector<1x512xf32>
    %72 = vector.broadcast %71 : vector<1x512xf32> to vector<8x512xf32>
    %73 = arith.mulf %70, %72 : vector<8x512xf32>
    %c0_36 = arith.constant 0 : index
    %c8 = arith.constant 8 : index
    %c0_37 = arith.constant 0 : index
    %c0_38 = arith.constant 0 : index
    %74 = vector.load %arg2[%c0_36, %c8, %c0_37, %c0_38] : memref<4x9x8x8xbf16, #tpu.memory_space<vmem>>, vector<1x1x8x8xbf16>
    %75 = vector.shape_cast %74 : vector<1x1x8x8xbf16> to vector<8x8xbf16>
    %76 = arith.truncf %73 : vector<8x512xf32> to vector<8x512xbf16>
    %cst_39 = arith.constant dense<0.000000e+00> : vector<8x512xf32>
    %77 = tpu.matmul %75, %76, %cst_39 {dimension_numbers = #tpu.dot_dimension_numbers<[1], [0], [0], [1], [0, 0, 1, 1], [], []>} : vector<8x8xbf16>, vector<8x512xbf16>, vector<8x512xf32> -> vector<8x512xf32>
    %78 = arith.addf %69, %77 : vector<8x512xf32>
    %c0_40 = arith.constant 0 : index
    %c0_41 = arith.constant 0 : index
    %c0_42 = arith.constant 0 : index
    %79 = vector.load %arg3[%c0_40, %c0_41, %c0_42] : memref<4x8x1xf32, #tpu.memory_space<vmem>>, vector<1x8x1xf32>
    %80 = vector.shape_cast %79 : vector<1x8x1xf32> to vector<8x1xf32>
    %81 = vector.broadcast %80 : vector<8x1xf32> to vector<8x512xf32>
    %82 = arith.mulf %78, %81 : vector<8x512xf32>
    %c0_43 = arith.constant 0 : index
    %c0_44 = arith.constant 0 : index
    %c0_45 = arith.constant 0 : index
    %83 = vector.load %arg4[%c0_43, %c0_44, %c0_45] : memref<4x8x1xf32, #tpu.memory_space<vmem>>, vector<1x8x1xf32>
    %84 = vector.shape_cast %83 : vector<1x8x1xf32> to vector<8x1xf32>
    %85 = vector.broadcast %84 : vector<8x1xf32> to vector<8x512xf32>
    %86 = arith.addf %82, %85 : vector<8x512xf32>
    %cst_46 = arith.constant 0.000000e+00 : f32
    %87 = vector.broadcast %cst_46 : f32 to vector<8x512xf32>
    %88 = arith.maximumf %86, %87 : vector<8x512xf32>
    %c17_i32_47 = arith.constant 17 : i32
    %89 = tpu.dynamic_rotate %88 by %c17_i32_47 dim 1 : vector<8x512xf32>, i32 -> vector<8x512xf32>
    %90 = vector.extract_strided_slice %2 {offsets = [0, 0], sizes = [1, 512], strides = [1, 1]} : vector<8x512xf32> to vector<1x512xf32>
    %91 = vector.broadcast %90 : vector<1x512xf32> to vector<8x512xf32>
    %92 = arith.mulf %89, %91 : vector<8x512xf32>
    %c1_48 = arith.constant 1 : index
    %c0_49 = arith.constant 0 : index
    %c0_50 = arith.constant 0 : index
    %c0_51 = arith.constant 0 : index
    %93 = vector.load %arg2[%c1_48, %c0_49, %c0_50, %c0_51] : memref<4x9x8x8xbf16, #tpu.memory_space<vmem>>, vector<1x1x8x8xbf16>
    %94 = vector.shape_cast %93 : vector<1x1x8x8xbf16> to vector<8x8xbf16>
    %95 = arith.truncf %92 : vector<8x512xf32> to vector<8x512xbf16>
    %cst_52 = arith.constant dense<0.000000e+00> : vector<8x512xf32>
    %96 = tpu.matmul %94, %95, %cst_52 {dimension_numbers = #tpu.dot_dimension_numbers<[1], [0], [0], [1], [0, 0, 1, 1], [], []>} : vector<8x8xbf16>, vector<8x512xbf16>, vector<8x512xf32> -> vector<8x512xf32>
    %c16_i32_53 = arith.constant 16 : i32
    %97 = tpu.dynamic_rotate %88 by %c16_i32_53 dim 1 : vector<8x512xf32>, i32 -> vector<8x512xf32>
    %98 = vector.extract_strided_slice %2 {offsets = [1, 0], sizes = [1, 512], strides = [1, 1]} : vector<8x512xf32> to vector<1x512xf32>
    %99 = vector.broadcast %98 : vector<1x512xf32> to vector<8x512xf32>
    %100 = arith.mulf %97, %99 : vector<8x512xf32>
    %c1_54 = arith.constant 1 : index
    %c1_55 = arith.constant 1 : index
    %c0_56 = arith.constant 0 : index
    %c0_57 = arith.constant 0 : index
    %101 = vector.load %arg2[%c1_54, %c1_55, %c0_56, %c0_57] : memref<4x9x8x8xbf16, #tpu.memory_space<vmem>>, vector<1x1x8x8xbf16>
    %102 = vector.shape_cast %101 : vector<1x1x8x8xbf16> to vector<8x8xbf16>
    %103 = arith.truncf %100 : vector<8x512xf32> to vector<8x512xbf16>
    %cst_58 = arith.constant dense<0.000000e+00> : vector<8x512xf32>
    %104 = tpu.matmul %102, %103, %cst_58 {dimension_numbers = #tpu.dot_dimension_numbers<[1], [0], [0], [1], [0, 0, 1, 1], [], []>} : vector<8x8xbf16>, vector<8x512xbf16>, vector<8x512xf32> -> vector<8x512xf32>
    %105 = arith.addf %96, %104 : vector<8x512xf32>
    %c15_i32_59 = arith.constant 15 : i32
    %106 = tpu.dynamic_rotate %88 by %c15_i32_59 dim 1 : vector<8x512xf32>, i32 -> vector<8x512xf32>
    %107 = vector.extract_strided_slice %2 {offsets = [2, 0], sizes = [1, 512], strides = [1, 1]} : vector<8x512xf32> to vector<1x512xf32>
    %108 = vector.broadcast %107 : vector<1x512xf32> to vector<8x512xf32>
    %109 = arith.mulf %106, %108 : vector<8x512xf32>
    %c1_60 = arith.constant 1 : index
    %c2_61 = arith.constant 2 : index
    %c0_62 = arith.constant 0 : index
    %c0_63 = arith.constant 0 : index
    %110 = vector.load %arg2[%c1_60, %c2_61, %c0_62, %c0_63] : memref<4x9x8x8xbf16, #tpu.memory_space<vmem>>, vector<1x1x8x8xbf16>
    %111 = vector.shape_cast %110 : vector<1x1x8x8xbf16> to vector<8x8xbf16>
    %112 = arith.truncf %109 : vector<8x512xf32> to vector<8x512xbf16>
    %cst_64 = arith.constant dense<0.000000e+00> : vector<8x512xf32>
    %113 = tpu.matmul %111, %112, %cst_64 {dimension_numbers = #tpu.dot_dimension_numbers<[1], [0], [0], [1], [0, 0, 1, 1], [], []>} : vector<8x8xbf16>, vector<8x512xbf16>, vector<8x512xf32> -> vector<8x512xf32>
    %114 = arith.addf %105, %113 : vector<8x512xf32>
    %c1_i32_65 = arith.constant 1 : i32
    %115 = tpu.dynamic_rotate %88 by %c1_i32_65 dim 1 : vector<8x512xf32>, i32 -> vector<8x512xf32>
    %116 = vector.extract_strided_slice %2 {offsets = [3, 0], sizes = [1, 512], strides = [1, 1]} : vector<8x512xf32> to vector<1x512xf32>
    %117 = vector.broadcast %116 : vector<1x512xf32> to vector<8x512xf32>
    %118 = arith.mulf %115, %117 : vector<8x512xf32>
    %c1_66 = arith.constant 1 : index
    %c3_67 = arith.constant 3 : index
    %c0_68 = arith.constant 0 : index
    %c0_69 = arith.constant 0 : index
    %119 = vector.load %arg2[%c1_66, %c3_67, %c0_68, %c0_69] : memref<4x9x8x8xbf16, #tpu.memory_space<vmem>>, vector<1x1x8x8xbf16>
    %120 = vector.shape_cast %119 : vector<1x1x8x8xbf16> to vector<8x8xbf16>
    %121 = arith.truncf %118 : vector<8x512xf32> to vector<8x512xbf16>
    %cst_70 = arith.constant dense<0.000000e+00> : vector<8x512xf32>
    %122 = tpu.matmul %120, %121, %cst_70 {dimension_numbers = #tpu.dot_dimension_numbers<[1], [0], [0], [1], [0, 0, 1, 1], [], []>} : vector<8x8xbf16>, vector<8x512xbf16>, vector<8x512xf32> -> vector<8x512xf32>
    %123 = arith.addf %114, %122 : vector<8x512xf32>
    %c1_71 = arith.constant 1 : index
    %c4_72 = arith.constant 4 : index
    %c0_73 = arith.constant 0 : index
    %c0_74 = arith.constant 0 : index
    %124 = vector.load %arg2[%c1_71, %c4_72, %c0_73, %c0_74] : memref<4x9x8x8xbf16, #tpu.memory_space<vmem>>, vector<1x1x8x8xbf16>
    %125 = vector.shape_cast %124 : vector<1x1x8x8xbf16> to vector<8x8xbf16>
    %126 = arith.truncf %88 : vector<8x512xf32> to vector<8x512xbf16>
    %cst_75 = arith.constant dense<0.000000e+00> : vector<8x512xf32>
    %127 = tpu.matmul %125, %126, %cst_75 {dimension_numbers = #tpu.dot_dimension_numbers<[1], [0], [0], [1], [0, 0, 1, 1], [], []>} : vector<8x8xbf16>, vector<8x512xbf16>, vector<8x512xf32> -> vector<8x512xf32>
    %128 = arith.addf %123, %127 : vector<8x512xf32>
    %c511_i32_76 = arith.constant 511 : i32
    %129 = tpu.dynamic_rotate %88 by %c511_i32_76 dim 1 : vector<8x512xf32>, i32 -> vector<8x512xf32>
    %130 = vector.extract_strided_slice %2 {offsets = [4, 0], sizes = [1, 512], strides = [1, 1]} : vector<8x512xf32> to vector<1x512xf32>
    %131 = vector.broadcast %130 : vector<1x512xf32> to vector<8x512xf32>
    %132 = arith.mulf %129, %131 : vector<8x512xf32>
    %c1_77 = arith.constant 1 : index
    %c5_78 = arith.constant 5 : index
    %c0_79 = arith.constant 0 : index
    %c0_80 = arith.constant 0 : index
    %133 = vector.load %arg2[%c1_77, %c5_78, %c0_79, %c0_80] : memref<4x9x8x8xbf16, #tpu.memory_space<vmem>>, vector<1x1x8x8xbf16>
    %134 = vector.shape_cast %133 : vector<1x1x8x8xbf16> to vector<8x8xbf16>
    %135 = arith.truncf %132 : vector<8x512xf32> to vector<8x512xbf16>
    %cst_81 = arith.constant dense<0.000000e+00> : vector<8x512xf32>
    %136 = tpu.matmul %134, %135, %cst_81 {dimension_numbers = #tpu.dot_dimension_numbers<[1], [0], [0], [1], [0, 0, 1, 1], [], []>} : vector<8x8xbf16>, vector<8x512xbf16>, vector<8x512xf32> -> vector<8x512xf32>
    %137 = arith.addf %128, %136 : vector<8x512xf32>
    %c497_i32_82 = arith.constant 497 : i32
    %138 = tpu.dynamic_rotate %88 by %c497_i32_82 dim 1 : vector<8x512xf32>, i32 -> vector<8x512xf32>
    %139 = vector.extract_strided_slice %2 {offsets = [5, 0], sizes = [1, 512], strides = [1, 1]} : vector<8x512xf32> to vector<1x512xf32>
    %140 = vector.broadcast %139 : vector<1x512xf32> to vector<8x512xf32>
    %141 = arith.mulf %138, %140 : vector<8x512xf32>
    %c1_83 = arith.constant 1 : index
    %c6_84 = arith.constant 6 : index
    %c0_85 = arith.constant 0 : index
    %c0_86 = arith.constant 0 : index
    %142 = vector.load %arg2[%c1_83, %c6_84, %c0_85, %c0_86] : memref<4x9x8x8xbf16, #tpu.memory_space<vmem>>, vector<1x1x8x8xbf16>
    %143 = vector.shape_cast %142 : vector<1x1x8x8xbf16> to vector<8x8xbf16>
    %144 = arith.truncf %141 : vector<8x512xf32> to vector<8x512xbf16>
    %cst_87 = arith.constant dense<0.000000e+00> : vector<8x512xf32>
    %145 = tpu.matmul %143, %144, %cst_87 {dimension_numbers = #tpu.dot_dimension_numbers<[1], [0], [0], [1], [0, 0, 1, 1], [], []>} : vector<8x8xbf16>, vector<8x512xbf16>, vector<8x512xf32> -> vector<8x512xf32>
    %146 = arith.addf %137, %145 : vector<8x512xf32>
    %c496_i32_88 = arith.constant 496 : i32
    %147 = tpu.dynamic_rotate %88 by %c496_i32_88 dim 1 : vector<8x512xf32>, i32 -> vector<8x512xf32>
    %148 = vector.extract_strided_slice %2 {offsets = [6, 0], sizes = [1, 512], strides = [1, 1]} : vector<8x512xf32> to vector<1x512xf32>
    %149 = vector.broadcast %148 : vector<1x512xf32> to vector<8x512xf32>
    %150 = arith.mulf %147, %149 : vector<8x512xf32>
    %c1_89 = arith.constant 1 : index
    %c7_90 = arith.constant 7 : index
    %c0_91 = arith.constant 0 : index
    %c0_92 = arith.constant 0 : index
    %151 = vector.load %arg2[%c1_89, %c7_90, %c0_91, %c0_92] : memref<4x9x8x8xbf16, #tpu.memory_space<vmem>>, vector<1x1x8x8xbf16>
    %152 = vector.shape_cast %151 : vector<1x1x8x8xbf16> to vector<8x8xbf16>
    %153 = arith.truncf %150 : vector<8x512xf32> to vector<8x512xbf16>
    %cst_93 = arith.constant dense<0.000000e+00> : vector<8x512xf32>
    %154 = tpu.matmul %152, %153, %cst_93 {dimension_numbers = #tpu.dot_dimension_numbers<[1], [0], [0], [1], [0, 0, 1, 1], [], []>} : vector<8x8xbf16>, vector<8x512xbf16>, vector<8x512xf32> -> vector<8x512xf32>
    %155 = arith.addf %146, %154 : vector<8x512xf32>
    %c495_i32_94 = arith.constant 495 : i32
    %156 = tpu.dynamic_rotate %88 by %c495_i32_94 dim 1 : vector<8x512xf32>, i32 -> vector<8x512xf32>
    %157 = vector.extract_strided_slice %2 {offsets = [7, 0], sizes = [1, 512], strides = [1, 1]} : vector<8x512xf32> to vector<1x512xf32>
    %158 = vector.broadcast %157 : vector<1x512xf32> to vector<8x512xf32>
    %159 = arith.mulf %156, %158 : vector<8x512xf32>
    %c1_95 = arith.constant 1 : index
    %c8_96 = arith.constant 8 : index
    %c0_97 = arith.constant 0 : index
    %c0_98 = arith.constant 0 : index
    %160 = vector.load %arg2[%c1_95, %c8_96, %c0_97, %c0_98] : memref<4x9x8x8xbf16, #tpu.memory_space<vmem>>, vector<1x1x8x8xbf16>
    %161 = vector.shape_cast %160 : vector<1x1x8x8xbf16> to vector<8x8xbf16>
    %162 = arith.truncf %159 : vector<8x512xf32> to vector<8x512xbf16>
    %cst_99 = arith.constant dense<0.000000e+00> : vector<8x512xf32>
    %163 = tpu.matmul %161, %162, %cst_99 {dimension_numbers = #tpu.dot_dimension_numbers<[1], [0], [0], [1], [0, 0, 1, 1], [], []>} : vector<8x8xbf16>, vector<8x512xbf16>, vector<8x512xf32> -> vector<8x512xf32>
    %164 = arith.addf %155, %163 : vector<8x512xf32>
    %c1_100 = arith.constant 1 : index
    %c0_101 = arith.constant 0 : index
    %c0_102 = arith.constant 0 : index
    %165 = vector.load %arg3[%c1_100, %c0_101, %c0_102] : memref<4x8x1xf32, #tpu.memory_space<vmem>>, vector<1x8x1xf32>
    %166 = vector.shape_cast %165 : vector<1x8x1xf32> to vector<8x1xf32>
    %167 = vector.broadcast %166 : vector<8x1xf32> to vector<8x512xf32>
    %168 = arith.mulf %164, %167 : vector<8x512xf32>
    %c1_103 = arith.constant 1 : index
    %c0_104 = arith.constant 0 : index
    %c0_105 = arith.constant 0 : index
    %169 = vector.load %arg4[%c1_103, %c0_104, %c0_105] : memref<4x8x1xf32, #tpu.memory_space<vmem>>, vector<1x8x1xf32>
    %170 = vector.shape_cast %169 : vector<1x8x1xf32> to vector<8x1xf32>
    %171 = vector.broadcast %170 : vector<8x1xf32> to vector<8x512xf32>
    %172 = arith.addf %168, %171 : vector<8x512xf32>
    %cst_106 = arith.constant 0.000000e+00 : f32
    %173 = vector.broadcast %cst_106 : f32 to vector<8x512xf32>
    %174 = arith.maximumf %172, %173 : vector<8x512xf32>
    %c17_i32_107 = arith.constant 17 : i32
    %175 = tpu.dynamic_rotate %174 by %c17_i32_107 dim 1 : vector<8x512xf32>, i32 -> vector<8x512xf32>
    %176 = vector.extract_strided_slice %2 {offsets = [0, 0], sizes = [1, 512], strides = [1, 1]} : vector<8x512xf32> to vector<1x512xf32>
    %177 = vector.broadcast %176 : vector<1x512xf32> to vector<8x512xf32>
    %178 = arith.mulf %175, %177 : vector<8x512xf32>
    %c2_108 = arith.constant 2 : index
    %c0_109 = arith.constant 0 : index
    %c0_110 = arith.constant 0 : index
    %c0_111 = arith.constant 0 : index
    %179 = vector.load %arg2[%c2_108, %c0_109, %c0_110, %c0_111] : memref<4x9x8x8xbf16, #tpu.memory_space<vmem>>, vector<1x1x8x8xbf16>
    %180 = vector.shape_cast %179 : vector<1x1x8x8xbf16> to vector<8x8xbf16>
    %181 = arith.truncf %178 : vector<8x512xf32> to vector<8x512xbf16>
    %cst_112 = arith.constant dense<0.000000e+00> : vector<8x512xf32>
    %182 = tpu.matmul %180, %181, %cst_112 {dimension_numbers = #tpu.dot_dimension_numbers<[1], [0], [0], [1], [0, 0, 1, 1], [], []>} : vector<8x8xbf16>, vector<8x512xbf16>, vector<8x512xf32> -> vector<8x512xf32>
    %c16_i32_113 = arith.constant 16 : i32
    %183 = tpu.dynamic_rotate %174 by %c16_i32_113 dim 1 : vector<8x512xf32>, i32 -> vector<8x512xf32>
    %184 = vector.extract_strided_slice %2 {offsets = [1, 0], sizes = [1, 512], strides = [1, 1]} : vector<8x512xf32> to vector<1x512xf32>
    %185 = vector.broadcast %184 : vector<1x512xf32> to vector<8x512xf32>
    %186 = arith.mulf %183, %185 : vector<8x512xf32>
    %c2_114 = arith.constant 2 : index
    %c1_115 = arith.constant 1 : index
    %c0_116 = arith.constant 0 : index
    %c0_117 = arith.constant 0 : index
    %187 = vector.load %arg2[%c2_114, %c1_115, %c0_116, %c0_117] : memref<4x9x8x8xbf16, #tpu.memory_space<vmem>>, vector<1x1x8x8xbf16>
    %188 = vector.shape_cast %187 : vector<1x1x8x8xbf16> to vector<8x8xbf16>
    %189 = arith.truncf %186 : vector<8x512xf32> to vector<8x512xbf16>
    %cst_118 = arith.constant dense<0.000000e+00> : vector<8x512xf32>
    %190 = tpu.matmul %188, %189, %cst_118 {dimension_numbers = #tpu.dot_dimension_numbers<[1], [0], [0], [1], [0, 0, 1, 1], [], []>} : vector<8x8xbf16>, vector<8x512xbf16>, vector<8x512xf32> -> vector<8x512xf32>
    %191 = arith.addf %182, %190 : vector<8x512xf32>
    %c15_i32_119 = arith.constant 15 : i32
    %192 = tpu.dynamic_rotate %174 by %c15_i32_119 dim 1 : vector<8x512xf32>, i32 -> vector<8x512xf32>
    %193 = vector.extract_strided_slice %2 {offsets = [2, 0], sizes = [1, 512], strides = [1, 1]} : vector<8x512xf32> to vector<1x512xf32>
    %194 = vector.broadcast %193 : vector<1x512xf32> to vector<8x512xf32>
    %195 = arith.mulf %192, %194 : vector<8x512xf32>
    %c2_120 = arith.constant 2 : index
    %c2_121 = arith.constant 2 : index
    %c0_122 = arith.constant 0 : index
    %c0_123 = arith.constant 0 : index
    %196 = vector.load %arg2[%c2_120, %c2_121, %c0_122, %c0_123] : memref<4x9x8x8xbf16, #tpu.memory_space<vmem>>, vector<1x1x8x8xbf16>
    %197 = vector.shape_cast %196 : vector<1x1x8x8xbf16> to vector<8x8xbf16>
    %198 = arith.truncf %195 : vector<8x512xf32> to vector<8x512xbf16>
    %cst_124 = arith.constant dense<0.000000e+00> : vector<8x512xf32>
    %199 = tpu.matmul %197, %198, %cst_124 {dimension_numbers = #tpu.dot_dimension_numbers<[1], [0], [0], [1], [0, 0, 1, 1], [], []>} : vector<8x8xbf16>, vector<8x512xbf16>, vector<8x512xf32> -> vector<8x512xf32>
    %200 = arith.addf %191, %199 : vector<8x512xf32>
    %c1_i32_125 = arith.constant 1 : i32
    %201 = tpu.dynamic_rotate %174 by %c1_i32_125 dim 1 : vector<8x512xf32>, i32 -> vector<8x512xf32>
    %202 = vector.extract_strided_slice %2 {offsets = [3, 0], sizes = [1, 512], strides = [1, 1]} : vector<8x512xf32> to vector<1x512xf32>
    %203 = vector.broadcast %202 : vector<1x512xf32> to vector<8x512xf32>
    %204 = arith.mulf %201, %203 : vector<8x512xf32>
    %c2_126 = arith.constant 2 : index
    %c3_127 = arith.constant 3 : index
    %c0_128 = arith.constant 0 : index
    %c0_129 = arith.constant 0 : index
    %205 = vector.load %arg2[%c2_126, %c3_127, %c0_128, %c0_129] : memref<4x9x8x8xbf16, #tpu.memory_space<vmem>>, vector<1x1x8x8xbf16>
    %206 = vector.shape_cast %205 : vector<1x1x8x8xbf16> to vector<8x8xbf16>
    %207 = arith.truncf %204 : vector<8x512xf32> to vector<8x512xbf16>
    %cst_130 = arith.constant dense<0.000000e+00> : vector<8x512xf32>
    %208 = tpu.matmul %206, %207, %cst_130 {dimension_numbers = #tpu.dot_dimension_numbers<[1], [0], [0], [1], [0, 0, 1, 1], [], []>} : vector<8x8xbf16>, vector<8x512xbf16>, vector<8x512xf32> -> vector<8x512xf32>
    %209 = arith.addf %200, %208 : vector<8x512xf32>
    %c2_131 = arith.constant 2 : index
    %c4_132 = arith.constant 4 : index
    %c0_133 = arith.constant 0 : index
    %c0_134 = arith.constant 0 : index
    %210 = vector.load %arg2[%c2_131, %c4_132, %c0_133, %c0_134] : memref<4x9x8x8xbf16, #tpu.memory_space<vmem>>, vector<1x1x8x8xbf16>
    %211 = vector.shape_cast %210 : vector<1x1x8x8xbf16> to vector<8x8xbf16>
    %212 = arith.truncf %174 : vector<8x512xf32> to vector<8x512xbf16>
    %cst_135 = arith.constant dense<0.000000e+00> : vector<8x512xf32>
    %213 = tpu.matmul %211, %212, %cst_135 {dimension_numbers = #tpu.dot_dimension_numbers<[1], [0], [0], [1], [0, 0, 1, 1], [], []>} : vector<8x8xbf16>, vector<8x512xbf16>, vector<8x512xf32> -> vector<8x512xf32>
    %214 = arith.addf %209, %213 : vector<8x512xf32>
    %c511_i32_136 = arith.constant 511 : i32
    %215 = tpu.dynamic_rotate %174 by %c511_i32_136 dim 1 : vector<8x512xf32>, i32 -> vector<8x512xf32>
    %216 = vector.extract_strided_slice %2 {offsets = [4, 0], sizes = [1, 512], strides = [1, 1]} : vector<8x512xf32> to vector<1x512xf32>
    %217 = vector.broadcast %216 : vector<1x512xf32> to vector<8x512xf32>
    %218 = arith.mulf %215, %217 : vector<8x512xf32>
    %c2_137 = arith.constant 2 : index
    %c5_138 = arith.constant 5 : index
    %c0_139 = arith.constant 0 : index
    %c0_140 = arith.constant 0 : index
    %219 = vector.load %arg2[%c2_137, %c5_138, %c0_139, %c0_140] : memref<4x9x8x8xbf16, #tpu.memory_space<vmem>>, vector<1x1x8x8xbf16>
    %220 = vector.shape_cast %219 : vector<1x1x8x8xbf16> to vector<8x8xbf16>
    %221 = arith.truncf %218 : vector<8x512xf32> to vector<8x512xbf16>
    %cst_141 = arith.constant dense<0.000000e+00> : vector<8x512xf32>
    %222 = tpu.matmul %220, %221, %cst_141 {dimension_numbers = #tpu.dot_dimension_numbers<[1], [0], [0], [1], [0, 0, 1, 1], [], []>} : vector<8x8xbf16>, vector<8x512xbf16>, vector<8x512xf32> -> vector<8x512xf32>
    %223 = arith.addf %214, %222 : vector<8x512xf32>
    %c497_i32_142 = arith.constant 497 : i32
    %224 = tpu.dynamic_rotate %174 by %c497_i32_142 dim 1 : vector<8x512xf32>, i32 -> vector<8x512xf32>
    %225 = vector.extract_strided_slice %2 {offsets = [5, 0], sizes = [1, 512], strides = [1, 1]} : vector<8x512xf32> to vector<1x512xf32>
    %226 = vector.broadcast %225 : vector<1x512xf32> to vector<8x512xf32>
    %227 = arith.mulf %224, %226 : vector<8x512xf32>
    %c2_143 = arith.constant 2 : index
    %c6_144 = arith.constant 6 : index
    %c0_145 = arith.constant 0 : index
    %c0_146 = arith.constant 0 : index
    %228 = vector.load %arg2[%c2_143, %c6_144, %c0_145, %c0_146] : memref<4x9x8x8xbf16, #tpu.memory_space<vmem>>, vector<1x1x8x8xbf16>
    %229 = vector.shape_cast %228 : vector<1x1x8x8xbf16> to vector<8x8xbf16>
    %230 = arith.truncf %227 : vector<8x512xf32> to vector<8x512xbf16>
    %cst_147 = arith.constant dense<0.000000e+00> : vector<8x512xf32>
    %231 = tpu.matmul %229, %230, %cst_147 {dimension_numbers = #tpu.dot_dimension_numbers<[1], [0], [0], [1], [0, 0, 1, 1], [], []>} : vector<8x8xbf16>, vector<8x512xbf16>, vector<8x512xf32> -> vector<8x512xf32>
    %232 = arith.addf %223, %231 : vector<8x512xf32>
    %c496_i32_148 = arith.constant 496 : i32
    %233 = tpu.dynamic_rotate %174 by %c496_i32_148 dim 1 : vector<8x512xf32>, i32 -> vector<8x512xf32>
    %234 = vector.extract_strided_slice %2 {offsets = [6, 0], sizes = [1, 512], strides = [1, 1]} : vector<8x512xf32> to vector<1x512xf32>
    %235 = vector.broadcast %234 : vector<1x512xf32> to vector<8x512xf32>
    %236 = arith.mulf %233, %235 : vector<8x512xf32>
    %c2_149 = arith.constant 2 : index
    %c7_150 = arith.constant 7 : index
    %c0_151 = arith.constant 0 : index
    %c0_152 = arith.constant 0 : index
    %237 = vector.load %arg2[%c2_149, %c7_150, %c0_151, %c0_152] : memref<4x9x8x8xbf16, #tpu.memory_space<vmem>>, vector<1x1x8x8xbf16>
    %238 = vector.shape_cast %237 : vector<1x1x8x8xbf16> to vector<8x8xbf16>
    %239 = arith.truncf %236 : vector<8x512xf32> to vector<8x512xbf16>
    %cst_153 = arith.constant dense<0.000000e+00> : vector<8x512xf32>
    %240 = tpu.matmul %238, %239, %cst_153 {dimension_numbers = #tpu.dot_dimension_numbers<[1], [0], [0], [1], [0, 0, 1, 1], [], []>} : vector<8x8xbf16>, vector<8x512xbf16>, vector<8x512xf32> -> vector<8x512xf32>
    %241 = arith.addf %232, %240 : vector<8x512xf32>
    %c495_i32_154 = arith.constant 495 : i32
    %242 = tpu.dynamic_rotate %174 by %c495_i32_154 dim 1 : vector<8x512xf32>, i32 -> vector<8x512xf32>
    %243 = vector.extract_strided_slice %2 {offsets = [7, 0], sizes = [1, 512], strides = [1, 1]} : vector<8x512xf32> to vector<1x512xf32>
    %244 = vector.broadcast %243 : vector<1x512xf32> to vector<8x512xf32>
    %245 = arith.mulf %242, %244 : vector<8x512xf32>
    %c2_155 = arith.constant 2 : index
    %c8_156 = arith.constant 8 : index
    %c0_157 = arith.constant 0 : index
    %c0_158 = arith.constant 0 : index
    %246 = vector.load %arg2[%c2_155, %c8_156, %c0_157, %c0_158] : memref<4x9x8x8xbf16, #tpu.memory_space<vmem>>, vector<1x1x8x8xbf16>
    %247 = vector.shape_cast %246 : vector<1x1x8x8xbf16> to vector<8x8xbf16>
    %248 = arith.truncf %245 : vector<8x512xf32> to vector<8x512xbf16>
    %cst_159 = arith.constant dense<0.000000e+00> : vector<8x512xf32>
    %249 = tpu.matmul %247, %248, %cst_159 {dimension_numbers = #tpu.dot_dimension_numbers<[1], [0], [0], [1], [0, 0, 1, 1], [], []>} : vector<8x8xbf16>, vector<8x512xbf16>, vector<8x512xf32> -> vector<8x512xf32>
    %250 = arith.addf %241, %249 : vector<8x512xf32>
    %c2_160 = arith.constant 2 : index
    %c0_161 = arith.constant 0 : index
    %c0_162 = arith.constant 0 : index
    %251 = vector.load %arg3[%c2_160, %c0_161, %c0_162] : memref<4x8x1xf32, #tpu.memory_space<vmem>>, vector<1x8x1xf32>
    %252 = vector.shape_cast %251 : vector<1x8x1xf32> to vector<8x1xf32>
    %253 = vector.broadcast %252 : vector<8x1xf32> to vector<8x512xf32>
    %254 = arith.mulf %250, %253 : vector<8x512xf32>
    %c2_163 = arith.constant 2 : index
    %c0_164 = arith.constant 0 : index
    %c0_165 = arith.constant 0 : index
    %255 = vector.load %arg4[%c2_163, %c0_164, %c0_165] : memref<4x8x1xf32, #tpu.memory_space<vmem>>, vector<1x8x1xf32>
    %256 = vector.shape_cast %255 : vector<1x8x1xf32> to vector<8x1xf32>
    %257 = vector.broadcast %256 : vector<8x1xf32> to vector<8x512xf32>
    %258 = arith.addf %254, %257 : vector<8x512xf32>
    %cst_166 = arith.constant 0.000000e+00 : f32
    %259 = vector.broadcast %cst_166 : f32 to vector<8x512xf32>
    %260 = arith.maximumf %258, %259 : vector<8x512xf32>
    %c17_i32_167 = arith.constant 17 : i32
    %261 = tpu.dynamic_rotate %260 by %c17_i32_167 dim 1 : vector<8x512xf32>, i32 -> vector<8x512xf32>
    %262 = vector.extract_strided_slice %2 {offsets = [0, 0], sizes = [1, 512], strides = [1, 1]} : vector<8x512xf32> to vector<1x512xf32>
    %263 = vector.broadcast %262 : vector<1x512xf32> to vector<8x512xf32>
    %264 = arith.mulf %261, %263 : vector<8x512xf32>
    %c3_168 = arith.constant 3 : index
    %c0_169 = arith.constant 0 : index
    %c0_170 = arith.constant 0 : index
    %c0_171 = arith.constant 0 : index
    %265 = vector.load %arg2[%c3_168, %c0_169, %c0_170, %c0_171] : memref<4x9x8x8xbf16, #tpu.memory_space<vmem>>, vector<1x1x8x8xbf16>
    %266 = vector.shape_cast %265 : vector<1x1x8x8xbf16> to vector<8x8xbf16>
    %267 = arith.truncf %264 : vector<8x512xf32> to vector<8x512xbf16>
    %cst_172 = arith.constant dense<0.000000e+00> : vector<8x512xf32>
    %268 = tpu.matmul %266, %267, %cst_172 {dimension_numbers = #tpu.dot_dimension_numbers<[1], [0], [0], [1], [0, 0, 1, 1], [], []>} : vector<8x8xbf16>, vector<8x512xbf16>, vector<8x512xf32> -> vector<8x512xf32>
    %c16_i32_173 = arith.constant 16 : i32
    %269 = tpu.dynamic_rotate %260 by %c16_i32_173 dim 1 : vector<8x512xf32>, i32 -> vector<8x512xf32>
    %270 = vector.extract_strided_slice %2 {offsets = [1, 0], sizes = [1, 512], strides = [1, 1]} : vector<8x512xf32> to vector<1x512xf32>
    %271 = vector.broadcast %270 : vector<1x512xf32> to vector<8x512xf32>
    %272 = arith.mulf %269, %271 : vector<8x512xf32>
    %c3_174 = arith.constant 3 : index
    %c1_175 = arith.constant 1 : index
    %c0_176 = arith.constant 0 : index
    %c0_177 = arith.constant 0 : index
    %273 = vector.load %arg2[%c3_174, %c1_175, %c0_176, %c0_177] : memref<4x9x8x8xbf16, #tpu.memory_space<vmem>>, vector<1x1x8x8xbf16>
    %274 = vector.shape_cast %273 : vector<1x1x8x8xbf16> to vector<8x8xbf16>
    %275 = arith.truncf %272 : vector<8x512xf32> to vector<8x512xbf16>
    %cst_178 = arith.constant dense<0.000000e+00> : vector<8x512xf32>
    %276 = tpu.matmul %274, %275, %cst_178 {dimension_numbers = #tpu.dot_dimension_numbers<[1], [0], [0], [1], [0, 0, 1, 1], [], []>} : vector<8x8xbf16>, vector<8x512xbf16>, vector<8x512xf32> -> vector<8x512xf32>
    %277 = arith.addf %268, %276 : vector<8x512xf32>
    %c15_i32_179 = arith.constant 15 : i32
    %278 = tpu.dynamic_rotate %260 by %c15_i32_179 dim 1 : vector<8x512xf32>, i32 -> vector<8x512xf32>
    %279 = vector.extract_strided_slice %2 {offsets = [2, 0], sizes = [1, 512], strides = [1, 1]} : vector<8x512xf32> to vector<1x512xf32>
    %280 = vector.broadcast %279 : vector<1x512xf32> to vector<8x512xf32>
    %281 = arith.mulf %278, %280 : vector<8x512xf32>
    %c3_180 = arith.constant 3 : index
    %c2_181 = arith.constant 2 : index
    %c0_182 = arith.constant 0 : index
    %c0_183 = arith.constant 0 : index
    %282 = vector.load %arg2[%c3_180, %c2_181, %c0_182, %c0_183] : memref<4x9x8x8xbf16, #tpu.memory_space<vmem>>, vector<1x1x8x8xbf16>
    %283 = vector.shape_cast %282 : vector<1x1x8x8xbf16> to vector<8x8xbf16>
    %284 = arith.truncf %281 : vector<8x512xf32> to vector<8x512xbf16>
    %cst_184 = arith.constant dense<0.000000e+00> : vector<8x512xf32>
    %285 = tpu.matmul %283, %284, %cst_184 {dimension_numbers = #tpu.dot_dimension_numbers<[1], [0], [0], [1], [0, 0, 1, 1], [], []>} : vector<8x8xbf16>, vector<8x512xbf16>, vector<8x512xf32> -> vector<8x512xf32>
    %286 = arith.addf %277, %285 : vector<8x512xf32>
    %c1_i32_185 = arith.constant 1 : i32
    %287 = tpu.dynamic_rotate %260 by %c1_i32_185 dim 1 : vector<8x512xf32>, i32 -> vector<8x512xf32>
    %288 = vector.extract_strided_slice %2 {offsets = [3, 0], sizes = [1, 512], strides = [1, 1]} : vector<8x512xf32> to vector<1x512xf32>
    %289 = vector.broadcast %288 : vector<1x512xf32> to vector<8x512xf32>
    %290 = arith.mulf %287, %289 : vector<8x512xf32>
    %c3_186 = arith.constant 3 : index
    %c3_187 = arith.constant 3 : index
    %c0_188 = arith.constant 0 : index
    %c0_189 = arith.constant 0 : index
    %291 = vector.load %arg2[%c3_186, %c3_187, %c0_188, %c0_189] : memref<4x9x8x8xbf16, #tpu.memory_space<vmem>>, vector<1x1x8x8xbf16>
    %292 = vector.shape_cast %291 : vector<1x1x8x8xbf16> to vector<8x8xbf16>
    %293 = arith.truncf %290 : vector<8x512xf32> to vector<8x512xbf16>
    %cst_190 = arith.constant dense<0.000000e+00> : vector<8x512xf32>
    %294 = tpu.matmul %292, %293, %cst_190 {dimension_numbers = #tpu.dot_dimension_numbers<[1], [0], [0], [1], [0, 0, 1, 1], [], []>} : vector<8x8xbf16>, vector<8x512xbf16>, vector<8x512xf32> -> vector<8x512xf32>
    %295 = arith.addf %286, %294 : vector<8x512xf32>
    %c3_191 = arith.constant 3 : index
    %c4_192 = arith.constant 4 : index
    %c0_193 = arith.constant 0 : index
    %c0_194 = arith.constant 0 : index
    %296 = vector.load %arg2[%c3_191, %c4_192, %c0_193, %c0_194] : memref<4x9x8x8xbf16, #tpu.memory_space<vmem>>, vector<1x1x8x8xbf16>
    %297 = vector.shape_cast %296 : vector<1x1x8x8xbf16> to vector<8x8xbf16>
    %298 = arith.truncf %260 : vector<8x512xf32> to vector<8x512xbf16>
    %cst_195 = arith.constant dense<0.000000e+00> : vector<8x512xf32>
    %299 = tpu.matmul %297, %298, %cst_195 {dimension_numbers = #tpu.dot_dimension_numbers<[1], [0], [0], [1], [0, 0, 1, 1], [], []>} : vector<8x8xbf16>, vector<8x512xbf16>, vector<8x512xf32> -> vector<8x512xf32>
    %300 = arith.addf %295, %299 : vector<8x512xf32>
    %c511_i32_196 = arith.constant 511 : i32
    %301 = tpu.dynamic_rotate %260 by %c511_i32_196 dim 1 : vector<8x512xf32>, i32 -> vector<8x512xf32>
    %302 = vector.extract_strided_slice %2 {offsets = [4, 0], sizes = [1, 512], strides = [1, 1]} : vector<8x512xf32> to vector<1x512xf32>
    %303 = vector.broadcast %302 : vector<1x512xf32> to vector<8x512xf32>
    %304 = arith.mulf %301, %303 : vector<8x512xf32>
    %c3_197 = arith.constant 3 : index
    %c5_198 = arith.constant 5 : index
    %c0_199 = arith.constant 0 : index
    %c0_200 = arith.constant 0 : index
    %305 = vector.load %arg2[%c3_197, %c5_198, %c0_199, %c0_200] : memref<4x9x8x8xbf16, #tpu.memory_space<vmem>>, vector<1x1x8x8xbf16>
    %306 = vector.shape_cast %305 : vector<1x1x8x8xbf16> to vector<8x8xbf16>
    %307 = arith.truncf %304 : vector<8x512xf32> to vector<8x512xbf16>
    %cst_201 = arith.constant dense<0.000000e+00> : vector<8x512xf32>
    %308 = tpu.matmul %306, %307, %cst_201 {dimension_numbers = #tpu.dot_dimension_numbers<[1], [0], [0], [1], [0, 0, 1, 1], [], []>} : vector<8x8xbf16>, vector<8x512xbf16>, vector<8x512xf32> -> vector<8x512xf32>
    %309 = arith.addf %300, %308 : vector<8x512xf32>
    %c497_i32_202 = arith.constant 497 : i32
    %310 = tpu.dynamic_rotate %260 by %c497_i32_202 dim 1 : vector<8x512xf32>, i32 -> vector<8x512xf32>
    %311 = vector.extract_strided_slice %2 {offsets = [5, 0], sizes = [1, 512], strides = [1, 1]} : vector<8x512xf32> to vector<1x512xf32>
    %312 = vector.broadcast %311 : vector<1x512xf32> to vector<8x512xf32>
    %313 = arith.mulf %310, %312 : vector<8x512xf32>
    %c3_203 = arith.constant 3 : index
    %c6_204 = arith.constant 6 : index
    %c0_205 = arith.constant 0 : index
    %c0_206 = arith.constant 0 : index
    %314 = vector.load %arg2[%c3_203, %c6_204, %c0_205, %c0_206] : memref<4x9x8x8xbf16, #tpu.memory_space<vmem>>, vector<1x1x8x8xbf16>
    %315 = vector.shape_cast %314 : vector<1x1x8x8xbf16> to vector<8x8xbf16>
    %316 = arith.truncf %313 : vector<8x512xf32> to vector<8x512xbf16>
    %cst_207 = arith.constant dense<0.000000e+00> : vector<8x512xf32>
    %317 = tpu.matmul %315, %316, %cst_207 {dimension_numbers = #tpu.dot_dimension_numbers<[1], [0], [0], [1], [0, 0, 1, 1], [], []>} : vector<8x8xbf16>, vector<8x512xbf16>, vector<8x512xf32> -> vector<8x512xf32>
    %318 = arith.addf %309, %317 : vector<8x512xf32>
    %c496_i32_208 = arith.constant 496 : i32
    %319 = tpu.dynamic_rotate %260 by %c496_i32_208 dim 1 : vector<8x512xf32>, i32 -> vector<8x512xf32>
    %320 = vector.extract_strided_slice %2 {offsets = [6, 0], sizes = [1, 512], strides = [1, 1]} : vector<8x512xf32> to vector<1x512xf32>
    %321 = vector.broadcast %320 : vector<1x512xf32> to vector<8x512xf32>
    %322 = arith.mulf %319, %321 : vector<8x512xf32>
    %c3_209 = arith.constant 3 : index
    %c7_210 = arith.constant 7 : index
    %c0_211 = arith.constant 0 : index
    %c0_212 = arith.constant 0 : index
    %323 = vector.load %arg2[%c3_209, %c7_210, %c0_211, %c0_212] : memref<4x9x8x8xbf16, #tpu.memory_space<vmem>>, vector<1x1x8x8xbf16>
    %324 = vector.shape_cast %323 : vector<1x1x8x8xbf16> to vector<8x8xbf16>
    %325 = arith.truncf %322 : vector<8x512xf32> to vector<8x512xbf16>
    %cst_213 = arith.constant dense<0.000000e+00> : vector<8x512xf32>
    %326 = tpu.matmul %324, %325, %cst_213 {dimension_numbers = #tpu.dot_dimension_numbers<[1], [0], [0], [1], [0, 0, 1, 1], [], []>} : vector<8x8xbf16>, vector<8x512xbf16>, vector<8x512xf32> -> vector<8x512xf32>
    %327 = arith.addf %318, %326 : vector<8x512xf32>
    %c495_i32_214 = arith.constant 495 : i32
    %328 = tpu.dynamic_rotate %260 by %c495_i32_214 dim 1 : vector<8x512xf32>, i32 -> vector<8x512xf32>
    %329 = vector.extract_strided_slice %2 {offsets = [7, 0], sizes = [1, 512], strides = [1, 1]} : vector<8x512xf32> to vector<1x512xf32>
    %330 = vector.broadcast %329 : vector<1x512xf32> to vector<8x512xf32>
    %331 = arith.mulf %328, %330 : vector<8x512xf32>
    %c3_215 = arith.constant 3 : index
    %c8_216 = arith.constant 8 : index
    %c0_217 = arith.constant 0 : index
    %c0_218 = arith.constant 0 : index
    %332 = vector.load %arg2[%c3_215, %c8_216, %c0_217, %c0_218] : memref<4x9x8x8xbf16, #tpu.memory_space<vmem>>, vector<1x1x8x8xbf16>
    %333 = vector.shape_cast %332 : vector<1x1x8x8xbf16> to vector<8x8xbf16>
    %334 = arith.truncf %331 : vector<8x512xf32> to vector<8x512xbf16>
    %cst_219 = arith.constant dense<0.000000e+00> : vector<8x512xf32>
    %335 = tpu.matmul %333, %334, %cst_219 {dimension_numbers = #tpu.dot_dimension_numbers<[1], [0], [0], [1], [0, 0, 1, 1], [], []>} : vector<8x8xbf16>, vector<8x512xbf16>, vector<8x512xf32> -> vector<8x512xf32>
    %336 = arith.addf %327, %335 : vector<8x512xf32>
    %c3_220 = arith.constant 3 : index
    %c0_221 = arith.constant 0 : index
    %c0_222 = arith.constant 0 : index
    %337 = vector.load %arg3[%c3_220, %c0_221, %c0_222] : memref<4x8x1xf32, #tpu.memory_space<vmem>>, vector<1x8x1xf32>
    %338 = vector.shape_cast %337 : vector<1x8x1xf32> to vector<8x1xf32>
    %339 = vector.broadcast %338 : vector<8x1xf32> to vector<8x512xf32>
    %340 = arith.mulf %336, %339 : vector<8x512xf32>
    %c3_223 = arith.constant 3 : index
    %c0_224 = arith.constant 0 : index
    %c0_225 = arith.constant 0 : index
    %341 = vector.load %arg4[%c3_223, %c0_224, %c0_225] : memref<4x8x1xf32, #tpu.memory_space<vmem>>, vector<1x8x1xf32>
    %342 = vector.shape_cast %341 : vector<1x8x1xf32> to vector<8x1xf32>
    %343 = vector.broadcast %342 : vector<8x1xf32> to vector<8x512xf32>
    %344 = arith.addf %340, %343 : vector<8x512xf32>
    %cst_226 = arith.constant 0.000000e+00 : f32
    %345 = vector.broadcast %cst_226 : f32 to vector<8x512xf32>
    %346 = arith.maximumf %344, %345 : vector<8x512xf32>
    %c0_227 = arith.constant 0 : index
    %c0_228 = arith.constant 0 : index
    %347 = vector.load %arg6[%c0_227, %c0_228] : memref<8x8xf32, #tpu.memory_space<vmem>>, vector<8x8xf32>
    %cst_229 = arith.constant dense<0.000000e+00> : vector<8x512xf32>
    %348 = tpu.matmul %347, %346, %cst_229 {dimension_numbers = #tpu.dot_dimension_numbers<[1], [0], [0], [1], [0, 0, 1, 1], [], []>} : vector<8x8xf32>, vector<8x512xf32>, vector<8x512xf32> -> vector<8x512xf32>
    %349 = vector.extract_strided_slice %348 {offsets = [0, 0], sizes = [8, 256], strides = [1, 1]} : vector<8x512xf32> to vector<8x256xf32>
    %cst_230 = arith.constant dense<0.000000e+00> : vector<8xf32>
    %350 = vector.multi_reduction <add>, %349, %cst_230 [1] : vector<8x256xf32> to vector<8xf32>
    %351 = vector.shape_cast %350 : vector<8xf32> to vector<8x1xf32>
    %cst_231 = arith.constant 2.560000e+02 : f32
    %352 = vector.broadcast %cst_231 : f32 to vector<8x1xf32>
    %353 = arith.divf %351, %352 : vector<8x1xf32>
    %354 = vector.extract_strided_slice %348 {offsets = [0, 256], sizes = [8, 256], strides = [1, 1]} : vector<8x512xf32> to vector<8x256xf32>
    %cst_232 = arith.constant dense<0.000000e+00> : vector<8xf32>
    %355 = vector.multi_reduction <add>, %354, %cst_232 [1] : vector<8x256xf32> to vector<8xf32>
    %356 = vector.shape_cast %355 : vector<8xf32> to vector<8x1xf32>
    %cst_233 = arith.constant 2.560000e+02 : f32
    %357 = vector.broadcast %cst_233 : f32 to vector<8x1xf32>
    %358 = arith.divf %356, %357 : vector<8x1xf32>
    %359 = tpu.concatenate %353, %358 in 1 : vector<8x1xf32>, vector<8x1xf32> -> vector<8x2xf32>
    %c0_234 = arith.constant 0 : index
    %c0_235 = arith.constant 0 : index
    %360 = vector.load %arg7[%c0_234, %c0_235] : memref<8x1xf32, #tpu.memory_space<vmem>>, vector<8x1xf32>
    %361 = vector.broadcast %360 : vector<8x1xf32> to vector<8x2xf32>
    %362 = arith.addf %359, %361 : vector<8x2xf32>
    %363 = vector.shape_cast %362 : vector<8x2xf32> to vector<1x8x2xf32>
    %c0_236 = arith.constant 0 : index
    %c0_237 = arith.constant 0 : index
    %c0_238 = arith.constant 0 : index
    %364 = vector.load %arg8[%c0_236, %c0_237, %c0_238] : memref<1x8x2xf32, #tpu.memory_space<vmem>>, vector<1x8x2xf32>
    tpu.vector_store %arg8[%c0_236, %c0_237, %c0_238], %363 {strides = array<i32>} : memref<1x8x2xf32, #tpu.memory_space<vmem>>, vector<1x8x2xf32>,
    return
  }
  func.func @transform_0(%arg0: i32) -> (i32, i32, i32) {
    %c0_i32 = arith.constant 0 : i32
    %c0_i32_0 = arith.constant 0 : i32
    %c0_i32_1 = arith.constant 0 : i32
    return %arg0, %c0_i32, %c0_i32_0 : i32, i32, i32
  }
  func.func @transform_1(%arg0: i32) -> (i32, i32, i32, i32) {
    %c0_i32 = arith.constant 0 : i32
    %c0_i32_0 = arith.constant 0 : i32
    %c0_i32_1 = arith.constant 0 : i32
    %c0_i32_2 = arith.constant 0 : i32
    %c0_i32_3 = arith.constant 0 : i32
    return %c0_i32, %c0_i32_0, %c0_i32_1, %c0_i32_2 : i32, i32, i32, i32
  }
  func.func @transform_2(%arg0: i32) -> (i32, i32, i32) {
    %c0_i32 = arith.constant 0 : i32
    %c0_i32_0 = arith.constant 0 : i32
    %c0_i32_1 = arith.constant 0 : i32
    %c0_i32_2 = arith.constant 0 : i32
    return %c0_i32, %c0_i32_0, %c0_i32_1 : i32, i32, i32
  }
  func.func @transform_3(%arg0: i32) -> (i32, i32, i32) {
    %c0_i32 = arith.constant 0 : i32
    %c0_i32_0 = arith.constant 0 : i32
    %c0_i32_1 = arith.constant 0 : i32
    %c0_i32_2 = arith.constant 0 : i32
    return %c0_i32, %c0_i32_0, %c0_i32_1 : i32, i32, i32
  }
  func.func @transform_4(%arg0: i32) -> (i32, i32) {
    %c0_i32 = arith.constant 0 : i32
    %c0_i32_0 = arith.constant 0 : i32
    %c0_i32_1 = arith.constant 0 : i32
    return %c0_i32, %c0_i32_0 : i32, i32
  }
  func.func @transform_5(%arg0: i32) -> (i32, i32) {
    %c0_i32 = arith.constant 0 : i32
    %c0_i32_0 = arith.constant 0 : i32
    %c0_i32_1 = arith.constant 0 : i32
    return %c0_i32, %c0_i32_0 : i32, i32
  }
  func.func @transform_6(%arg0: i32) -> (i32, i32) {
    %c0_i32 = arith.constant 0 : i32
    %c0_i32_0 = arith.constant 0 : i32
    %c0_i32_1 = arith.constant 0 : i32
    return %c0_i32, %c0_i32_0 : i32, i32
  }
  func.func @transform_7(%arg0: i32) -> (i32, i32, i32) {
    %c0_i32 = arith.constant 0 : i32
    %c0_i32_0 = arith.constant 0 : i32
    %c0_i32_1 = arith.constant 0 : i32
    return %arg0, %c0_i32, %c0_i32_0 : i32, i32, i32
  }
}

</mosaic_0001>

<bundles_post_ra>
// kernel: decoder_forward.1
= control target key start
LH: loop header
LB: loop body
LE: loop exit
PB: predicated region body
PF: predicated region fallthrough
CT: control target
= control target key end

     0   :  { %v5233_v2 = vmov 0   ;;  %s5234_s28 = smov 16   ;;  %s5235_s10 = smov 17   ;;  %v43_v7 = vlaneseq  ;;  %vm118_vm2 = vcmask 1043456   ;;  %vm114_vm3 = vcmask 64512   ;;  %s6568_s0 = inlined_call_operand.vmem [shape: f32[1,8,512], index: 0, kind: input, shape index: {}]   ;;  %s6569_s2 = inlined_call_operand.vmem [shape: f32[4,8,1], index: 2, kind: input, shape index: {}]   ;;  %s6570_s3 = inlined_call_operand.vmem [shape: f32[4,8,1], index: 3, kind: input, shape index: {}]   ;;  %s6571_s4 = inlined_call_operand.vmem [shape: f32[8,512], index: 4, kind: input, shape index: {}]   ;;  %s6572_s1 = inlined_call_operand.vmem [shape: bf16[4,9,8,8], index: 1, kind: input, shape index: {}]   ;;  %s6573_s5 = inlined_call_operand.vmem [shape: f32[8,8], index: 5, kind: input, shape index: {}]   ;;  %s6574_s6 = inlined_call_operand.vmem [shape: f32[8,1], index: 6, kind: input, shape index: {}]   ;;  %s6575_s7 = inlined_call_operand.vmem [shape: f32[1,8,2], index: 7, kind: output, shape index: {}]  }
   0x1   :  { %v5286_v0 = vld [vmem:[%s6568_s0 + $0x10] sm:$0xff]  ;;  %v5291_v1 = vld [vmem:[%s6568_s0] sm:$0xff]  ;;  %163 = vmatprep.mubr.bf16.mxu0 %v5233_v2  ;;  %204 = vmatprep.mubr.bf16.mxu1 %v5233_v2  ;;  %v5302_v3 = vld [vmem:[%s6568_s0 + $0x18] sm:$0xff]  ;;  %s5237_s11 = smov 1   ;;  %s5238_s12 = smov 127   ;;  %vm4763_vm10 = vcmask 7168  }
   0x2   :  { %79 = vrot.lane.b32.xlu1 %v5286_v0, %s5234_s28  ;;  %75 = vrot.lane.b32.xlu0 %v5291_v1, %s5234_s28  ;;  %v5307_v4 = vld [vmem:[%s6568_s0 + $0x8] sm:$0xff]  ;;  %s5236_s0 = smov 15   ;;  %s5239_s13 = smov 113   ;;  %v1257_v5 = vld [vmem:[%s6569_s2] sm:$0xff]  ;;  %v5377_v8 = vshrl.u32 %v43_v7, 7  ;;  %v5379_v9 = vand.u32 127, %v43_v7 }
   0x3   :  { %5231 = vset.pattern.permute.xlu0 %v5233_v2  ;;  %5232 = vset.pattern.permute.xlu1 %v5233_v2  ;;  %s5240_s14 = smov 112   ;;  %s5241_s15 = smov 111   ;;  %v1267_v6 = vld [vmem:[%s6570_s3] sm:$0xff]  ;;  %v5384_v10 = vld [vmem:[%s6571_s4 + $0x8] sm:$0xff]  ;;  %v5390_v12 = vld [vmem:[%s6571_s4 + $0x18] sm:$0xff]  ;;  %vm4772_vm11 = vcmask 15360  }
   0x4   :  { %v90_v11 = vsub.s32 1, %v5377_v8  ;;  %v5395_v13 = vld [vmem:[%s6571_s4] sm:$0xff]  ;;  %v5400_v14 = vld [vmem:[%s6571_s4 + $0x10] sm:$0xff]  ;;  %v52_v17 = vsub.s32 0, %v5377_v8  ;;  %vm83_vm0 = vcmp.lt.s32.totalorder %v5379_v9, 16  ;;  %vm45_vm1 = vcmp.lt.s32.totalorder %v5379_v9, 17 }
   0x5   :  { %v325_v42 = vsub.s32 2, %v5377_v8  ;;  %v4778_v47 = vld [vmem:[%s6572_s1 + $0x4] sm:$0xf]  ;;  %vm318_vm4 = vcmp.lt.s32.totalorder %v5379_v9, 15  ;;  %vm458_vm5 = vcmp.lt.s32.totalorder %v5379_v9, 1  ;;  %vm705_vm6 = vcmp.lt.s32.totalorder %v5379_v9, 127 }
   0x6   :  { %81 = vrot.lane.b32.xlu1 %v5302_v3, %s5234_s28  ;;  %77 = vrot.lane.b32.xlu0 %v5307_v4, %s5234_s28  ;;  %v5405_v18 = vrot.slane %v5384_v10, %v90_v11  ;;  %v5408_v19 = vrot.slane %v5390_v12, %v90_v11  ;;  %v5411_v20 = vrot.slane %v5395_v13, %v90_v11  ;;  %vm845_vm7 = vcmp.lt.s32.totalorder %v5379_v9, 113 }
   0x7   :  { %v5414_v21 = vrot.slane %v5400_v14, %v90_v11  ;;  %v5418_v24 = vrot.slane %v5384_v10, %v52_v17  ;;  %v5435_v40 = vrot.slane %v5395_v13, %v52_v17  ;;  %v5438_v41 = vrot.slane %v5400_v14, %v52_v17 }
   0x8   :  { %v5447_v46 = vrot.slane %v5390_v12, %v52_v17  ;;  %v5459_v54 = vrot.slane %v5384_v10, %v325_v42  ;;  %v5479_v7 = vrot.slane %v5390_v12, %v325_v42  ;;  %v465_v17 = vsub.s32 3, %v5377_v8 }
   0x9   :  { %vm985_vm8 = vcmp.lt.s32.totalorder %v5379_v9, 112  ;;  %vm1125_vm9 = vcmp.lt.s32.totalorder %v5379_v9, 111  ;;  %v4951_v9 = vld [vmem:[%s6572_s1 + $0x88] sm:$0xf] }
   0xa   :  { %37 = vrot.lane.b32.xlu1 %v5307_v4, %s5235_s10  ;;  %35 = vrot.lane.b32.xlu0 %v5291_v1, %s5235_s10 }
   0xe   :  { %41 = vrot.lane.b32.xlu1 %v5302_v3, %s5235_s10  ;;  %39 = vrot.lane.b32.xlu0 %v5286_v0, %s5235_s10 }
  0x12   :  { %312 = vrot.lane.b32.xlu1 %v5307_v4, %s5236_s0  ;;  %310 = vrot.lane.b32.xlu0 %v5291_v1, %s5236_s0 }
  0x16   :  { %316 = vrot.lane.b32.xlu1 %v5302_v3, %s5236_s0  ;;  %314 = vrot.lane.b32.xlu0 %v5286_v0, %s5236_s0 }
  0x1a   :  { %452 = vrot.lane.b32.xlu1 %v5307_v4, %s5237_s11  ;;  %450 = vrot.lane.b32.xlu0 %v5291_v1, %s5237_s11 }
  0x1e   :  { %456 = vrot.lane.b32.xlu1 %v5302_v3, %s5237_s11  ;;  %454 = vrot.lane.b32.xlu0 %v5286_v0, %s5237_s11 }
  0x22   :  { %699 = vrot.lane.b32.xlu1 %v5307_v4, %s5238_s12  ;;  %697 = vrot.lane.b32.xlu0 %v5291_v1, %s5238_s12 }
  0x26   :  { %703 = vrot.lane.b32.xlu1 %v5302_v3, %s5238_s12  ;;  %701 = vrot.lane.b32.xlu0 %v5286_v0, %s5238_s12 }
  0x2a   :  { %839 = vrot.lane.b32.xlu1 %v5307_v4, %s5239_s13  ;;  %837 = vrot.lane.b32.xlu0 %v5291_v1, %s5239_s13 }
  0x2e   :  { %843 = vrot.lane.b32.xlu1 %v5302_v3, %s5239_s13  ;;  %841 = vrot.lane.b32.xlu0 %v5286_v0, %s5239_s13 }
  0x32   :  { %979 = vrot.lane.b32.xlu1 %v5307_v4, %s5240_s14  ;;  %977 = vrot.lane.b32.xlu0 %v5291_v1, %s5240_s14 }
  0x36   :  { %983 = vrot.lane.b32.xlu1 %v5302_v3, %s5240_s14  ;;  %981 = vrot.lane.b32.xlu0 %v5286_v0, %s5240_s14 }
  0x3a   :  { %1119 = vrot.lane.b32.xlu1 %v5307_v4, %s5241_s15  ;;  %1117 = vrot.lane.b32.xlu0 %v5291_v1, %s5241_s15 }
  0x3e   :  { %1123 = vrot.lane.b32.xlu1 %v5302_v3, %s5241_s15  ;;  %1121 = vrot.lane.b32.xlu0 %v5286_v0, %s5241_s15 }
  0x42   :  { %1260 = vperm.xlu0 %5231, %v1257_v5   ;;  %1270 = vperm.xlu1 %5232, %v1267_v6   ;;  %v5473_v5 = vrot.slane %v5395_v13, %v325_v42  ;;  %v5476_v6 = vrot.slane %v5400_v14, %v325_v42  ;;  %v5506_v42 = vrot.slane %v5395_v13, %v465_v17 }
  0x74   :  { %v80_v15 = vpop.permute.xlu1 %79  ;;  %v76_v16 = vpop.permute.xlu0 %75 }
  0x78   :  { %v82_v22 = vpop.permute.xlu1 %81  ;;  %v78_v23 = vpop.permute.xlu0 %77 }
  0x79   :  { %v87_v25 = vsel %vm83_vm0, %v82_v22, %v76_v16  ;;  %v85_v26 = vsel %vm83_vm0, %v78_v23, %v80_v15  ;;  %v86_v27 = vsel %vm83_vm0, %v76_v16, %v78_v23  ;;  %v84_v28 = vsel %vm83_vm0, %v80_v15, %v82_v22 }
  0x7a   :  { %v105_v29 = vmul.f32 %v5405_v18, %v86_v27  ;;  %v107_v30 = vmul.f32 %v5408_v19, %v84_v28  ;;  %v104_v31 = vmul.f32 %v5411_v20, %v87_v25  ;;  %v106_v32 = vmul.f32 %v5414_v21, %v85_v26 }
  0x7c   :  { %v38_v33 = vpop.permute.xlu1 %37  ;;  %v36_v34 = vpop.permute.xlu0 %35  ;;  %v111_v35 = vpack.c.bf16 %v105_v29, %v105_v29  ;;  %v113_v36 = vpack.c.bf16 %v107_v30, %v107_v30  ;;  %v110_v37 = vpack.c.bf16 %v104_v31, %v104_v31  ;;  %v112_v38 = vpack.c.bf16 %v106_v32, %v106_v32 }
  0x7d   :  { %v48_v39 = vsel %vm45_vm1, %v36_v34, %v38_v33  ;;  %v5498_v32 = vrot.slane %v5384_v10, %v465_v17 }
  0x7e   :  { %v67_v43 = vmul.f32 %v5418_v24, %v48_v39  ;;  %4779 = vmatprep.subr.msk.bf16.mxu0 %vm118_vm2, %v111_v35  ;;  %4781 = vmatprep.subr.msk.bf16.mxu1 %vm118_vm2, %v113_v36  ;;  %v120_v44 = vsel %vm118_vm2, %v110_v37, 0  ;;  %v126_v45 = vsel %vm118_vm2, %v112_v38, 0 }
  0x7f   :  { %132 = vmatpush1.bf16.msra.mxu0 %v120_v44  ;;  %173 = vmatpush1.bf16.msra.mxu1 %v126_v45 }
  0x80   :  { %v72_v48 = vpack.c.bf16 %v67_v43, %v67_v43  ;;  %v42_v49 = vpop.permute.xlu1 %41  ;;  %v40_v50 = vpop.permute.xlu0 %39  ;;  %v5509_v43 = vrot.slane %v5400_v14, %v465_v17 }
  0x81   :  { %v49_v51 = vsel %vm45_vm1, %v42_v49, %v36_v34  ;;  %v46_v52 = vsel %vm45_vm1, %v40_v50, %v42_v49  ;;  %v47_v53 = vsel %vm45_vm1, %v38_v33, %v40_v50  ;;  %v70_v33 = vld [vmem:[%s6572_s1] sm:$0xf] }
  0x82   :  { %v66_v55 = vmul.f32 %v5435_v40, %v49_v51  ;;  %v68_v56 = vmul.f32 %v5438_v41, %v47_v53  ;;  %v69_v57 = vmul.f32 %v5447_v46, %v46_v52  ;;  %4780 = vmatmul.mubr.msk.bf16.vlgmr.msra.gmra.mrb[0].mxu0 %vm114_vm3, %v4778_v47  ;;  %4782 = vmatmul.mubr.msk.bf16.vlgmr.msra.gmra.mrb[0].mxu1 %vm114_vm3, %v4778_v47 }
  0x83   :  { %4783 = vmatprep.subr.msk.bf16.mxu0 %vm118_vm2, %v72_v48  ;;  %260 = vmatprep.mubr.bf16.mxu0 %v5233_v2  ;;  %v5517_v48 = vrot.slane %v5390_v12, %v465_v17  ;;  %v712_v17 = vsub.s32 4, %v5377_v8 }
  0x84   :  { %v71_v58 = vpack.c.bf16 %v66_v55, %v66_v55  ;;  %v73_v59 = vpack.c.bf16 %v68_v56, %v68_v56  ;;  %v74_v60 = vpack.c.bf16 %v69_v57, %v69_v57  ;;  %v313_v61 = vpop.permute.xlu1 %312  ;;  %v311_v62 = vpop.permute.xlu0 %310  ;;  %301 = vmatprep.mubr.bf16.mxu1 %v5233_v2 }
  0x85   :  { %v321_v63 = vsel %vm318_vm4, %v311_v62, %v313_v61 }
  0x86   :  { %4785 = vmatprep.subr.msk.bf16.mxu1 %vm118_vm2, %v74_v60  ;;  %v340_v11 = vmul.f32 %v5459_v54, %v321_v63  ;;  %v223_v15 = vsel %vm118_vm2, %v73_v59, 0  ;;  %v217_v16 = vsel %vm118_vm2, %v71_v58, 0 }
  0x87   :  { %270 = vmatpush1.bf16.msra.mxu1 %v223_v15  ;;  %229 = vmatpush1.bf16.msra.mxu0 %v217_v16 }
  0x88   :  { %v346_v22 = vpack.c.bf16 %v340_v11, %v340_v11  ;;  %v317_v23 = vpop.permute.xlu1 %316  ;;  %v315_v25 = vpop.permute.xlu0 %314  ;;  %v4787_v11 = vld [vmem:[%s6572_s1 + $0x8] sm:$0xf] }
  0x89   :  { %v322_v26 = vsel %vm318_vm4, %v317_v23, %v311_v62  ;;  %v319_v27 = vsel %vm318_vm4, %v315_v25, %v317_v23  ;;  %v320_v28 = vsel %vm318_vm4, %v313_v61, %v315_v25  ;;  %v595_v23 = vpack.c.bf16 %v5302_v3, %v5302_v3 }
  0x8a   :  { %v339_v29 = vmul.f32 %v5473_v5, %v322_v26  ;;  %v341_v30 = vmul.f32 %v5476_v6, %v320_v28  ;;  %v342_v31 = vmul.f32 %v5479_v7, %v319_v27  ;;  %4788 = vmatprep.subr.msk.bf16.mxu0 %vm118_vm2, %v346_v22  ;;  %v593_v22 = vpack.c.bf16 %v5307_v4, %v5307_v4 }
  0x8b   :  { %v5550_v4 = vrot.slane %v5390_v12, %v712_v17  ;;  %v5554_v3 = vrot.slane %v5384_v10, %v712_v17 }
  0x8c   :  { %v345_v34 = vpack.c.bf16 %v339_v29, %v339_v29  ;;  %v347_v35 = vpack.c.bf16 %v341_v30, %v341_v30  ;;  %v348_v36 = vpack.c.bf16 %v342_v31, %v342_v31  ;;  %v453_v37 = vpop.permute.xlu1 %452  ;;  %v451_v38 = vpop.permute.xlu0 %450  ;;  %v592_v29 = vpack.c.bf16 %v5291_v1, %v5291_v1 }
  0x8d   :  { %v461_v39 = vsel %vm458_vm5, %v451_v38, %v453_v37  ;;  %v594_v30 = vpack.c.bf16 %v5286_v0, %v5286_v0  ;;  %v5574_v1 = vrot.slane %v5400_v14, %v712_v17 }
  0x8e   :  { %4784 = vmatmul.mubr.msk.bf16.vlgmr.msra.gmra.mrb[0].mxu0 %vm114_vm3, %v70_v33  ;;  %4786 = vmatmul.mubr.msk.bf16.vlgmr.msra.gmra.mrb[0].mxu1 %vm114_vm3, %v70_v33  ;;  %v359_v44 = vsel %vm118_vm2, %v347_v35, 0  ;;  %v480_v45 = vmul.f32 %v5498_v32, %v461_v39  ;;  %v353_v47 = vsel %vm118_vm2, %v345_v34, 0  ;;  %v852_v39 = vsub.s32 5, %v5377_v8 }
  0x8f   :  { %4790 = vmatprep.subr.msk.bf16.mxu1 %vm118_vm2, %v348_v36  ;;  %365 = vmatpush1.bf16.msra.mxu0 %v353_v47  ;;  %v4792_v36 = vld [vmem:[%s6572_s1 + $0xc] sm:$0xf]  ;;  %v606_v0 = vsel %vm118_vm2, %v594_v30, 0 }
  0x90   :  { %406 = vmatpush1.bf16.msra.mxu1 %v359_v44  ;;  %v486_v49 = vpack.c.bf16 %v480_v45, %v480_v45  ;;  %v457_v50 = vpop.permute.xlu1 %456  ;;  %v455_v51 = vpop.permute.xlu0 %454  ;;  %396 = vmatprep.mubr.bf16.mxu0 %v5233_v2 }
  0x91   :  { %v462_v52 = vsel %vm458_vm5, %v457_v50, %v451_v38  ;;  %v459_v53 = vsel %vm458_vm5, %v455_v51, %v457_v50  ;;  %v460_v55 = vsel %vm458_vm5, %v453_v37, %v455_v51  ;;  %437 = vmatprep.mubr.bf16.mxu1 %v5233_v2  ;;  %v5570_v37 = vrot.slane %v5395_v13, %v712_v17 }
  0x92   :  { %v479_v56 = vmul.f32 %v5506_v42, %v462_v52  ;;  %v481_v57 = vmul.f32 %v5509_v43, %v460_v55  ;;  %v482_v58 = vmul.f32 %v5517_v48, %v459_v53  ;;  %4793 = vmatprep.subr.msk.bf16.mxu0 %vm118_vm2, %v486_v49  ;;  %v600_v38 = vsel %vm118_vm2, %v592_v29, 0 }
  0x93   :  { %v5592_v55 = vrot.slane %v5390_v12, %v852_v39 }
  0x94   :  { %v485_v59 = vpack.c.bf16 %v479_v56, %v479_v56  ;;  %v487_v60 = vpack.c.bf16 %v481_v57, %v481_v57  ;;  %v488_v61 = vpack.c.bf16 %v482_v58, %v482_v58  ;;  %v700_v62 = vpop.permute.xlu1 %699  ;;  %v698_v63 = vpop.permute.xlu0 %697  ;;  %v5595_v56 = vrot.slane %v5384_v10, %v852_v39 }
  0x95   :  { %v708_v44 = vsel %vm705_vm6, %v698_v63, %v700_v62 }
  0x96   :  { %4795 = vmatprep.subr.msk.bf16.mxu1 %vm118_vm2, %v488_v61  ;;  %v499_v15 = vsel %vm118_vm2, %v487_v60, 0  ;;  %v493_v16 = vsel %vm118_vm2, %v485_v59, 0  ;;  %v726_v52 = vmul.f32 %v5570_v37, %v708_v44 }
  0x98   :  { %v704_v25 = vpop.permute.xlu1 %703  ;;  %v702_v26 = vpop.permute.xlu0 %701  ;;  %v732_v59 = vpack.c.bf16 %v726_v52, %v726_v52 }
  0x99   :  { %v709_v27 = vsel %vm705_vm6, %v704_v25, %v698_v63  ;;  %v707_v28 = vsel %vm705_vm6, %v700_v62, %v702_v26  ;;  %v706_v47 = vsel %vm705_vm6, %v702_v26, %v704_v25  ;;  %v992_v25 = vsub.s32 6, %v5377_v8 }
  0x9a   :  { %4789 = vmatmul.mubr.msk.bf16.vlgmr.msra.gmra.mrb[0].mxu0 %vm114_vm3, %v4787_v11  ;;  %4791 = vmatmul.mubr.msk.bf16.vlgmr.msra.gmra.mrb[0].mxu1 %vm114_vm3, %v4787_v11  ;;  %v729_v31 = vmul.f32 %v5550_v4, %v709_v27  ;;  %v727_v33 = vmul.f32 %v5554_v3, %v707_v28  ;;  %v728_v53 = vmul.f32 %v5574_v1, %v706_v47  ;;  %v740_v17 = vsel %vm118_vm2, %v732_v59, 0 }
  0x9b   :  { %546 = vmatpush1.bf16.msra.mxu1 %v499_v15  ;;  %505 = vmatpush1.bf16.msra.mxu0 %v493_v16  ;;  %v4797_v15 = vld [vmem:[%s6572_s1 + $0x10] sm:$0xf]  ;;  %v5607_v16 = vrot.slane %v5395_v13, %v852_v39  ;;  %v5644_v52 = vrot.slane %v5395_v13, %v992_v25  ;;  %v1132_v59 = vsub.s32 7, %v5377_v8 }
  0x9c   :  { %536 = vmatprep.mubr.bf16.mxu0 %v5233_v2  ;;  %577 = vmatprep.mubr.bf16.mxu1 %v5233_v2  ;;  %v840_v34 = vpop.permute.xlu1 %839  ;;  %v838_v35 = vpop.permute.xlu0 %837  ;;  %v735_v45 = vpack.c.bf16 %v729_v31, %v729_v31  ;;  %v733_v49 = vpack.c.bf16 %v727_v33, %v727_v33  ;;  %v734_v60 = vpack.c.bf16 %v728_v53, %v728_v53 }
  0x9d   :  { %4798 = vmatprep.subr.msk.bf16.mxu0 %vm118_vm2, %v593_v22  ;;  %4800 = vmatprep.subr.msk.bf16.mxu1 %vm118_vm2, %v595_v23  ;;  %v5612_v23 = vrot.slane %v5400_v14, %v852_v39  ;;  %v848_v26 = vsel %vm845_vm7, %v838_v35, %v840_v34 }
  0x9e   :  { %v746_v22 = vsel %vm118_vm2, %v734_v60, 0  ;;  %v866_v33 = vmul.f32 %v5607_v16, %v848_v26 }
  0xa0   :  { %v844_v50 = vpop.permute.xlu1 %843  ;;  %v842_v51 = vpop.permute.xlu0 %841  ;;  %v872_v39 = vpack.c.bf16 %v866_v33, %v866_v33 }
  0xa1   :  { %v849_v57 = vsel %vm845_vm7, %v844_v50, %v838_v35  ;;  %v847_v58 = vsel %vm845_vm7, %v840_v34, %v842_v51  ;;  %v846_v28 = vsel %vm845_vm7, %v842_v51, %v844_v50  ;;  %v5629_v34 = vrot.slane %v5390_v12, %v992_v25  ;;  %v4802_v51 = vld [vmem:[%s6572_s1 + $0x14] sm:$0xf] }
  0xa2   :  { %v869_v61 = vmul.f32 %v5592_v55, %v849_v57  ;;  %v867_v62 = vmul.f32 %v5595_v56, %v847_v58  ;;  %v5632_v35 = vrot.slane %v5384_v10, %v992_v25  ;;  %v880_v53 = vsel %vm118_vm2, %v872_v39, 0 }
  0xa3   :  { %v5649_v58 = vrot.slane %v5400_v14, %v992_v25 }
  0xa4   :  { %v980_v63 = vpop.permute.xlu1 %979  ;;  %v978_v11 = vpop.permute.xlu0 %977  ;;  %v875_v27 = vpack.c.bf16 %v869_v61, %v869_v61  ;;  %v873_v29 = vpack.c.bf16 %v867_v62, %v867_v62 }
  0xa5   :  { %v988_v60 = vsel %vm985_vm8, %v978_v11, %v980_v63 }
  0xa6   :  { %4794 = vmatmul.mubr.msk.bf16.vlgmr.msra.gmra.mrb[0].mxu0 %vm114_vm3, %v4792_v36  ;;  %4796 = vmatmul.mubr.msk.bf16.vlgmr.msra.gmra.mrb[0].mxu1 %vm114_vm3, %v4792_v36  ;;  %v868_v36 = vmul.f32 %v5612_v23, %v846_v28  ;;  %v1006_v8 = vmul.f32 %v5644_v52, %v988_v60 }
  0xa7   :  { %612 = vmatpush1.bf16.msra.mxu0 %v600_v38  ;;  %653 = vmatpush1.bf16.msra.mxu1 %v606_v0 }
  0xa8   :  { %643 = vmatprep.mubr.bf16.mxu0 %v5233_v2  ;;  %684 = vmatprep.mubr.bf16.mxu1 %v5233_v2  ;;  %v984_v30 = vpop.permute.xlu1 %983  ;;  %v982_v31 = vpop.permute.xlu0 %981  ;;  %v874_v44 = vpack.c.bf16 %v868_v36, %v868_v36  ;;  %v1012_v28 = vpack.c.bf16 %v1006_v8, %v1006_v8 }
  0xa9   :  { %4803 = vmatprep.subr.msk.bf16.mxu0 %vm118_vm2, %v733_v49  ;;  %4805 = vmatprep.subr.msk.bf16.mxu1 %vm118_vm2, %v735_v45  ;;  %v989_v38 = vsel %vm985_vm8, %v984_v30, %v978_v11  ;;  %v987_v0 = vsel %vm985_vm8, %v980_v63, %v982_v31  ;;  %v986_v62 = vsel %vm985_vm8, %v982_v31, %v984_v30 }
  0xaa   :  { %v1009_v45 = vmul.f32 %v5629_v34, %v989_v38  ;;  %v1007_v47 = vmul.f32 %v5632_v35, %v987_v0  ;;  %v886_v57 = vsel %vm118_vm2, %v874_v44, 0  ;;  %v1008_v25 = vmul.f32 %v5649_v58, %v986_v62 }
  0xab   :  { %v5666_v63 = vrot.slane %v5390_v12, %v1132_v59  ;;  %v5669_v11 = vrot.slane %v5384_v10, %v1132_v59  ;;  %v4807_v12 = vld [vmem:[%s6572_s1 + $0x18] sm:$0xf]  ;;  %v1020_v33 = vsel %vm118_vm2, %v1012_v28, 0  ;;  %v5682_v10 = vrot.slane %v5395_v13, %v1132_v59 }
  0xac   :  { %v1120_v49 = vpop.permute.xlu1 %1119  ;;  %v1118_v50 = vpop.permute.xlu0 %1117  ;;  %v1015_v61 = vpack.c.bf16 %v1009_v45, %v1009_v45  ;;  %v5686_v38 = vrot.slane %v5400_v14, %v1132_v59 }
  0xad   :  { %v1128_v0 = vsel %vm1125_vm9, %v1118_v50, %v1120_v49 }
  0xae   :  { %v1146_v13 = vmul.f32 %v5682_v10, %v1128_v0 }
  0xb0   :  { %v1152_v14 = vpack.c.bf16 %v1146_v13, %v1146_v13  ;;  %v4867_v13 = vld [vmem:[%s6569_s2 + $0x8] sm:$0xff] }
  0xb2   :  { %4799 = vmatmul.mubr.msk.bf16.vlgmr.msra.gmra.mrb[0].mxu0 %vm114_vm3, %v4797_v15  ;;  %4801 = vmatmul.mubr.msk.bf16.vlgmr.msra.gmra.mrb[0].mxu1 %vm114_vm3, %v4797_v15  ;;  %v1013_v15 = vpack.c.bf16 %v1007_v47, %v1007_v47 }
  0xb3   :  { %752 = vmatpush1.bf16.msra.mxu0 %v740_v17  ;;  %793 = vmatpush1.bf16.msra.mxu1 %v746_v22  ;;  %v1124_v17 = vpop.permute.xlu1 %1123  ;;  %v1122_v22 = vpop.permute.xlu0 %1121 }
  0xb4   :  { %783 = vmatprep.mubr.bf16.mxu0 %v5233_v2  ;;  %824 = vmatprep.mubr.bf16.mxu1 %v5233_v2  ;;  %v1129_v26 = vsel %vm1125_vm9, %v1124_v17, %v1118_v50  ;;  %v1126_v44 = vsel %vm1125_vm9, %v1122_v22, %v1124_v17  ;;  %v4812_v50 = vld [vmem:[%s6572_s1 + $0x1c] sm:$0xf] }
  0xb5   :  { %4808 = vmatprep.subr.msk.bf16.mxu0 %vm118_vm2, %v873_v29  ;;  %4810 = vmatprep.subr.msk.bf16.mxu1 %vm118_vm2, %v875_v27  ;;  %v1127_v27 = vsel %vm1125_vm9, %v1120_v49, %v1122_v22  ;;  %v1014_v29 = vpack.c.bf16 %v1008_v25, %v1008_v25  ;;  %v1149_v30 = vmul.f32 %v5666_v63, %v1129_v26 }
  0xb6   :  { %v1147_v31 = vmul.f32 %v5669_v11, %v1127_v27  ;;  %v1148_v47 = vmul.f32 %v5686_v38, %v1126_v44 }
  0xb7   :  { %v1026_v36 = vsel %vm118_vm2, %v1014_v29, 0  ;;  %v1155_v39 = vpack.c.bf16 %v1149_v30, %v1149_v30 }
  0xb8   :  { %v1153_v45 = vpack.c.bf16 %v1147_v31, %v1147_v31  ;;  %v1154_v49 = vpack.c.bf16 %v1148_v47, %v1148_v47  ;;  %v4868_v47 = vld [vmem:[%s6570_s3 + $0x8] sm:$0xff] }
  0xbe   :  { %4804 = vmatmul.mubr.msk.bf16.vlgmr.msra.gmra.mrb[0].mxu0 %vm114_vm3, %v4802_v51  ;;  %4806 = vmatmul.mubr.msk.bf16.vlgmr.msra.gmra.mrb[0].mxu1 %vm114_vm3, %v4802_v51  ;;  %v1160_v51 = vsel %vm118_vm2, %v1152_v14, 0 }
  0xbf   :  { %892 = vmatpush1.bf16.msra.mxu0 %v880_v53  ;;  %933 = vmatpush1.bf16.msra.mxu1 %v886_v57  ;;  %v1166_v53 = vsel %vm118_vm2, %v1154_v49, 0  ;;  %v4817_v57 = vld [vmem:[%s6572_s1 + $0x20] sm:$0xf] }
  0xc0   :  { %923 = vmatprep.mubr.bf16.mxu0 %v5233_v2  ;;  %964 = vmatprep.mubr.bf16.mxu1 %v5233_v2 }
  0xc1   :  { %4813 = vmatprep.subr.msk.bf16.mxu0 %vm118_vm2, %v1013_v15  ;;  %4815 = vmatprep.subr.msk.bf16.mxu1 %vm118_vm2, %v1015_v61  ;;  %v1261_v59 = vpop.permute.xlu0 %1260  ;;  %v1271_v60 = vpop.permute.xlu1 %1270 }
  0xca   :  { %4809 = vmatmul.mubr.msk.bf16.vlgmr.msra.gmra.mrb[0].mxu0 %vm114_vm3, %v4807_v12  ;;  %4811 = vmatmul.mubr.msk.bf16.vlgmr.msra.gmra.mrb[0].mxu1 %vm114_vm3, %v4807_v12 }
  0xcb   :  { %1032 = vmatpush1.bf16.msra.mxu0 %v1020_v33  ;;  %1073 = vmatpush1.bf16.msra.mxu1 %v1026_v36 }
  0xcc   :  { %1063 = vmatprep.mubr.bf16.mxu0 %v5233_v2  ;;  %1104 = vmatprep.mubr.bf16.mxu1 %v5233_v2 }
  0xcd   :  { %4818 = vmatprep.subr.msk.bf16.mxu0 %vm118_vm2, %v1153_v45  ;;  %4820 = vmatprep.subr.msk.bf16.mxu1 %vm118_vm2, %v1155_v39 }
  0xd6   :  { %4814 = vmatmul.mubr.msk.bf16.vlgmr.msra.gmra.mrb[0].mxu0 %vm114_vm3, %v4812_v50  ;;  %4816 = vmatmul.mubr.msk.bf16.vlgmr.msra.gmra.mrb[0].mxu1 %vm114_vm3, %v4812_v50 }
  0xd7   :  { %1172 = vmatpush1.bf16.msra.mxu0 %v1160_v51  ;;  %1213 = vmatpush1.bf16.msra.mxu1 %v1166_v53 }
  0xd8   :  { %1203 = vmatprep.mubr.bf16.mxu0 %v5233_v2  ;;  %1244 = vmatprep.mubr.bf16.mxu1 %v5233_v2 }
  0xe2   :  { %4819 = vmatmul.mubr.msk.bf16.vlgmr.msra.gmra.mrb[0].mxu0 %vm114_vm3, %v4817_v57  ;;  %4821 = vmatmul.mubr.msk.bf16.vlgmr.msra.gmra.mrb[0].mxu1 %vm114_vm3, %v4817_v57 }
  0xe3   :  { %1372 = vmatprep.mubr.bf16.mxu0 %v5233_v2  ;;  %1413 = vmatprep.mubr.bf16.mxu1 %v5233_v2 }
 0x1b5   :  { %v1246_v61 = vpop.f32.mrb[0].mxu1  ;;  %v1205_v62 = vpop.f32.mrb[0].mxu0 }
 0x1b6   :  { %v1265_v15 = vmul.f32 %v1261_v59, %v1246_v61  ;;  %v1263_v17 = vmul.f32 %v1261_v59, %v1205_v62  ;;  %v1207_v22 = vpop.f32.mrb[1].mxu0  ;;  %v1248_v8 = vpop.f32.mrb[1].mxu1 }
 0x1b7   :  { %v1264_v25 = vmul.f32 %v1261_v59, %v1207_v22  ;;  %v1266_v26 = vmul.f32 %v1261_v59, %v1248_v8  ;;  %v1209_v27 = vpop.f32.mrb[2].mxu0  ;;  %v1250_v28 = vpop.f32.mrb[2].mxu1 }
 0x1b8   :  { %v1273_v29 = vadd.f32 %v1271_v60, %v1263_v17  ;;  %v1210_v30 = vpop.f32.mrb[3].mxu0  ;;  %v1251_v31 = vpop.f32.mrb[3].mxu1  ;;  %v1275_v33 = vadd.f32 %v1271_v60, %v1265_v15 }
 0x1b9   :  { %v1274_v12 = vadd.f32 %v1271_v60, %v1264_v25  ;;  %v1276_v0 = vadd.f32 %v1271_v60, %v1266_v26 }
 0x1ba   :  { %v5716_v36 = vmax.f32 %v1273_v29, 0.0  ;;  %v5724_v44 = vmax.f32 %v1275_v33, 0.0 }
 0x1bb   :  { %v5718_v39 = vmax.f32 %v1274_v12, 0.0  ;;  %v5726_v45 = vmax.f32 %v1276_v0, 0.0  ;;  %v4823_v0 = vld [vmem:[%s6572_s1 + $0x28] sm:$0xf] }
 0x1bc   :  { %1303 = vrot.lane.b32.xlu1 %v5716_v36, %s5234_s28 }
 0x1bd   :  { %1305 = vrot.lane.b32.xlu0 %v5718_v39, %s5234_s28 }
 0x1c0   :  { %1307 = vrot.lane.b32.xlu1 %v5724_v44, %s5234_s28 }
 0x1c1   :  { %1309 = vrot.lane.b32.xlu0 %v5726_v45, %s5234_s28 }
 0x1c4   :  { %1281 = vrot.lane.b32.xlu1 %v5716_v36, %s5235_s10 }
 0x1c5   :  { %1283 = vrot.lane.b32.xlu0 %v5718_v39, %s5235_s10 }
 0x1c8   :  { %1285 = vrot.lane.b32.xlu1 %v5724_v44, %s5235_s10 }
 0x1c9   :  { %1287 = vrot.lane.b32.xlu0 %v5726_v45, %s5235_s10 }
 0x1cc   :  { %1519 = vrot.lane.b32.xlu1 %v5716_v36, %s5236_s0 }
 0x1cd   :  { %1521 = vrot.lane.b32.xlu0 %v5718_v39, %s5236_s0 }
 0x1d0   :  { %1523 = vrot.lane.b32.xlu1 %v5724_v44, %s5236_s0 }
 0x1d1   :  { %1525 = vrot.lane.b32.xlu0 %v5726_v45, %s5236_s0 }
 0x1d4   :  { %1642 = vrot.lane.b32.xlu1 %v5716_v36, %s5237_s11 }
 0x1d5   :  { %1644 = vrot.lane.b32.xlu0 %v5718_v39, %s5237_s11 }
 0x1d8   :  { %1646 = vrot.lane.b32.xlu1 %v5724_v44, %s5237_s11 }
 0x1d9   :  { %1648 = vrot.lane.b32.xlu0 %v5726_v45, %s5237_s11 }
 0x1dc   :  { %1872 = vrot.lane.b32.xlu1 %v5716_v36, %s5238_s12 }
 0x1dd   :  { %1874 = vrot.lane.b32.xlu0 %v5718_v39, %s5238_s12 }
 0x1e0   :  { %1876 = vrot.lane.b32.xlu1 %v5724_v44, %s5238_s12 }
 0x1e1   :  { %1878 = vrot.lane.b32.xlu0 %v5726_v45, %s5238_s12 }
 0x1e4   :  { %1995 = vrot.lane.b32.xlu1 %v5716_v36, %s5239_s13 }
 0x1e5   :  { %1997 = vrot.lane.b32.xlu0 %v5718_v39, %s5239_s13 }
 0x1e8   :  { %1999 = vrot.lane.b32.xlu1 %v5724_v44, %s5239_s13 }
 0x1e9   :  { %2001 = vrot.lane.b32.xlu0 %v5726_v45, %s5239_s13 }
 0x1ec   :  { %2118 = vrot.lane.b32.xlu1 %v5716_v36, %s5240_s14 }
 0x1ed   :  { %2120 = vrot.lane.b32.xlu0 %v5718_v39, %s5240_s14 }
 0x1f0   :  { %2122 = vrot.lane.b32.xlu1 %v5724_v44, %s5240_s14 }
 0x1f1   :  { %2124 = vrot.lane.b32.xlu0 %v5726_v45, %s5240_s14 }
 0x1f4   :  { %2241 = vrot.lane.b32.xlu1 %v5716_v36, %s5241_s15 }
 0x1f5   :  { %2243 = vrot.lane.b32.xlu0 %v5718_v39, %s5241_s15 }
 0x1f8   :  { %2245 = vrot.lane.b32.xlu1 %v5724_v44, %s5241_s15 }
 0x1f9   :  { %2247 = vrot.lane.b32.xlu0 %v5726_v45, %s5241_s15 }
 0x1fc   :  { %2368 = vperm.xlu1 %5232, %v4867_v13  }
 0x1fd   :  { %2379 = vperm.xlu0 %5231, %v4868_v47  }
 0x22e   :  { %v1304_v14 = vpop.permute.xlu1 %1303 }
 0x22f   :  { %v1306_v49 = vpop.permute.xlu0 %1305 }
 0x230   :  { %v1313_v50 = vsel %vm83_vm0, %v1304_v14, %v1306_v49 }
 0x231   :  { %v1316_v51 = vmul.f32 %v1313_v50, %v5405_v18 }
 0x232   :  { %v1308_v53 = vpop.permute.xlu1 %1307 }
 0x233   :  { %v1322_v57 = vpack.c.bf16 %v1316_v51, %v1316_v51  ;;  %v1312_v59 = vsel %vm83_vm0, %v1306_v49, %v1308_v53  ;;  %v1310_v60 = vpop.permute.xlu0 %1309 }
 0x234   :  { %v1317_v61 = vmul.f32 %v1312_v59, %v5414_v21  ;;  %v1311_v62 = vsel %vm83_vm0, %v1308_v53, %v1310_v60  ;;  %v1314_v15 = vsel %vm83_vm0, %v1310_v60, %v1304_v14 }
 0x235   :  { %v1315_v17 = vmul.f32 %v1314_v15, %v5411_v20  ;;  %v1318_v22 = vmul.f32 %v1311_v62, %v5408_v19  ;;  %4824 = vmatprep.subr.msk.bf16.mxu0 %vm118_vm2, %v1322_v57 }
 0x236   :  { %v1323_v8 = vpack.c.bf16 %v1317_v61, %v1317_v61  ;;  %v1282_v25 = vpop.permute.xlu1 %1281 }
 0x237   :  { %v1321_v26 = vpack.c.bf16 %v1315_v17, %v1315_v17  ;;  %v1324_v27 = vpack.c.bf16 %v1318_v22, %v1318_v22  ;;  %v1284_v28 = vpop.permute.xlu0 %1283 }
 0x238   :  { %v1291_v29 = vsel %vm45_vm1, %v1282_v25, %v1284_v28  ;;  %v1335_v30 = vsel %vm118_vm2, %v1323_v8, 0 }
 0x239   :  { %v1294_v31 = vmul.f32 %v1291_v29, %v5418_v24  ;;  %4826 = vmatprep.subr.msk.bf16.mxu1 %vm118_vm2, %v1324_v27  ;;  %v1329_v12 = vsel %vm118_vm2, %v1321_v26, 0 }
 0x23a   :  { %v1286_v33 = vpop.permute.xlu1 %1285  ;;  %1341 = vmatpush1.bf16.msra.mxu0 %v1329_v12  ;;  %1382 = vmatpush1.bf16.msra.mxu1 %v1335_v30 }
 0x23b   :  { %v1300_v13 = vpack.c.bf16 %v1294_v31, %v1294_v31  ;;  %v1290_v47 = vsel %vm45_vm1, %v1284_v28, %v1286_v33  ;;  %v1288_v14 = vpop.permute.xlu0 %1287 }
 0x23c   :  { %v1295_v49 = vmul.f32 %v1290_v47, %v5438_v41  ;;  %v1289_v50 = vsel %vm45_vm1, %v1286_v33, %v1288_v14  ;;  %v1292_v51 = vsel %vm45_vm1, %v1288_v14, %v1282_v25  ;;  %v4822_v14 = vld [vmem:[%s6572_s1 + $0x24] sm:$0xf] }
 0x23d   :  { %v1293_v53 = vmul.f32 %v1292_v51, %v5435_v40  ;;  %v1296_v57 = vmul.f32 %v1289_v50, %v5447_v46  ;;  %4825 = vmatmul.mubr.msk.bf16.vlgmr.msra.gmra.mrb[4].mxu0 %vm114_vm3, %v4823_v0  ;;  %4827 = vmatmul.mubr.msk.bf16.vlgmr.msra.gmra.mrb[4].mxu1 %vm114_vm3, %v4823_v0 }
 0x23e   :  { %v1301_v59 = vpack.c.bf16 %v1295_v49, %v1295_v49  ;;  %4828 = vmatprep.subr.msk.bf16.mxu0 %vm118_vm2, %v1300_v13  ;;  %v1520_v60 = vpop.permute.xlu1 %1519  ;;  %1469 = vmatprep.mubr.bf16.mxu0 %v5233_v2 }
 0x23f   :  { %v1299_v61 = vpack.c.bf16 %v1293_v53, %v1293_v53  ;;  %v1302_v62 = vpack.c.bf16 %v1296_v57, %v1296_v57  ;;  %v1522_v15 = vpop.permute.xlu0 %1521  ;;  %1510 = vmatprep.mubr.bf16.mxu1 %v5233_v2 }
 0x240   :  { %v1529_v17 = vsel %vm318_vm4, %v1520_v60, %v1522_v15  ;;  %v1432_v22 = vsel %vm118_vm2, %v1301_v59, 0 }
 0x241   :  { %v1532_v8 = vmul.f32 %v1529_v17, %v5459_v54  ;;  %4830 = vmatprep.subr.msk.bf16.mxu1 %vm118_vm2, %v1302_v62  ;;  %v1426_v25 = vsel %vm118_vm2, %v1299_v61, 0 }
 0x242   :  { %v1524_v26 = vpop.permute.xlu1 %1523  ;;  %1438 = vmatpush1.bf16.msra.mxu0 %v1426_v25  ;;  %1479 = vmatpush1.bf16.msra.mxu1 %v1432_v22 }
 0x243   :  { %v1538_v27 = vpack.c.bf16 %v1532_v8, %v1532_v8  ;;  %v1528_v28 = vsel %vm318_vm4, %v1522_v15, %v1524_v26  ;;  %v1526_v29 = vpop.permute.xlu0 %1525 }
 0x244   :  { %v1533_v30 = vmul.f32 %v1528_v28, %v5476_v6  ;;  %v1527_v31 = vsel %vm318_vm4, %v1524_v26, %v1526_v29  ;;  %v1530_v12 = vsel %vm318_vm4, %v1526_v29, %v1520_v60 }
 0x245   :  { %v1531_v33 = vmul.f32 %v1530_v12, %v5473_v5  ;;  %v1534_v0 = vmul.f32 %v1527_v31, %v5479_v7  ;;  %4833 = vmatprep.subr.msk.bf16.mxu0 %vm118_vm2, %v1538_v27 }
 0x246   :  { %v1539_v13 = vpack.c.bf16 %v1533_v30, %v1533_v30  ;;  %v1643_v47 = vpop.permute.xlu1 %1642 }
 0x247   :  { %v1537_v49 = vpack.c.bf16 %v1531_v33, %v1531_v33  ;;  %v1540_v50 = vpack.c.bf16 %v1534_v0, %v1534_v0  ;;  %v1645_v51 = vpop.permute.xlu0 %1644  ;;  %v4832_v33 = vld [vmem:[%s6572_s1 + $0x2c] sm:$0xf] }
 0x248   :  { %v1652_v53 = vsel %vm458_vm5, %v1643_v47, %v1645_v51  ;;  %v1551_v57 = vsel %vm118_vm2, %v1539_v13, 0 }
 0x249   :  { %v1655_v59 = vmul.f32 %v1652_v53, %v5498_v32  ;;  %4829 = vmatmul.mubr.msk.bf16.vlgmr.msra.gmra.mrb[4].mxu0 %vm114_vm3, %v4822_v14  ;;  %4831 = vmatmul.mubr.msk.bf16.vlgmr.msra.gmra.mrb[4].mxu1 %vm114_vm3, %v4822_v14  ;;  %v1545_v60 = vsel %vm118_vm2, %v1537_v49, 0  ;;  %v1770_v14 = vpack.c.bf16 %v5726_v45, %v5726_v45 }
 0x24a   :  { %4835 = vmatprep.subr.msk.bf16.mxu1 %vm118_vm2, %v1540_v50  ;;  %v1647_v61 = vpop.permute.xlu1 %1646  ;;  %1557 = vmatpush1.bf16.msra.mxu0 %v1545_v60  ;;  %v1767_v60 = vpack.c.bf16 %v5716_v36, %v5716_v36 }
 0x24b   :  { %v1661_v62 = vpack.c.bf16 %v1655_v59, %v1655_v59  ;;  %v1651_v15 = vsel %vm458_vm5, %v1645_v51, %v1647_v61  ;;  %1598 = vmatpush1.bf16.msra.mxu1 %v1551_v57  ;;  %v1649_v17 = vpop.permute.xlu0 %1648  ;;  %1588 = vmatprep.mubr.bf16.mxu0 %v5233_v2 }
 0x24c   :  { %v1650_v22 = vsel %vm458_vm5, %v1647_v61, %v1649_v17  ;;  %v1653_v8 = vsel %vm458_vm5, %v1649_v17, %v1643_v47  ;;  %1629 = vmatprep.mubr.bf16.mxu1 %v5233_v2  ;;  %v1656_v25 = vmul.f32 %v1651_v15, %v5509_v43  ;;  %v1768_v47 = vpack.c.bf16 %v5718_v39, %v5718_v39 }
 0x24d   :  { %v1654_v26 = vmul.f32 %v1653_v8, %v5506_v42  ;;  %v1657_v27 = vmul.f32 %v1650_v22, %v5517_v48  ;;  %4838 = vmatprep.subr.msk.bf16.mxu0 %vm118_vm2, %v1661_v62  ;;  %v1769_v61 = vpack.c.bf16 %v5724_v44, %v5724_v44  ;;  %v4837_v62 = vld [vmem:[%s6572_s1 + $0x30] sm:$0xf]  ;;  %v1775_v22 = vsel %vm118_vm2, %v1767_v60, 0 }
 0x24e   :  { %v1662_v29 = vpack.c.bf16 %v1656_v25, %v1656_v25  ;;  %v1873_v31 = vpop.permute.xlu1 %1872 }
 0x24f   :  { %v1663_v28 = vpack.c.bf16 %v1657_v27, %v1657_v27  ;;  %v1660_v30 = vpack.c.bf16 %v1654_v26, %v1654_v26  ;;  %v1875_v12 = vpop.permute.xlu0 %1874  ;;  %v1781_v8 = vsel %vm118_vm2, %v1769_v61, 0 }
 0x250   :  { %v1674_v13 = vsel %vm118_vm2, %v1662_v29, 0  ;;  %v1882_v36 = vsel %vm705_vm6, %v1873_v31, %v1875_v12 }
 0x251   :  { %4840 = vmatprep.subr.msk.bf16.mxu1 %vm118_vm2, %v1663_v28  ;;  %v1668_v0 = vsel %vm118_vm2, %v1660_v30, 0  ;;  %v1884_v27 = vmul.f32 %v1882_v36, %v5570_v37 }
 0x252   :  { %v1877_v49 = vpop.permute.xlu1 %1876 }
 0x253   :  { %v1879_v50 = vpop.permute.xlu0 %1878  ;;  %v1881_v51 = vsel %vm705_vm6, %v1875_v12, %v1877_v49 }
 0x254   :  { %v1883_v39 = vsel %vm705_vm6, %v1879_v50, %v1873_v31  ;;  %v1885_v45 = vmul.f32 %v1881_v51, %v5554_v3  ;;  %v1880_v44 = vsel %vm705_vm6, %v1877_v49, %v1879_v50  ;;  %v1890_v31 = vpack.c.bf16 %v1884_v27, %v1884_v27 }
 0x255   :  { %4834 = vmatmul.mubr.msk.bf16.vlgmr.msra.gmra.mrb[4].mxu0 %vm114_vm3, %v4832_v33  ;;  %4836 = vmatmul.mubr.msk.bf16.vlgmr.msra.gmra.mrb[4].mxu1 %vm114_vm3, %v4832_v33  ;;  %v1887_v53 = vmul.f32 %v1883_v39, %v5550_v4  ;;  %v1886_v28 = vmul.f32 %v1880_v44, %v5574_v1 }
 0x256   :  { %1680 = vmatpush1.bf16.msra.mxu0 %v1668_v0  ;;  %1721 = vmatpush1.bf16.msra.mxu1 %v1674_v13  ;;  %v1996_v57 = vpop.permute.xlu1 %1995  ;;  %v1891_v15 = vpack.c.bf16 %v1885_v45, %v1885_v45  ;;  %v1898_v51 = vsel %vm118_vm2, %v1890_v31, 0 }
 0x257   :  { %4843 = vmatprep.subr.msk.bf16.mxu0 %vm118_vm2, %v1768_v47  ;;  %4845 = vmatprep.subr.msk.bf16.mxu1 %vm118_vm2, %v1770_v14  ;;  %v1998_v59 = vpop.permute.xlu0 %1997  ;;  %v1893_v17 = vpack.c.bf16 %v1887_v53, %v1887_v53  ;;  %v1892_v12 = vpack.c.bf16 %v1886_v28, %v1886_v28  ;;  %v4842_v14 = vld [vmem:[%s6572_s1 + $0x34] sm:$0xf] }
 0x258   :  { %1711 = vmatprep.mubr.bf16.mxu0 %v5233_v2  ;;  %1752 = vmatprep.mubr.bf16.mxu1 %v5233_v2  ;;  %v2005_v45 = vsel %vm845_vm7, %v1996_v57, %v1998_v59 }
 0x259   :  { %v1904_v39 = vsel %vm118_vm2, %v1892_v12, 0 }
 0x25a   :  { %v2000_v25 = vpop.permute.xlu1 %1999 }
 0x25b   :  { %v2002_v26 = vpop.permute.xlu0 %2001  ;;  %v2004_v29 = vsel %vm845_vm7, %v1998_v59, %v2000_v25 }
 0x25c   :  { %v2006_v30 = vsel %vm845_vm7, %v2002_v26, %v1996_v57  ;;  %v2008_v33 = vmul.f32 %v2004_v29, %v5595_v56  ;;  %v2003_v53 = vsel %vm845_vm7, %v2000_v25, %v2002_v26  ;;  %v4847_v26 = vld [vmem:[%s6572_s1 + $0x38] sm:$0xf] }
 0x25d   :  { %v2010_v0 = vmul.f32 %v2006_v30, %v5592_v55 }
 0x25e   :  { %v2119_v13 = vpop.permute.xlu1 %2118  ;;  %v2014_v49 = vpack.c.bf16 %v2008_v33, %v2008_v33 }
 0x25f   :  { %v2121_v47 = vpop.permute.xlu0 %2120  ;;  %v2016_v50 = vpack.c.bf16 %v2010_v0, %v2010_v0 }
 0x260   :  { %v2128_v31 = vsel %vm985_vm8, %v2119_v13, %v2121_v47 }
 0x261   :  { %4839 = vmatmul.mubr.msk.bf16.vlgmr.msra.gmra.mrb[4].mxu0 %vm114_vm3, %v4837_v62  ;;  %4841 = vmatmul.mubr.msk.bf16.vlgmr.msra.gmra.mrb[4].mxu1 %vm114_vm3, %v4837_v62  ;;  %v2007_v62 = vmul.f32 %v2005_v45, %v5607_v16 }
 0x262   :  { %1787 = vmatpush1.bf16.msra.mxu0 %v1775_v22  ;;  %1828 = vmatpush1.bf16.msra.mxu1 %v1781_v8  ;;  %v2123_v60 = vpop.permute.xlu1 %2122 }
 0x263   :  { %4848 = vmatprep.subr.msk.bf16.mxu0 %vm118_vm2, %v1891_v15  ;;  %4850 = vmatprep.subr.msk.bf16.mxu1 %vm118_vm2, %v1893_v17  ;;  %v2125_v61 = vpop.permute.xlu0 %2124  ;;  %v2009_v15 = vmul.f32 %v2003_v53, %v5612_v23  ;;  %v2127_v57 = vsel %vm985_vm8, %v2121_v47, %v2123_v60  ;;  %v2013_v17 = vpack.c.bf16 %v2007_v62, %v2007_v62  ;;  %v4852_v53 = vld [vmem:[%s6572_s1 + $0x3c] sm:$0xf] }
 0x264   :  { %1818 = vmatprep.mubr.bf16.mxu0 %v5233_v2  ;;  %1859 = vmatprep.mubr.bf16.mxu1 %v5233_v2  ;;  %v2129_v59 = vsel %vm985_vm8, %v2125_v61, %v2119_v13  ;;  %v2131_v8 = vmul.f32 %v2127_v57, %v5632_v35  ;;  %v2126_v12 = vsel %vm985_vm8, %v2123_v60, %v2125_v61 }
 0x265   :  { %v2015_v22 = vpack.c.bf16 %v2009_v15, %v2009_v15  ;;  %v2133_v36 = vmul.f32 %v2129_v59, %v5629_v34  ;;  %v2021_v29 = vsel %vm118_vm2, %v2013_v17, 0 }
 0x266   :  { %v2242_v44 = vpop.permute.xlu1 %2241  ;;  %v2137_v27 = vpack.c.bf16 %v2131_v8, %v2131_v8 }
 0x267   :  { %v2244_v25 = vpop.permute.xlu0 %2243  ;;  %v2139_v28 = vpack.c.bf16 %v2133_v36, %v2133_v36  ;;  %v2027_v30 = vsel %vm118_vm2, %v2015_v22, 0 }
 0x268   :  { %v2251_v57 = vsel %vm1125_vm9, %v2242_v44, %v2244_v25 }
 0x269   :  { %v2253_v17 = vmul.f32 %v2251_v57, %v5682_v10 }
 0x26a   :  { %v2246_v33 = vpop.permute.xlu1 %2245 }
 0x26b   :  { %v2248_v0 = vpop.permute.xlu0 %2247  ;;  %v2250_v13 = vsel %vm1125_vm9, %v2244_v25, %v2246_v33  ;;  %v2259_v8 = vpack.c.bf16 %v2253_v17, %v2253_v17  ;;  %v4914_v17 = vld [vmem:[%s6569_s2 + $0x10] sm:$0xff] }
 0x26c   :  { %v2252_v47 = vsel %vm1125_vm9, %v2248_v0, %v2242_v44  ;;  %v2249_v59 = vsel %vm1125_vm9, %v2246_v33, %v2248_v0  ;;  %v4857_v44 = vld [vmem:[%s6572_s1 + $0x40] sm:$0xf] }
 0x26d   :  { %4844 = vmatmul.mubr.msk.bf16.vlgmr.msra.gmra.mrb[4].mxu0 %vm114_vm3, %v4842_v14  ;;  %4846 = vmatmul.mubr.msk.bf16.vlgmr.msra.gmra.mrb[4].mxu1 %vm114_vm3, %v4842_v14  ;;  %v2130_v14 = vmul.f32 %v2128_v31, %v5644_v52  ;;  %v2256_v45 = vmul.f32 %v2252_v47, %v5666_v63  ;;  %v2255_v22 = vmul.f32 %v2249_v59, %v5686_v38  ;;  %v2267_v25 = vsel %vm118_vm2, %v2259_v8, 0 }
 0x26e   :  { %1910 = vmatpush1.bf16.msra.mxu0 %v1898_v51  ;;  %1951 = vmatpush1.bf16.msra.mxu1 %v1904_v39  ;;  %v2254_v39 = vmul.f32 %v2250_v13, %v5669_v11 }
 0x26f   :  { %4853 = vmatprep.subr.msk.bf16.mxu0 %vm118_vm2, %v2014_v49  ;;  %4855 = vmatprep.subr.msk.bf16.mxu1 %vm118_vm2, %v2016_v50  ;;  %v2132_v49 = vmul.f32 %v2126_v12, %v5649_v58  ;;  %v2136_v50 = vpack.c.bf16 %v2130_v14, %v2130_v14  ;;  %v2262_v61 = vpack.c.bf16 %v2256_v45, %v2256_v45 }
 0x270   :  { %1941 = vmatprep.mubr.bf16.mxu0 %v5233_v2  ;;  %1982 = vmatprep.mubr.bf16.mxu1 %v5233_v2  ;;  %v2260_v60 = vpack.c.bf16 %v2254_v39, %v2254_v39  ;;  %v2261_v36 = vpack.c.bf16 %v2255_v22, %v2255_v22  ;;  %v4915_v22 = vld [vmem:[%s6570_s3 + $0x10] sm:$0xff] }
 0x271   :  { %v2138_v51 = vpack.c.bf16 %v2132_v49, %v2132_v49  ;;  %v2144_v62 = vsel %vm118_vm2, %v2136_v50, 0 }
 0x273   :  { %v2150_v15 = vsel %vm118_vm2, %v2138_v51, 0 }
 0x279   :  { %4849 = vmatmul.mubr.msk.bf16.vlgmr.msra.gmra.mrb[4].mxu0 %vm114_vm3, %v4847_v26  ;;  %4851 = vmatmul.mubr.msk.bf16.vlgmr.msra.gmra.mrb[4].mxu1 %vm114_vm3, %v4847_v26  ;;  %v2273_v26 = vsel %vm118_vm2, %v2261_v36, 0 }
 0x27a   :  { %2033 = vmatpush1.bf16.msra.mxu0 %v2021_v29  ;;  %2074 = vmatpush1.bf16.msra.mxu1 %v2027_v30 }
 0x27b   :  { %4858 = vmatprep.subr.msk.bf16.mxu0 %vm118_vm2, %v2137_v27  ;;  %4860 = vmatprep.subr.msk.bf16.mxu1 %vm118_vm2, %v2139_v28  ;;  %v4862_v27 = vld [vmem:[%s6572_s1 + $0x44] sm:$0xf]  ;;  %v2369_v28 = vpop.permute.xlu1 %2368 }
 0x27c   :  { %2064 = vmatprep.mubr.bf16.mxu0 %v5233_v2  ;;  %2105 = vmatprep.mubr.bf16.mxu1 %v5233_v2  ;;  %v2380_v29 = vpop.permute.xlu0 %2379 }
 0x285   :  { %4854 = vmatmul.mubr.msk.bf16.vlgmr.msra.gmra.mrb[4].mxu0 %vm114_vm3, %v4852_v53  ;;  %4856 = vmatmul.mubr.msk.bf16.vlgmr.msra.gmra.mrb[4].mxu1 %vm114_vm3, %v4852_v53 }
 0x286   :  { %2156 = vmatpush1.bf16.msra.mxu0 %v2144_v62  ;;  %2197 = vmatpush1.bf16.msra.mxu1 %v2150_v15 }
 0x287   :  { %4863 = vmatprep.subr.msk.bf16.mxu0 %vm118_vm2, %v2260_v60  ;;  %4865 = vmatprep.subr.msk.bf16.mxu1 %vm118_vm2, %v2262_v61 }
 0x288   :  { %2187 = vmatprep.mubr.bf16.mxu0 %v5233_v2  ;;  %2228 = vmatprep.mubr.bf16.mxu1 %v5233_v2 }
 0x291   :  { %4859 = vmatmul.mubr.msk.bf16.vlgmr.msra.gmra.mrb[4].mxu0 %vm114_vm3, %v4857_v44  ;;  %4861 = vmatmul.mubr.msk.bf16.vlgmr.msra.gmra.mrb[4].mxu1 %vm114_vm3, %v4857_v44 }
 0x292   :  { %2279 = vmatpush1.bf16.msra.mxu0 %v2267_v25  ;;  %2320 = vmatpush1.bf16.msra.mxu1 %v2273_v26 }
 0x293   :  { %2310 = vmatprep.mubr.bf16.mxu0 %v5233_v2  ;;  %2351 = vmatprep.mubr.bf16.mxu1 %v5233_v2 }
 0x29d   :  { %4864 = vmatmul.mubr.msk.bf16.vlgmr.msra.gmra.mrb[4].mxu0 %vm114_vm3, %v4862_v27  ;;  %4866 = vmatmul.mubr.msk.bf16.vlgmr.msra.gmra.mrb[4].mxu1 %vm114_vm3, %v4862_v27 }
 0x29e   :  { %2481 = vmatprep.mubr.bf16.mxu0 %v5233_v2  ;;  %2522 = vmatprep.mubr.bf16.mxu1 %v5233_v2 }
 0x370   :  { %v2312_v30 = vpop.f32.mrb[4].mxu0  ;;  %v2353_v31 = vpop.f32.mrb[4].mxu1 }
 0x371   :  { %v2371_v12 = vmul.f32 %v2369_v28, %v2312_v30  ;;  %v2373_v33 = vmul.f32 %v2369_v28, %v2353_v31  ;;  %v2314_v0 = vpop.f32.mrb[5].mxu0  ;;  %v2355_v14 = vpop.f32.mrb[5].mxu1 }
 0x372   :  { %v2372_v49 = vmul.f32 %v2369_v28, %v2314_v0  ;;  %v2374_v13 = vmul.f32 %v2369_v28, %v2355_v14  ;;  %v2316_v47 = vpop.f32.mrb[6].mxu0  ;;  %v2357_v50 = vpop.f32.mrb[6].mxu1 }
 0x373   :  { %v2382_v51 = vadd.f32 %v2380_v29, %v2371_v12  ;;  %v2317_v39 = vpop.f32.mrb[7].mxu0  ;;  %v2358_v45 = vpop.f32.mrb[7].mxu1  ;;  %v2384_v61 = vadd.f32 %v2380_v29, %v2373_v33 }
 0x374   :  { %v2383_v53 = vadd.f32 %v2380_v29, %v2372_v49  ;;  %v2385_v15 = vadd.f32 %v2380_v29, %v2374_v13 }
 0x375   :  { %v5997_v60 = vmax.f32 %v2382_v51, 0.0  ;;  %v6005_v57 = vmax.f32 %v2384_v61, 0.0 }
 0x376   :  { %v5999_v62 = vmax.f32 %v2383_v53, 0.0  ;;  %v6007_v59 = vmax.f32 %v2385_v15, 0.0  ;;  %v4870_v15 = vld [vmem:[%s6572_s1 + $0x4c] sm:$0xf] }
 0x377   :  { %2412 = vrot.lane.b32.xlu1 %v5997_v60, %s5234_s28 }
 0x378   :  { %2414 = vrot.lane.b32.xlu0 %v5999_v62, %s5234_s28 }
 0x37b   :  { %2416 = vrot.lane.b32.xlu1 %v6005_v57, %s5234_s28 }
 0x37c   :  { %2418 = vrot.lane.b32.xlu0 %v6007_v59, %s5234_s28 }
 0x37f   :  { %2390 = vrot.lane.b32.xlu1 %v5997_v60, %s5235_s10 }
 0x380   :  { %2392 = vrot.lane.b32.xlu0 %v5999_v62, %s5235_s10 }
 0x383   :  { %2394 = vrot.lane.b32.xlu1 %v6005_v57, %s5235_s10 }
 0x384   :  { %2396 = vrot.lane.b32.xlu0 %v6007_v59, %s5235_s10 }
 0x387   :  { %2628 = vrot.lane.b32.xlu1 %v5997_v60, %s5236_s0 }
 0x388   :  { %2630 = vrot.lane.b32.xlu0 %v5999_v62, %s5236_s0 }
 0x38b   :  { %2632 = vrot.lane.b32.xlu1 %v6005_v57, %s5236_s0 }
 0x38c   :  { %2634 = vrot.lane.b32.xlu0 %v6007_v59, %s5236_s0 }
 0x38f   :  { %2751 = vrot.lane.b32.xlu1 %v5997_v60, %s5237_s11 }
 0x390   :  { %2753 = vrot.lane.b32.xlu0 %v5999_v62, %s5237_s11 }
 0x393   :  { %2755 = vrot.lane.b32.xlu1 %v6005_v57, %s5237_s11 }
 0x394   :  { %2757 = vrot.lane.b32.xlu0 %v6007_v59, %s5237_s11 }
 0x397   :  { %2981 = vrot.lane.b32.xlu1 %v5997_v60, %s5238_s12 }
 0x398   :  { %2983 = vrot.lane.b32.xlu0 %v5999_v62, %s5238_s12 }
 0x39b   :  { %2985 = vrot.lane.b32.xlu1 %v6005_v57, %s5238_s12 }
 0x39c   :  { %2987 = vrot.lane.b32.xlu0 %v6007_v59, %s5238_s12 }
 0x39f   :  { %3104 = vrot.lane.b32.xlu1 %v5997_v60, %s5239_s13 }
 0x3a0   :  { %3106 = vrot.lane.b32.xlu0 %v5999_v62, %s5239_s13 }
 0x3a3   :  { %3108 = vrot.lane.b32.xlu1 %v6005_v57, %s5239_s13 }
 0x3a4   :  { %3110 = vrot.lane.b32.xlu0 %v6007_v59, %s5239_s13 }
 0x3a7   :  { %3227 = vrot.lane.b32.xlu1 %v5997_v60, %s5240_s14 }
 0x3a8   :  { %3229 = vrot.lane.b32.xlu0 %v5999_v62, %s5240_s14 }
 0x3ab   :  { %3231 = vrot.lane.b32.xlu1 %v6005_v57, %s5240_s14 }
 0x3ac   :  { %3233 = vrot.lane.b32.xlu0 %v6007_v59, %s5240_s14 }
 0x3af   :  { %3350 = vrot.lane.b32.xlu1 %v5997_v60, %s5241_s15 }
 0x3b0   :  { %3352 = vrot.lane.b32.xlu0 %v5999_v62, %s5241_s15 }
 0x3b3   :  { %3354 = vrot.lane.b32.xlu1 %v6005_v57, %s5241_s15 }
 0x3b4   :  { %3356 = vrot.lane.b32.xlu0 %v6007_v59, %s5241_s15 }
 0x3b7   :  { %3477 = vperm.xlu1 %5232, %v4914_v17  }
 0x3b8   :  { %3488 = vperm.xlu0 %5231, %v4915_v22  }
 0x3e9   :  { %v2413_v8 = vpop.permute.xlu1 %2412 }
 0x3ea   :  { %v2415_v36 = vpop.permute.xlu0 %2414 }
 0x3eb   :  { %v2422_v44 = vsel %vm83_vm0, %v2413_v8, %v2415_v36 }
 0x3ec   :  { %v2425_v25 = vmul.f32 %v2422_v44, %v5405_v18 }
 0x3ed   :  { %v2417_v26 = vpop.permute.xlu1 %2416 }
 0x3ee   :  { %v2431_v27 = vpack.c.bf16 %v2425_v25, %v2425_v25  ;;  %v2421_v28 = vsel %vm83_vm0, %v2415_v36, %v2417_v26  ;;  %v2419_v29 = vpop.permute.xlu0 %2418 }
 0x3ef   :  { %v2426_v30 = vmul.f32 %v2421_v28, %v5414_v21  ;;  %v2420_v31 = vsel %vm83_vm0, %v2417_v26, %v2419_v29  ;;  %v2423_v12 = vsel %vm83_vm0, %v2419_v29, %v2413_v8 }
 0x3f0   :  { %v2424_v33 = vmul.f32 %v2423_v12, %v5411_v20  ;;  %v2427_v0 = vmul.f32 %v2420_v31, %v5408_v19  ;;  %4871 = vmatprep.subr.msk.bf16.mxu0 %vm118_vm2, %v2431_v27 }
 0x3f1   :  { %v2432_v14 = vpack.c.bf16 %v2426_v30, %v2426_v30  ;;  %v2391_v49 = vpop.permute.xlu1 %2390 }
 0x3f2   :  { %v2430_v13 = vpack.c.bf16 %v2424_v33, %v2424_v33  ;;  %v2433_v47 = vpack.c.bf16 %v2427_v0, %v2427_v0  ;;  %v2393_v50 = vpop.permute.xlu0 %2392 }
 0x3f3   :  { %v2400_v51 = vsel %vm45_vm1, %v2391_v49, %v2393_v50  ;;  %v2444_v39 = vsel %vm118_vm2, %v2432_v14, 0 }
 0x3f4   :  { %v2403_v45 = vmul.f32 %v2400_v51, %v5418_v24  ;;  %4873 = vmatprep.subr.msk.bf16.mxu1 %vm118_vm2, %v2433_v47  ;;  %v2438_v53 = vsel %vm118_vm2, %v2430_v13, 0 }
 0x3f5   :  { %v2395_v61 = vpop.permute.xlu1 %2394  ;;  %2450 = vmatpush1.bf16.msra.mxu0 %v2438_v53  ;;  %2491 = vmatpush1.bf16.msra.mxu1 %v2444_v39 }
 0x3f6   :  { %v2409_v17 = vpack.c.bf16 %v2403_v45, %v2403_v45  ;;  %v2399_v22 = vsel %vm45_vm1, %v2393_v50, %v2395_v61  ;;  %v2397_v8 = vpop.permute.xlu0 %2396 }
 0x3f7   :  { %v2404_v36 = vmul.f32 %v2399_v22, %v5438_v41  ;;  %v2398_v44 = vsel %vm45_vm1, %v2395_v61, %v2397_v8  ;;  %v2401_v25 = vsel %vm45_vm1, %v2397_v8, %v2391_v49  ;;  %v4869_v8 = vld [vmem:[%s6572_s1 + $0x48] sm:$0xf] }
 0x3f8   :  { %v2402_v26 = vmul.f32 %v2401_v25, %v5435_v40  ;;  %v2405_v27 = vmul.f32 %v2398_v44, %v5447_v46  ;;  %4872 = vmatmul.mubr.msk.bf16.vlgmr.msra.gmra.mrb[8].mxu0 %vm114_vm3, %v4870_v15  ;;  %4874 = vmatmul.mubr.msk.bf16.vlgmr.msra.gmra.mrb[8].mxu1 %vm114_vm3, %v4870_v15 }
 0x3f9   :  { %v2410_v28 = vpack.c.bf16 %v2404_v36, %v2404_v36  ;;  %4875 = vmatprep.subr.msk.bf16.mxu0 %vm118_vm2, %v2409_v17  ;;  %v2629_v29 = vpop.permute.xlu1 %2628  ;;  %2578 = vmatprep.mubr.bf16.mxu0 %v5233_v2 }
 0x3fa   :  { %v2408_v30 = vpack.c.bf16 %v2402_v26, %v2402_v26  ;;  %v2411_v31 = vpack.c.bf16 %v2405_v27, %v2405_v27  ;;  %v2631_v12 = vpop.permute.xlu0 %2630  ;;  %2619 = vmatprep.mubr.bf16.mxu1 %v5233_v2 }
 0x3fb   :  { %v2638_v33 = vsel %vm318_vm4, %v2629_v29, %v2631_v12  ;;  %v2541_v0 = vsel %vm118_vm2, %v2410_v28, 0 }
 0x3fc   :  { %v2641_v14 = vmul.f32 %v2638_v33, %v5459_v54  ;;  %4877 = vmatprep.subr.msk.bf16.mxu1 %vm118_vm2, %v2411_v31  ;;  %v2535_v49 = vsel %vm118_vm2, %v2408_v30, 0 }
 0x3fd   :  { %v2633_v13 = vpop.permute.xlu1 %2632  ;;  %2547 = vmatpush1.bf16.msra.mxu0 %v2535_v49  ;;  %2588 = vmatpush1.bf16.msra.mxu1 %v2541_v0 }
 0x3fe   :  { %v2647_v47 = vpack.c.bf16 %v2641_v14, %v2641_v14  ;;  %v2637_v50 = vsel %vm318_vm4, %v2631_v12, %v2633_v13  ;;  %v2635_v51 = vpop.permute.xlu0 %2634 }
 0x3ff   :  { %v2642_v39 = vmul.f32 %v2637_v50, %v5476_v6  ;;  %v2636_v45 = vsel %vm318_vm4, %v2633_v13, %v2635_v51  ;;  %v2639_v53 = vsel %vm318_vm4, %v2635_v51, %v2629_v29 }
 0x400   :  { %v2640_v61 = vmul.f32 %v2639_v53, %v5473_v5  ;;  %v2643_v15 = vmul.f32 %v2636_v45, %v5479_v7  ;;  %4880 = vmatprep.subr.msk.bf16.mxu0 %vm118_vm2, %v2647_v47 }
 0x401   :  { %v2648_v17 = vpack.c.bf16 %v2642_v39, %v2642_v39  ;;  %v2752_v22 = vpop.permute.xlu1 %2751 }
 0x402   :  { %v2646_v36 = vpack.c.bf16 %v2640_v61, %v2640_v61  ;;  %v2649_v44 = vpack.c.bf16 %v2643_v15, %v2643_v15  ;;  %v2754_v25 = vpop.permute.xlu0 %2753  ;;  %v4879_v61 = vld [vmem:[%s6572_s1 + $0x50] sm:$0xf] }
 0x403   :  { %v2761_v26 = vsel %vm458_vm5, %v2752_v22, %v2754_v25  ;;  %v2660_v27 = vsel %vm118_vm2, %v2648_v17, 0 }
 0x404   :  { %v2764_v28 = vmul.f32 %v2761_v26, %v5498_v32  ;;  %4876 = vmatmul.mubr.msk.bf16.vlgmr.msra.gmra.mrb[8].mxu0 %vm114_vm3, %v4869_v8  ;;  %4878 = vmatmul.mubr.msk.bf16.vlgmr.msra.gmra.mrb[8].mxu1 %vm114_vm3, %v4869_v8  ;;  %v2654_v29 = vsel %vm118_vm2, %v2646_v36, 0  ;;  %v2879_v8 = vpack.c.bf16 %v6007_v59, %v6007_v59 }
 0x405   :  { %4882 = vmatprep.subr.msk.bf16.mxu1 %vm118_vm2, %v2649_v44  ;;  %v2756_v30 = vpop.permute.xlu1 %2755  ;;  %2666 = vmatpush1.bf16.msra.mxu0 %v2654_v29  ;;  %v2876_v29 = vpack.c.bf16 %v5997_v60, %v5997_v60 }
 0x406   :  { %v2770_v31 = vpack.c.bf16 %v2764_v28, %v2764_v28  ;;  %v2760_v12 = vsel %vm458_vm5, %v2754_v25, %v2756_v30  ;;  %2707 = vmatpush1.bf16.msra.mxu1 %v2660_v27  ;;  %v2758_v33 = vpop.permute.xlu0 %2757  ;;  %2697 = vmatprep.mubr.bf16.mxu0 %v5233_v2 }
 0x407   :  { %v2759_v0 = vsel %vm458_vm5, %v2756_v30, %v2758_v33  ;;  %v2762_v14 = vsel %vm458_vm5, %v2758_v33, %v2752_v22  ;;  %2738 = vmatprep.mubr.bf16.mxu1 %v5233_v2  ;;  %v2765_v49 = vmul.f32 %v2760_v12, %v5509_v43  ;;  %v2877_v22 = vpack.c.bf16 %v5999_v62, %v5999_v62 }
 0x408   :  { %v2763_v13 = vmul.f32 %v2762_v14, %v5506_v42  ;;  %v2766_v47 = vmul.f32 %v2759_v0, %v5517_v48  ;;  %4885 = vmatprep.subr.msk.bf16.mxu0 %vm118_vm2, %v2770_v31  ;;  %v2878_v30 = vpack.c.bf16 %v6005_v57, %v6005_v57  ;;  %v4884_v31 = vld [vmem:[%s6572_s1 + $0x54] sm:$0xf]  ;;  %v2884_v0 = vsel %vm118_vm2, %v2876_v29, 0 }
 0x409   :  { %v2771_v51 = vpack.c.bf16 %v2765_v49, %v2765_v49  ;;  %v2982_v45 = vpop.permute.xlu1 %2981 }
 0x40a   :  { %v2772_v50 = vpack.c.bf16 %v2766_v47, %v2766_v47  ;;  %v2769_v39 = vpack.c.bf16 %v2763_v13, %v2763_v13  ;;  %v2984_v53 = vpop.permute.xlu0 %2983  ;;  %v2890_v14 = vsel %vm118_vm2, %v2878_v30, 0 }
 0x40b   :  { %v2783_v17 = vsel %vm118_vm2, %v2771_v51, 0  ;;  %v2991_v60 = vsel %vm705_vm6, %v2982_v45, %v2984_v53 }
 0x40c   :  { %4887 = vmatprep.subr.msk.bf16.mxu1 %vm118_vm2, %v2772_v50  ;;  %v2777_v15 = vsel %vm118_vm2, %v2769_v39, 0  ;;  %v2993_v47 = vmul.f32 %v2991_v60, %v5570_v37 }
 0x40d   :  { %v2986_v36 = vpop.permute.xlu1 %2985 }
 0x40e   :  { %v2988_v44 = vpop.permute.xlu0 %2987  ;;  %v2990_v25 = vsel %vm705_vm6, %v2984_v53, %v2986_v36 }
 0x40f   :  { %v2992_v62 = vsel %vm705_vm6, %v2988_v44, %v2982_v45  ;;  %v2994_v59 = vmul.f32 %v2990_v25, %v5554_v3  ;;  %v2989_v57 = vsel %vm705_vm6, %v2986_v36, %v2988_v44  ;;  %v2999_v45 = vpack.c.bf16 %v2993_v47, %v2993_v47 }
 0x410   :  { %4881 = vmatmul.mubr.msk.bf16.vlgmr.msra.gmra.mrb[8].mxu0 %vm114_vm3, %v4879_v61  ;;  %4883 = vmatmul.mubr.msk.bf16.vlgmr.msra.gmra.mrb[8].mxu1 %vm114_vm3, %v4879_v61  ;;  %v2996_v26 = vmul.f32 %v2992_v62, %v5550_v4  ;;  %v2995_v50 = vmul.f32 %v2989_v57, %v5574_v1 }
 0x411   :  { %2789 = vmatpush1.bf16.msra.mxu0 %v2777_v15  ;;  %2830 = vmatpush1.bf16.msra.mxu1 %v2783_v17  ;;  %v3105_v27 = vpop.permute.xlu1 %3104  ;;  %v3000_v12 = vpack.c.bf16 %v2994_v59, %v2994_v59  ;;  %v3007_v25 = vsel %vm118_vm2, %v2999_v45, 0 }
 0x412   :  { %4890 = vmatprep.subr.msk.bf16.mxu0 %vm118_vm2, %v2877_v22  ;;  %4892 = vmatprep.subr.msk.bf16.mxu1 %vm118_vm2, %v2879_v8  ;;  %v3107_v28 = vpop.permute.xlu0 %3106  ;;  %v3002_v33 = vpack.c.bf16 %v2996_v26, %v2996_v26  ;;  %v3001_v53 = vpack.c.bf16 %v2995_v50, %v2995_v50  ;;  %v4889_v8 = vld [vmem:[%s6572_s1 + $0x58] sm:$0xf] }
 0x413   :  { %2820 = vmatprep.mubr.bf16.mxu0 %v5233_v2  ;;  %2861 = vmatprep.mubr.bf16.mxu1 %v5233_v2  ;;  %v3114_v59 = vsel %vm845_vm7, %v3105_v27, %v3107_v28 }
 0x414   :  { %v3013_v62 = vsel %vm118_vm2, %v3001_v53, 0 }
 0x415   :  { %v3109_v49 = vpop.permute.xlu1 %3108 }
 0x416   :  { %v3111_v13 = vpop.permute.xlu0 %3110  ;;  %v3113_v51 = vsel %vm845_vm7, %v3107_v28, %v3109_v49 }
 0x417   :  { %v3115_v39 = vsel %vm845_vm7, %v3111_v13, %v3105_v27  ;;  %v3117_v61 = vmul.f32 %v3113_v51, %v5595_v56  ;;  %v3112_v26 = vsel %vm845_vm7, %v3109_v49, %v3111_v13  ;;  %v4894_v13 = vld [vmem:[%s6572_s1 + $0x5c] sm:$0xf] }
 0x418   :  { %v3119_v15 = vmul.f32 %v3115_v39, %v5592_v55 }
 0x419   :  { %v3228_v17 = vpop.permute.xlu1 %3227  ;;  %v3123_v36 = vpack.c.bf16 %v3117_v61, %v3117_v61 }
 0x41a   :  { %v3230_v22 = vpop.permute.xlu0 %3229  ;;  %v3125_v44 = vpack.c.bf16 %v3119_v15, %v3119_v15 }
 0x41b   :  { %v3237_v45 = vsel %vm985_vm8, %v3228_v17, %v3230_v22 }
 0x41c   :  { %4886 = vmatmul.mubr.msk.bf16.vlgmr.msra.gmra.mrb[8].mxu0 %vm114_vm3, %v4884_v31  ;;  %4888 = vmatmul.mubr.msk.bf16.vlgmr.msra.gmra.mrb[8].mxu1 %vm114_vm3, %v4884_v31  ;;  %v3116_v31 = vmul.f32 %v3114_v59, %v5607_v16 }
 0x41d   :  { %2896 = vmatpush1.bf16.msra.mxu0 %v2884_v0  ;;  %2937 = vmatpush1.bf16.msra.mxu1 %v2890_v14  ;;  %v3232_v29 = vpop.permute.xlu1 %3231 }
 0x41e   :  { %4895 = vmatprep.subr.msk.bf16.mxu0 %vm118_vm2, %v3000_v12  ;;  %4897 = vmatprep.subr.msk.bf16.mxu1 %vm118_vm2, %v3002_v33  ;;  %v3234_v30 = vpop.permute.xlu0 %3233  ;;  %v3118_v12 = vmul.f32 %v3112_v26, %v5612_v23  ;;  %v3236_v27 = vsel %vm985_vm8, %v3230_v22, %v3232_v29  ;;  %v3122_v33 = vpack.c.bf16 %v3116_v31, %v3116_v31  ;;  %v4899_v26 = vld [vmem:[%s6572_s1 + $0x60] sm:$0xf] }
 0x41f   :  { %2927 = vmatprep.mubr.bf16.mxu0 %v5233_v2  ;;  %2968 = vmatprep.mubr.bf16.mxu1 %v5233_v2  ;;  %v3238_v28 = vsel %vm985_vm8, %v3234_v30, %v3228_v17  ;;  %v3240_v14 = vmul.f32 %v3236_v27, %v5632_v35  ;;  %v3235_v53 = vsel %vm985_vm8, %v3232_v29, %v3234_v30 }
 0x420   :  { %v3124_v0 = vpack.c.bf16 %v3118_v12, %v3118_v12  ;;  %v3242_v60 = vmul.f32 %v3238_v28, %v5629_v34  ;;  %v3130_v51 = vsel %vm118_vm2, %v3122_v33, 0 }
 0x421   :  { %v3351_v57 = vpop.permute.xlu1 %3350  ;;  %v3246_v47 = vpack.c.bf16 %v3240_v14, %v3240_v14 }
 0x422   :  { %v3353_v49 = vpop.permute.xlu0 %3352  ;;  %v3248_v50 = vpack.c.bf16 %v3242_v60, %v3242_v60  ;;  %v3136_v39 = vsel %vm118_vm2, %v3124_v0, 0 }
 0x423   :  { %v3360_v27 = vsel %vm1125_vm9, %v3351_v57, %v3353_v49 }
 0x424   :  { %v3362_v33 = vmul.f32 %v3360_v27, %v5682_v10 }
 0x425   :  { %v3355_v61 = vpop.permute.xlu1 %3354 }
 0x426   :  { %v3357_v15 = vpop.permute.xlu0 %3356  ;;  %v3359_v17 = vsel %vm1125_vm9, %v3353_v49, %v3355_v61  ;;  %v3368_v14 = vpack.c.bf16 %v3362_v33, %v3362_v33  ;;  %v4961_v33 = vld [vmem:[%s6569_s2 + $0x18] sm:$0xff] }
 0x427   :  { %v3361_v22 = vsel %vm1125_vm9, %v3357_v15, %v3351_v57  ;;  %v3358_v28 = vsel %vm1125_vm9, %v3355_v61, %v3357_v15  ;;  %v4904_v57 = vld [vmem:[%s6572_s1 + $0x64] sm:$0xf] }
 0x428   :  { %4891 = vmatmul.mubr.msk.bf16.vlgmr.msra.gmra.mrb[8].mxu0 %vm114_vm3, %v4889_v8  ;;  %4893 = vmatmul.mubr.msk.bf16.vlgmr.msra.gmra.mrb[8].mxu1 %vm114_vm3, %v4889_v8  ;;  %v3239_v8 = vmul.f32 %v3237_v45, %v5644_v52  ;;  %v3365_v59 = vmul.f32 %v3361_v22, %v5666_v63  ;;  %v3364_v0 = vmul.f32 %v3358_v28, %v5686_v38  ;;  %v3376_v49 = vsel %vm118_vm2, %v3368_v14, 0 }
 0x429   :  { %3019 = vmatpush1.bf16.msra.mxu0 %v3007_v25  ;;  %3060 = vmatpush1.bf16.msra.mxu1 %v3013_v62  ;;  %v3363_v62 = vmul.f32 %v3359_v17, %v5669_v11 }
 0x42a   :  { %4900 = vmatprep.subr.msk.bf16.mxu0 %vm118_vm2, %v3123_v36  ;;  %4902 = vmatprep.subr.msk.bf16.mxu1 %vm118_vm2, %v3125_v44  ;;  %v3241_v36 = vmul.f32 %v3235_v53, %v5649_v58  ;;  %v3245_v44 = vpack.c.bf16 %v3239_v8, %v3239_v8  ;;  %v3371_v30 = vpack.c.bf16 %v3365_v59, %v3365_v59 }
 0x42b   :  { %3050 = vmatprep.mubr.bf16.mxu0 %v5233_v2  ;;  %3091 = vmatprep.mubr.bf16.mxu1 %v5233_v2  ;;  %v3369_v29 = vpack.c.bf16 %v3363_v62, %v3363_v62  ;;  %v3370_v60 = vpack.c.bf16 %v3364_v0, %v3364_v0  ;;  %v4962_v0 = vld [vmem:[%s6570_s3 + $0x18] sm:$0xff] }
 0x42c   :  { %v3247_v25 = vpack.c.bf16 %v3241_v36, %v3241_v36  ;;  %v3253_v31 = vsel %vm118_vm2, %v3245_v44, 0 }
 0x42e   :  { %v3259_v12 = vsel %vm118_vm2, %v3247_v25, 0 }
 0x434   :  { %4896 = vmatmul.mubr.msk.bf16.vlgmr.msra.gmra.mrb[8].mxu0 %vm114_vm3, %v4894_v13  ;;  %4898 = vmatmul.mubr.msk.bf16.vlgmr.msra.gmra.mrb[8].mxu1 %vm114_vm3, %v4894_v13  ;;  %v3382_v13 = vsel %vm118_vm2, %v3370_v60, 0 }
 0x435   :  { %3142 = vmatpush1.bf16.msra.mxu0 %v3130_v51  ;;  %3183 = vmatpush1.bf16.msra.mxu1 %v3136_v39 }
 0x436   :  { %4905 = vmatprep.subr.msk.bf16.mxu0 %vm118_vm2, %v3246_v47  ;;  %4907 = vmatprep.subr.msk.bf16.mxu1 %vm118_vm2, %v3248_v50  ;;  %v4909_v47 = vld [vmem:[%s6572_s1 + $0x68] sm:$0xf]  ;;  %v3478_v50 = vpop.permute.xlu1 %3477 }
 0x437   :  { %3173 = vmatprep.mubr.bf16.mxu0 %v5233_v2  ;;  %3214 = vmatprep.mubr.bf16.mxu1 %v5233_v2  ;;  %v3489_v51 = vpop.permute.xlu0 %3488 }
 0x440   :  { %4901 = vmatmul.mubr.msk.bf16.vlgmr.msra.gmra.mrb[8].mxu0 %vm114_vm3, %v4899_v26  ;;  %4903 = vmatmul.mubr.msk.bf16.vlgmr.msra.gmra.mrb[8].mxu1 %vm114_vm3, %v4899_v26 }
 0x441   :  { %3265 = vmatpush1.bf16.msra.mxu0 %v3253_v31  ;;  %3306 = vmatpush1.bf16.msra.mxu1 %v3259_v12 }
 0x442   :  { %4910 = vmatprep.subr.msk.bf16.mxu0 %vm118_vm2, %v3369_v29  ;;  %4912 = vmatprep.subr.msk.bf16.mxu1 %vm118_vm2, %v3371_v30 }
 0x443   :  { %3296 = vmatprep.mubr.bf16.mxu0 %v5233_v2  ;;  %3337 = vmatprep.mubr.bf16.mxu1 %v5233_v2 }
 0x44c   :  { %4906 = vmatmul.mubr.msk.bf16.vlgmr.msra.gmra.mrb[8].mxu0 %vm114_vm3, %v4904_v57  ;;  %4908 = vmatmul.mubr.msk.bf16.vlgmr.msra.gmra.mrb[8].mxu1 %vm114_vm3, %v4904_v57 }
 0x44d   :  { %3388 = vmatpush1.bf16.msra.mxu0 %v3376_v49  ;;  %3429 = vmatpush1.bf16.msra.mxu1 %v3382_v13 }
 0x44e   :  { %3419 = vmatprep.mubr.bf16.mxu0 %v5233_v2  ;;  %3460 = vmatprep.mubr.bf16.mxu1 %v5233_v2 }
 0x458   :  { %4911 = vmatmul.mubr.msk.bf16.vlgmr.msra.gmra.mrb[8].mxu0 %vm114_vm3, %v4909_v47  ;;  %4913 = vmatmul.mubr.msk.bf16.vlgmr.msra.gmra.mrb[8].mxu1 %vm114_vm3, %v4909_v47 }
 0x459   :  { %3590 = vmatprep.mubr.bf16.mxu0 %v5233_v2  ;;  %3631 = vmatprep.mubr.bf16.mxu1 %v5233_v2 }
 0x52b   :  { %v3421_v39 = vpop.f32.mrb[8].mxu0  ;;  %v3462_v45 = vpop.f32.mrb[8].mxu1 }
 0x52c   :  { %v3480_v53 = vmul.f32 %v3478_v50, %v3421_v39  ;;  %v3482_v61 = vmul.f32 %v3478_v50, %v3462_v45  ;;  %v3423_v15 = vpop.f32.mrb[9].mxu0  ;;  %v3464_v8 = vpop.f32.mrb[9].mxu1 }
 0x52d   :  { %v3481_v36 = vmul.f32 %v3478_v50, %v3423_v15  ;;  %v3483_v17 = vmul.f32 %v3478_v50, %v3464_v8  ;;  %v3425_v22 = vpop.f32.mrb[10].mxu0  ;;  %v3466_v44 = vpop.f32.mrb[10].mxu1 }
 0x52e   :  { %v3491_v25 = vadd.f32 %v3489_v51, %v3480_v53  ;;  %v3426_v62 = vpop.f32.mrb[11].mxu0  ;;  %v3467_v59 = vpop.f32.mrb[11].mxu1  ;;  %v3493_v30 = vadd.f32 %v3489_v51, %v3482_v61 }
 0x52f   :  { %v3492_v26 = vadd.f32 %v3489_v51, %v3481_v36  ;;  %v3494_v12 = vadd.f32 %v3489_v51, %v3483_v17 }
 0x530   :  { %v6278_v29 = vmax.f32 %v3491_v25, 0.0  ;;  %v6286_v27 = vmax.f32 %v3493_v30, 0.0 }
 0x531   :  { %v6280_v31 = vmax.f32 %v3492_v26, 0.0  ;;  %v6288_v28 = vmax.f32 %v3494_v12, 0.0 }
 0x532   :  { %3521 = vrot.lane.b32.xlu1 %v6278_v29, %s5234_s28 }
 0x533   :  { %3523 = vrot.lane.b32.xlu0 %v6280_v31, %s5234_s28 }
 0x536   :  { %3525 = vrot.lane.b32.xlu1 %v6286_v27, %s5234_s28 }
 0x537   :  { %3527 = vrot.lane.b32.xlu0 %v6288_v28, %s5234_s28 }
 0x53a   :  { %3499 = vrot.lane.b32.xlu1 %v6278_v29, %s5235_s10 }
 0x53b   :  { %3501 = vrot.lane.b32.xlu0 %v6280_v31, %s5235_s10 }
 0x53e   :  { %3503 = vrot.lane.b32.xlu1 %v6286_v27, %s5235_s10 }
 0x53f   :  { %3505 = vrot.lane.b32.xlu0 %v6288_v28, %s5235_s10 }
 0x542   :  { %3737 = vrot.lane.b32.xlu1 %v6278_v29, %s5236_s0 }
 0x543   :  { %3739 = vrot.lane.b32.xlu0 %v6280_v31, %s5236_s0 }
 0x546   :  { %3741 = vrot.lane.b32.xlu1 %v6286_v27, %s5236_s0 }
 0x547   :  { %3743 = vrot.lane.b32.xlu0 %v6288_v28, %s5236_s0 }
 0x54a   :  { %3860 = vrot.lane.b32.xlu1 %v6278_v29, %s5237_s11 }
 0x54b   :  { %3862 = vrot.lane.b32.xlu0 %v6280_v31, %s5237_s11 }
 0x54e   :  { %3864 = vrot.lane.b32.xlu1 %v6286_v27, %s5237_s11 }
 0x54f   :  { %3866 = vrot.lane.b32.xlu0 %v6288_v28, %s5237_s11 }
 0x552   :  { %4090 = vrot.lane.b32.xlu1 %v6278_v29, %s5238_s12 }
 0x553   :  { %4092 = vrot.lane.b32.xlu0 %v6280_v31, %s5238_s12 }
 0x556   :  { %4094 = vrot.lane.b32.xlu1 %v6286_v27, %s5238_s12 }
 0x557   :  { %4096 = vrot.lane.b32.xlu0 %v6288_v28, %s5238_s12 }
 0x55a   :  { %4213 = vrot.lane.b32.xlu1 %v6278_v29, %s5239_s13 }
 0x55b   :  { %4215 = vrot.lane.b32.xlu0 %v6280_v31, %s5239_s13 }
 0x55e   :  { %4217 = vrot.lane.b32.xlu1 %v6286_v27, %s5239_s13 }
 0x55f   :  { %4219 = vrot.lane.b32.xlu0 %v6288_v28, %s5239_s13 }
 0x562   :  { %4336 = vrot.lane.b32.xlu1 %v6278_v29, %s5240_s14 }
 0x563   :  { %4338 = vrot.lane.b32.xlu0 %v6280_v31, %s5240_s14 }
 0x566   :  { %4340 = vrot.lane.b32.xlu1 %v6286_v27, %s5240_s14 }
 0x567   :  { %4342 = vrot.lane.b32.xlu0 %v6288_v28, %s5240_s14 }
 0x56a   :  { %4459 = vrot.lane.b32.xlu1 %v6278_v29, %s5241_s15 }
 0x56b   :  { %4461 = vrot.lane.b32.xlu0 %v6280_v31, %s5241_s15 }
 0x56e   :  { %4463 = vrot.lane.b32.xlu1 %v6286_v27, %s5241_s15 }
 0x56f   :  { %4465 = vrot.lane.b32.xlu0 %v6288_v28, %s5241_s15 }
 0x572   :  { %4586 = vperm.xlu1 %5232, %v4961_v33  }
 0x573   :  { %4597 = vperm.xlu0 %5231, %v4962_v0  }
 0x5a4   :  { %v3522_v14 = vpop.permute.xlu1 %3521 }
 0x5a5   :  { %v3524_v60 = vpop.permute.xlu0 %3523 }
 0x5a6   :  { %v3531_v57 = vsel %vm83_vm0, %v3522_v14, %v3524_v60 }
 0x5a7   :  { %v3534_v49 = vmul.f32 %v3531_v57, %v5405_v18 }
 0x5a8   :  { %v3526_v13 = vpop.permute.xlu1 %3525 }
 0x5a9   :  { %v3540_v47 = vpack.c.bf16 %v3534_v49, %v3534_v49  ;;  %v3530_v50 = vsel %vm83_vm0, %v3524_v60, %v3526_v13  ;;  %v3528_v51 = vpop.permute.xlu0 %3527 }
 0x5aa   :  { %v3535_v39 = vmul.f32 %v3530_v50, %v5414_v21  ;;  %v3529_v45 = vsel %vm83_vm0, %v3526_v13, %v3528_v51  ;;  %v3532_v53 = vsel %vm83_vm0, %v3528_v51, %v3522_v14 }
 0x5ab   :  { %v3533_v61 = vmul.f32 %v3532_v53, %v5411_v20  ;;  %v3536_v15 = vmul.f32 %v3529_v45, %v5408_v19  ;;  %4918 = vmatprep.subr.msk.bf16.mxu0 %vm118_vm2, %v3540_v47  ;;  %v4917_v19 = vld [vmem:[%s6572_s1 + $0x70] sm:$0xf] }
 0x5ac   :  { %v3541_v18 = vpack.c.bf16 %v3535_v39, %v3535_v39  ;;  %v3500_v8 = vpop.permute.xlu1 %3499 }
 0x5ad   :  { %v3539_v36 = vpack.c.bf16 %v3533_v61, %v3533_v61  ;;  %v3542_v17 = vpack.c.bf16 %v3536_v15, %v3536_v15  ;;  %v3502_v22 = vpop.permute.xlu0 %3501 }
 0x5ae   :  { %v3509_v21 = vsel %vm45_vm1, %v3500_v8, %v3502_v22  ;;  %v3553_v44 = vsel %vm118_vm2, %v3541_v18, 0 }
 0x5af   :  { %v3512_v25 = vmul.f32 %v3509_v21, %v5418_v24  ;;  %4920 = vmatprep.subr.msk.bf16.mxu1 %vm118_vm2, %v3542_v17  ;;  %v3547_v20 = vsel %vm118_vm2, %v3539_v36, 0 }
 0x5b0   :  { %v3504_v62 = vpop.permute.xlu1 %3503  ;;  %3559 = vmatpush1.bf16.msra.mxu0 %v3547_v20  ;;  %3600 = vmatpush1.bf16.msra.mxu1 %v3553_v44 }
 0x5b1   :  { %v3518_v59 = vpack.c.bf16 %v3512_v25, %v3512_v25  ;;  %v3508_v26 = vsel %vm45_vm1, %v3502_v22, %v3504_v62  ;;  %v3506_v30 = vpop.permute.xlu0 %3505  ;;  %v4916_v22 = vld [vmem:[%s6572_s1 + $0x6c] sm:$0xf] }
 0x5b2   :  { %v3513_v12 = vmul.f32 %v3508_v26, %v5438_v41  ;;  %v3507_v24 = vsel %vm45_vm1, %v3504_v62, %v3506_v30  ;;  %v3510_v33 = vsel %vm45_vm1, %v3506_v30, %v3500_v8 }
 0x5b3   :  { %v3511_v0 = vmul.f32 %v3510_v33, %v5435_v40  ;;  %v3514_v14 = vmul.f32 %v3507_v24, %v5447_v46  ;;  %4919 = vmatmul.mubr.msk.bf16.vlgmr.msra.gmra.mrb[12].mxu0 %vm114_vm3, %v4917_v19  ;;  %4921 = vmatmul.mubr.msk.bf16.vlgmr.msra.gmra.mrb[12].mxu1 %vm114_vm3, %v4917_v19 }
 0x5b4   :  { %v3519_v60 = vpack.c.bf16 %v3513_v12, %v3513_v12  ;;  %4922 = vmatprep.subr.msk.bf16.mxu0 %vm118_vm2, %v3518_v59  ;;  %v3738_v57 = vpop.permute.xlu1 %3737  ;;  %3687 = vmatprep.mubr.bf16.mxu0 %v5233_v2 }
 0x5b5   :  { %v3517_v41 = vpack.c.bf16 %v3511_v0, %v3511_v0  ;;  %v3520_v49 = vpack.c.bf16 %v3514_v14, %v3514_v14  ;;  %v3740_v13 = vpop.permute.xlu0 %3739  ;;  %3728 = vmatprep.mubr.bf16.mxu1 %v5233_v2 }
 0x5b6   :  { %v3747_v40 = vsel %vm318_vm4, %v3738_v57, %v3740_v13  ;;  %v3650_v46 = vsel %vm118_vm2, %v3519_v60, 0 }
 0x5b7   :  { %v3750_v47 = vmul.f32 %v3747_v40, %v5459_v54  ;;  %4924 = vmatprep.subr.msk.bf16.mxu1 %vm118_vm2, %v3520_v49  ;;  %v3644_v50 = vsel %vm118_vm2, %v3517_v41, 0  ;;  %v4926_v49 = vld [vmem:[%s6572_s1 + $0x74] sm:$0xf] }
 0x5b8   :  { %v3742_v51 = vpop.permute.xlu1 %3741  ;;  %3656 = vmatpush1.bf16.msra.mxu0 %v3644_v50  ;;  %3697 = vmatpush1.bf16.msra.mxu1 %v3650_v46 }
 0x5b9   :  { %v3756_v39 = vpack.c.bf16 %v3750_v47, %v3750_v47  ;;  %v3746_v45 = vsel %vm318_vm4, %v3740_v13, %v3742_v51  ;;  %v3744_v53 = vpop.permute.xlu0 %3743  ;;  %v3988_v13 = vpack.c.bf16 %v6288_v28, %v6288_v28 }
 0x5ba   :  { %v3751_v61 = vmul.f32 %v3746_v45, %v5476_v6  ;;  %v3745_v15 = vsel %vm318_vm4, %v3742_v51, %v3744_v53  ;;  %v3748_v54 = vsel %vm318_vm4, %v3744_v53, %v3738_v57  ;;  %v3985_v45 = vpack.c.bf16 %v6278_v29, %v6278_v29 }
 0x5bb   :  { %v3749_v18 = vmul.f32 %v3748_v54, %v5473_v5  ;;  %v3752_v8 = vmul.f32 %v3745_v15, %v5479_v7  ;;  %4927 = vmatprep.subr.msk.bf16.mxu0 %vm118_vm2, %v3756_v39  ;;  %v3987_v53 = vpack.c.bf16 %v6286_v27, %v6286_v27 }
 0x5bc   :  { %v3757_v36 = vpack.c.bf16 %v3751_v61, %v3751_v61  ;;  %v3861_v17 = vpop.permute.xlu1 %3860  ;;  %v4931_v61 = vld [vmem:[%s6572_s1 + $0x78] sm:$0xf] }
 0x5bd   :  { %v3755_v21 = vpack.c.bf16 %v3749_v18, %v3749_v18  ;;  %v3758_v6 = vpack.c.bf16 %v3752_v8, %v3752_v8  ;;  %v3863_v44 = vpop.permute.xlu0 %3862 }
 0x5be   :  { %v3870_v25 = vsel %vm458_vm5, %v3861_v17, %v3863_v44  ;;  %v3769_v20 = vsel %vm118_vm2, %v3757_v36, 0 }
 0x5bf   :  { %v3873_v5 = vmul.f32 %v3870_v25, %v5498_v32  ;;  %4923 = vmatmul.mubr.msk.bf16.vlgmr.msra.gmra.mrb[12].mxu0 %vm114_vm3, %v4916_v22  ;;  %4925 = vmatmul.mubr.msk.bf16.vlgmr.msra.gmra.mrb[12].mxu1 %vm114_vm3, %v4916_v22  ;;  %v3763_v7 = vsel %vm118_vm2, %v3755_v21, 0 }
 0x5c0   :  { %4929 = vmatprep.subr.msk.bf16.mxu1 %vm118_vm2, %v3758_v6  ;;  %v3865_v62 = vpop.permute.xlu1 %3864  ;;  %3775 = vmatpush1.bf16.msra.mxu0 %v3763_v7 }
 0x5c1   :  { %v3879_v19 = vpack.c.bf16 %v3873_v5, %v3873_v5  ;;  %v3869_v59 = vsel %vm458_vm5, %v3863_v44, %v3865_v62  ;;  %3816 = vmatpush1.bf16.msra.mxu1 %v3769_v20  ;;  %v3867_v26 = vpop.permute.xlu0 %3866  ;;  %3806 = vmatprep.mubr.bf16.mxu0 %v5233_v2 }
 0x5c2   :  { %v3868_v32 = vsel %vm458_vm5, %v3865_v62, %v3867_v26  ;;  %v3871_v30 = vsel %vm458_vm5, %v3867_v26, %v3861_v17  ;;  %3847 = vmatprep.mubr.bf16.mxu1 %v5233_v2  ;;  %v3874_v12 = vmul.f32 %v3869_v59, %v5509_v43 }
 0x5c3   :  { %v3872_v24 = vmul.f32 %v3871_v30, %v5506_v42  ;;  %v3875_v33 = vmul.f32 %v3868_v32, %v5517_v48  ;;  %4932 = vmatprep.subr.msk.bf16.mxu0 %vm118_vm2, %v3879_v19  ;;  %v3986_v48 = vpack.c.bf16 %v6280_v31, %v6280_v31 }
 0x5c4   :  { %v3880_v14 = vpack.c.bf16 %v3874_v12, %v3874_v12  ;;  %v4091_v57 = vpop.permute.xlu1 %4090 }
 0x5c5   :  { %v3881_v0 = vpack.c.bf16 %v3875_v33, %v3875_v33  ;;  %v3878_v60 = vpack.c.bf16 %v3872_v24, %v3872_v24  ;;  %v4093_v41 = vpop.permute.xlu0 %4092 }
 0x5c6   :  { %v3892_v43 = vsel %vm118_vm2, %v3880_v14, 0  ;;  %v4100_v29 = vsel %vm705_vm6, %v4091_v57, %v4093_v41 }
 0x5c7   :  { %4934 = vmatprep.subr.msk.bf16.mxu1 %vm118_vm2, %v3881_v0  ;;  %v3886_v42 = vsel %vm118_vm2, %v3878_v60, 0  ;;  %v4102_v36 = vmul.f32 %v4100_v29, %v5570_v37  ;;  %v4936_v37 = vld [vmem:[%s6572_s1 + $0x7c] sm:$0xf] }
 0x5c8   :  { %v4095_v40 = vpop.permute.xlu1 %4094 }
 0x5c9   :  { %v4097_v46 = vpop.permute.xlu0 %4096  ;;  %v4099_v47 = vsel %vm705_vm6, %v4093_v41, %v4095_v40  ;;  %v4108_v6 = vpack.c.bf16 %v4102_v36, %v4102_v36 }
 0x5ca   :  { %v4101_v31 = vsel %vm705_vm6, %v4097_v46, %v4091_v57  ;;  %v4103_v28 = vmul.f32 %v4099_v47, %v5554_v3  ;;  %v3999_v3 = vsel %vm118_vm2, %v3987_v53, 0  ;;  %v4098_v27 = vsel %vm705_vm6, %v4095_v40, %v4097_v46  ;;  %v4946_v53 = vld [vmem:[%s6572_s1 + $0x84] sm:$0xf] }
 0x5cb   :  { %4928 = vmatmul.mubr.msk.bf16.vlgmr.msra.gmra.mrb[12].mxu0 %vm114_vm3, %v4926_v49  ;;  %4930 = vmatmul.mubr.msk.bf16.vlgmr.msra.gmra.mrb[12].mxu1 %vm114_vm3, %v4926_v49  ;;  %v4105_v50 = vmul.f32 %v4101_v31, %v5550_v4  ;;  %v3993_v4 = vsel %vm118_vm2, %v3985_v45, 0  ;;  %v4104_v17 = vmul.f32 %v4098_v27, %v5574_v1  ;;  %v4116_v19 = vsel %vm118_vm2, %v4108_v6, 0 }
 0x5cc   :  { %3898 = vmatpush1.bf16.msra.mxu0 %v3886_v42  ;;  %3939 = vmatpush1.bf16.msra.mxu1 %v3892_v43  ;;  %v4214_v51 = vpop.permute.xlu1 %4213  ;;  %v4109_v15 = vpack.c.bf16 %v4103_v28, %v4103_v28 }
 0x5cd   :  { %4937 = vmatprep.subr.msk.bf16.mxu0 %vm118_vm2, %v3986_v48  ;;  %4939 = vmatprep.subr.msk.bf16.mxu1 %vm118_vm2, %v3988_v13  ;;  %v4216_v39 = vpop.permute.xlu0 %4215  ;;  %v4111_v54 = vpack.c.bf16 %v4105_v50, %v4105_v50  ;;  %v4110_v44 = vpack.c.bf16 %v4104_v17, %v4104_v17 }
 0x5ce   :  { %3929 = vmatprep.mubr.bf16.mxu0 %v5233_v2  ;;  %3970 = vmatprep.mubr.bf16.mxu1 %v5233_v2 }
 0x5cf   :  { %v4122_v59 = vsel %vm118_vm2, %v4110_v44, 0 }
 0x5d0   :  { %v4218_v18 = vpop.permute.xlu1 %4217 }
 0x5d1   :  { %v4220_v8 = vpop.permute.xlu0 %4219  ;;  %v4222_v22 = vsel %vm845_vm7, %v4216_v39, %v4218_v18 }
 0x5d2   :  { %v4224_v21 = vsel %vm845_vm7, %v4220_v8, %v4214_v51  ;;  %v4226_v25 = vmul.f32 %v4222_v22, %v5595_v56  ;;  %v4223_v56 = vsel %vm845_vm7, %v4214_v51, %v4216_v39 }
 0x5d3   :  { %v4228_v20 = vmul.f32 %v4224_v21, %v5592_v55  ;;  %v4221_v55 = vsel %vm845_vm7, %v4218_v18, %v4220_v8  ;;  %v4225_v30 = vmul.f32 %v4223_v56, %v5607_v16  ;;  %v4941_v16 = vld [vmem:[%s6572_s1 + $0x80] sm:$0xf] }
 0x5d4   :  { %v4337_v5 = vpop.permute.xlu1 %4336  ;;  %v4232_v62 = vpack.c.bf16 %v4226_v25, %v4226_v25  ;;  %v4227_v12 = vmul.f32 %v4221_v55, %v5612_v23 }
 0x5d5   :  { %v4339_v7 = vpop.permute.xlu0 %4338  ;;  %v4234_v1 = vpack.c.bf16 %v4228_v20, %v4228_v20  ;;  %v4231_v0 = vpack.c.bf16 %v4225_v30, %v4225_v30 }
 0x5d6   :  { %v4233_v14 = vpack.c.bf16 %v4227_v12, %v4227_v12  ;;  %v4608_v12 = vld [vmem:[%s6573_s5] sm:$0xff] }
 0x5d7   :  { %4933 = vmatmul.mubr.msk.bf16.vlgmr.msra.gmra.mrb[12].mxu0 %vm114_vm3, %v4931_v61  ;;  %4935 = vmatmul.mubr.msk.bf16.vlgmr.msra.gmra.mrb[12].mxu1 %vm114_vm3, %v4931_v61  ;;  %v4239_v43 = vsel %vm118_vm2, %v4231_v0, 0 }
 0x5d8   :  { %4005 = vmatpush1.bf16.msra.mxu0 %v3993_v4  ;;  %4046 = vmatpush1.bf16.msra.mxu1 %v3999_v3  ;;  %v4341_v26 = vpop.permute.xlu1 %4340  ;;  %v4245_v48 = vsel %vm118_vm2, %v4233_v14, 0 }
 0x5d9   :  { %4942 = vmatprep.subr.msk.bf16.mxu0 %vm118_vm2, %v4109_v15  ;;  %4944 = vmatprep.subr.msk.bf16.mxu1 %vm118_vm2, %v4111_v54  ;;  %v4343_v32 = vpop.permute.xlu0 %4342  ;;  %v4345_v24 = vsel %vm985_vm8, %v4339_v7, %v4341_v26 }
 0x5da   :  { %4036 = vmatprep.mubr.bf16.mxu0 %v5233_v2  ;;  %4077 = vmatprep.mubr.bf16.mxu1 %v5233_v2  ;;  %v4347_v33 = vsel %vm985_vm8, %v4343_v32, %v4337_v5  ;;  %v4349_v60 = vmul.f32 %v4345_v24, %v5632_v35  ;;  %v4346_v35 = vsel %vm985_vm8, %v4337_v5, %v4339_v7 }
 0x5db   :  { %v4351_v57 = vmul.f32 %v4347_v33, %v5629_v34  ;;  %v4344_v34 = vsel %vm985_vm8, %v4341_v26, %v4343_v32  ;;  %v4348_v46 = vmul.f32 %v4346_v35, %v5644_v52 }
 0x5dc   :  { %v4460_v41 = vpop.permute.xlu1 %4459  ;;  %v4355_v42 = vpack.c.bf16 %v4349_v60, %v4349_v60  ;;  %v4350_v47 = vmul.f32 %v4344_v34, %v5649_v58 }
 0x5dd   :  { %v4462_v49 = vpop.permute.xlu0 %4461  ;;  %v4357_v23 = vpack.c.bf16 %v4351_v57, %v4351_v57  ;;  %v4354_v50 = vpack.c.bf16 %v4348_v46, %v4348_v46 }
 0x5de   :  { %v4356_v51 = vpack.c.bf16 %v4350_v47, %v4350_v47  ;;  %v4469_v54 = vsel %vm1125_vm9, %v4460_v41, %v4462_v49 }
 0x5df   :  { %v4362_v58 = vsel %vm118_vm2, %v4354_v50, 0 }
 0x5e0   :  { %v4464_v13 = vpop.permute.xlu1 %4463  ;;  %v4368_v15 = vsel %vm118_vm2, %v4356_v51, 0 }
 0x5e1   :  { %v4466_v40 = vpop.permute.xlu0 %4465  ;;  %v4468_v31 = vsel %vm1125_vm9, %v4462_v49, %v4464_v13 }
 0x5e2   :  { %v4470_v28 = vsel %vm1125_vm9, %v4466_v40, %v4460_v41  ;;  %v4472_v39 = vmul.f32 %v4468_v31, %v5669_v11  ;;  %v4471_v11 = vmul.f32 %v4469_v54, %v5682_v10  ;;  %v4956_v10 = vld [vmem:[%s6572_s1 + $0x8c] sm:$0xf]  ;;  %v4765_v41 = vld [vmem:[%s6574_s6] sm:$0xff] }
 0x5e3   :  { %4938 = vmatmul.mubr.msk.bf16.vlgmr.msra.gmra.mrb[12].mxu0 %vm114_vm3, %v4936_v37  ;;  %4940 = vmatmul.mubr.msk.bf16.vlgmr.msra.gmra.mrb[12].mxu1 %vm114_vm3, %v4936_v37  ;;  %v4474_v45 = vmul.f32 %v4470_v28, %v5666_v63  ;;  %v4467_v63 = vsel %vm1125_vm9, %v4464_v13, %v4466_v40 }
 0x5e4   :  { %4128 = vmatpush1.bf16.msra.mxu0 %v4116_v19  ;;  %4169 = vmatpush1.bf16.msra.mxu1 %v4122_v59  ;;  %v4478_v61 = vpack.c.bf16 %v4472_v39, %v4472_v39  ;;  %v4473_v4 = vmul.f32 %v4467_v63, %v5686_v38  ;;  %v4477_v3 = vpack.c.bf16 %v4471_v11, %v4471_v11  ;;  %v5242_v38 = vmov 0.0  }
 0x5e5   :  { %4947 = vmatprep.subr.msk.bf16.mxu0 %vm118_vm2, %v4232_v62  ;;  %4949 = vmatprep.subr.msk.bf16.mxu1 %vm118_vm2, %v4234_v1  ;;  %v4480_v52 = vpack.c.bf16 %v4474_v45, %v4474_v45 }
 0x5e6   :  { %4159 = vmatprep.mubr.bf16.mxu0 %v5233_v2  ;;  %4200 = vmatprep.mubr.bf16.mxu1 %v5233_v2  ;;  %v4479_v29 = vpack.c.bf16 %v4473_v4, %v4473_v4  ;;  %v4485_v27 = vsel %vm118_vm2, %v4477_v3, 0 }
 0x5e8   :  { %v4491_v18 = vsel %vm118_vm2, %v4479_v29, 0 }
 0x5ef   :  { %4943 = vmatmul.mubr.msk.bf16.vlgmr.msra.gmra.mrb[12].mxu0 %vm114_vm3, %v4941_v16  ;;  %4945 = vmatmul.mubr.msk.bf16.vlgmr.msra.gmra.mrb[12].mxu1 %vm114_vm3, %v4941_v16 }
 0x5f0   :  { %4251 = vmatpush1.bf16.msra.mxu0 %v4239_v43  ;;  %4292 = vmatpush1.bf16.msra.mxu1 %v4245_v48 }
 0x5f1   :  { %4952 = vmatprep.subr.msk.bf16.mxu0 %vm118_vm2, %v4355_v42  ;;  %4954 = vmatprep.subr.msk.bf16.mxu1 %vm118_vm2, %v4357_v23  ;;  %v4587_v8 = vpop.permute.xlu1 %4586 }
 0x5f2   :  { %4282 = vmatprep.mubr.bf16.mxu0 %v5233_v2  ;;  %4323 = vmatprep.mubr.bf16.mxu1 %v5233_v2  ;;  %v4598_v36 = vpop.permute.xlu0 %4597 }
 0x5fb   :  { %4948 = vmatmul.mubr.msk.bf16.vlgmr.msra.gmra.mrb[12].mxu0 %vm114_vm3, %v4946_v53  ;;  %4950 = vmatmul.mubr.msk.bf16.vlgmr.msra.gmra.mrb[12].mxu1 %vm114_vm3, %v4946_v53 }
 0x5fc   :  { %4374 = vmatpush1.bf16.msra.mxu0 %v4362_v58  ;;  %4415 = vmatpush1.bf16.msra.mxu1 %v4368_v15 }
 0x5fd   :  { %4957 = vmatprep.subr.msk.bf16.mxu0 %vm118_vm2, %v4478_v61  ;;  %4959 = vmatprep.subr.msk.bf16.mxu1 %vm118_vm2, %v4480_v52 }
 0x5fe   :  { %4405 = vmatprep.mubr.bf16.mxu0 %v5233_v2  ;;  %4446 = vmatprep.mubr.bf16.mxu1 %v5233_v2 }
 0x607   :  { %4953 = vmatmul.mubr.msk.bf16.vlgmr.msra.gmra.mrb[12].mxu0 %vm114_vm3, %v4951_v9  ;;  %4955 = vmatmul.mubr.msk.bf16.vlgmr.msra.gmra.mrb[12].mxu1 %vm114_vm3, %v4951_v9 }
 0x608   :  { %4497 = vmatpush1.bf16.msra.mxu0 %v4485_v27  ;;  %4538 = vmatpush1.bf16.msra.mxu1 %v4491_v18 }
 0x609   :  { %4528 = vmatprep.mubr.bf16.mxu0 %v5233_v2  ;;  %4569 = vmatprep.mubr.bf16.mxu1 %v5233_v2 }
 0x613   :  { %4958 = vmatmul.mubr.msk.bf16.vlgmr.msra.gmra.mrb[12].mxu0 %vm114_vm3, %v4956_v10  ;;  %4960 = vmatmul.mubr.msk.bf16.vlgmr.msra.gmra.mrb[12].mxu1 %vm114_vm3, %v4956_v10 }
 0x614   :  { %4747 = vmatprep.mubr.f32.mxu1 %v5242_v38  ;;  %4676 = vmatprep.mubr.f32.mxu0 %v5242_v38 }
 0x6e6   :  { %v4530_v17 = vpop.f32.mrb[12].mxu0  ;;  %v4571_v22 = vpop.f32.mrb[12].mxu1 }
 0x6e7   :  { %v4589_v21 = vmul.f32 %v4587_v8, %v4530_v17  ;;  %v4591_v6 = vmul.f32 %v4587_v8, %v4571_v22  ;;  %v4532_v44 = vpop.f32.mrb[13].mxu0  ;;  %v4573_v25 = vpop.f32.mrb[13].mxu1 }
 0x6e8   :  { %v4590_v2 = vmul.f32 %v4587_v8, %v4532_v44  ;;  %v4592_v20 = vmul.f32 %v4587_v8, %v4573_v25  ;;  %v4534_v5 = vpop.f32.mrb[14].mxu0  ;;  %v4575_v7 = vpop.f32.mrb[14].mxu1 }
 0x6e9   :  { %v4600_v37 = vadd.f32 %v4598_v36, %v4589_v21  ;;  %v4602_v62 = vadd.f32 %v4598_v36, %v4591_v6  ;;  %v4535_v1 = vpop.f32.mrb[15].mxu0  ;;  %v4576_v19 = vpop.f32.mrb[15].mxu1 }
 0x6ea   :  { %v4601_v59 = vadd.f32 %v4598_v36, %v4590_v2  ;;  %v4603_v56 = vadd.f32 %v4598_v36, %v4592_v20 }
 0x6eb   :  { %v4604_v32 = vmax.f32 %v4600_v37, 0.0  ;;  %v4606_v30 = vmax.f32 %v4602_v62, 0.0 }
 0x6ec   :  { %v4605_v55 = vmax.f32 %v4601_v59, 0.0  ;;  %v4607_v26 = vmax.f32 %v4603_v56, 0.0 }
 0x6ee   :  { %4612 = vmatprep.subr.mxu0 %v4605_v55  ;;  %4683 = vmatprep.subr.mxu1 %v4607_v26 }
 0x6ef   :  { %4613 = vmatpush1.msra.mxu0 %v4604_v32  ;;  %4684 = vmatpush1.msra.mxu1 %v4606_v30 }
 0x6f0   :  { %4964 = vmatmul.mubr.msk.f32.vlgmr.msra.gmra.mrb[16].mxu1 %vm114_vm3, %v4608_v12  ;;  %4963 = vmatmul.mubr.msk.f32.vlgmr.msra.gmra.mrb[16].mxu0 %vm114_vm3, %v4608_v12 }
 0x7c3   :  { %v4749_v24 = vpop.f32.mrb[16].mxu1  ;;  %v4678_v33 = vpop.f32.mrb[16].mxu0 }
 0x7c4   :  { %v4751_v0 = vpop.f32.mrb[17].mxu1  ;;  %v4680_v14 = vpop.f32.mrb[17].mxu0 }
 0x7c5   :  { %v4759_v60 = vadd.f32 %v4751_v0, %v4749_v24  ;;  %v4754_v57 = vadd.f32 %v4680_v14, %v4678_v33 }
 0x7c7   :  { %4760 = vadd.xlane.f32.xlu0 %v4759_v60  ;;  %4755 = vadd.xlane.f32.xlu1 %v4754_v57 }
 0x7dd   :  { %4768 = vperm.xlu0 %5231, %v4765_v41  }
 0x854   :  { %v4761_v49 = vpop.xlane.xlu0 %4760  ;;  %v4756_v16 = vpop.xlane.xlu1 %4755 }
 0x855   :  { %v4762_v42 = vmul.f32 0.00390625, %v4761_v49  ;;  %v4758_v23 = vmul.f32 0.00390625, %v4756_v16 }
 0x857   :  { %v4764_v48 = vsel %vm4763_vm10, %v4758_v23, %v4762_v42 }
 0x85c   :  { %v4769_v43 = vpop.permute.xlu0 %4768 }
 0x85d   :  { %v4771_v35 = vadd.f32 %v4769_v43, %v4764_v48 }
 0x85f   :  { %4773 = vst.msk [vmem:[%s6575_s7] sm:$0xff] %vm4772_vm11, %v4771_v35 }

</bundles_post_ra>
